<compile_context>
chip_gen: v7x
topology: tpu7x:2x2x1
jax: 0.10.0
libtpu: 0.0.40
codegen_flags: <defaults>
</compile_context>

<pallas_src>
import math
from functools import partial

import jax
import jax.numpy as jnp
from jax.experimental import pallas as pl
from jax.experimental.pallas import tpu as pltpu


# ---------------------------------------------------------------------------
# In-kernel helpers (pure jnp on loaded values)
# ---------------------------------------------------------------------------

def _shift_rows(z, d):
    """out[t] = z[t + d], zero outside [0, T).  Row shift via XLU roll + mask."""
    T = z.shape[0]
    if d == 0:
        return z
    rolled = pltpu.roll(z, shift=(-d) % T, axis=0)
    rows = jax.lax.broadcasted_iota(jnp.int32, z.shape, 0)
    valid = (rows + d >= 0) & (rows + d < T)
    return jnp.where(valid, rolled, 0.0)


def _conv1d(x, w, b, pad):
    """Same-padded 1D conv as K shifted MXU matmuls.
    x: (T, Cin) f32, w: (K, Cin, Cout) bf16, b: (1, Cout) f32 -> (T, Cout) f32."""
    T = x.shape[0]
    K = w.shape[0]
    Cout = w.shape[-1]
    xb = x.astype(jnp.bfloat16)
    acc = jnp.zeros((T, Cout), jnp.float32)
    for k in range(K):
        z = jnp.dot(xb, w[k], preferred_element_type=jnp.float32)
        acc = acc + _shift_rows(z, k - pad)
    return acc + b


def _conv1d_cin1(col, w, b, pad):
    """Same-padded 1D conv with a single input channel (VPU outer products).
    col: (T, 1) f32, w: (K, Cout) f32, b: (1, Cout) f32 -> (T, Cout) f32."""
    T = col.shape[0]
    K = w.shape[0]
    Cout = w.shape[1]
    acc = jnp.zeros((T, Cout), jnp.float32)
    for k in range(K):
        z = col * w[k:k + 1, :]
        acc = acc + _shift_rows(z, k - pad)
    return acc + b


def _layernorm(x, g, b, eps=1e-5):
    """x: (T, H) f32, g/b: (1, H) f32; f32 statistics."""
    m = jnp.mean(x, axis=-1, keepdims=True)
    v = jnp.mean(jnp.square(x - m), axis=-1, keepdims=True)
    return (x - m) * jax.lax.rsqrt(v + eps) * g + b


def _mha_core(q_all, k_all, v_all, wo, key_bias, n_heads, dim_head, out_dim):
    """q_all: (Tq, HD) f32, k_all/v_all: (Tk, HD) f32, wo: (HD, H) bf16,
    key_bias: (1, Tk) additive f32 (0 / -1e9).  1/sqrt(dh) is folded into Wq."""
    Tq = q_all.shape[0]
    out = jnp.zeros((Tq, out_dim), jnp.float32)
    for h in range(n_heads):                              # small static head loop
        sl = slice(h * dim_head, (h + 1) * dim_head)
        q = q_all[:, sl].astype(jnp.bfloat16)
        k = k_all[:, sl].astype(jnp.bfloat16)
        v = v_all[:, sl].astype(jnp.bfloat16)
        s = jnp.einsum('qd,kd->qk', q, k,
                       preferred_element_type=jnp.float32) + key_bias
        s = s - jnp.max(s, axis=-1, keepdims=True)
        p = jnp.exp(s)
        denom = jnp.sum(p, axis=-1, keepdims=True)
        ctx = jnp.einsum('qk,kd->qd', p.astype(jnp.bfloat16), v,
                         preferred_element_type=jnp.float32)
        ctx = ctx * pl.reciprocal(denom, approx=True)      # EUP, not VPU divide
        out = out + jnp.dot(ctx.astype(jnp.bfloat16), wo[sl, :],
                            preferred_element_type=jnp.float32)
    return out


# ---------------------------------------------------------------------------
# Pallas kernels
# ---------------------------------------------------------------------------

def _prenet_kernel(x_ref, xmc_ref, uv_ref, uvemb_ref,
                   c1w_ref, c1b_ref, c2w_ref, c2b_ref, scw_ref,
                   xspk_ref, xp_ref):
    # ResBlk1d (normalize=False, learned 1x1 shortcut) fused with mask + uv embedding.
    xb = x_ref[0]                                          # (T, ssl) f32
    h = jnp.where(xb >= 0, xb, 0.2 * xb)
    h = _conv1d(h, c1w_ref[...], c1b_ref[...], 2)
    h = jnp.where(h >= 0, h, 0.2 * h)
    h = _conv1d(h, c2w_ref[...], c2b_ref[...], 2)
    sc = jnp.dot(xb.astype(jnp.bfloat16), scw_ref[0],
                 preferred_element_type=jnp.float32)       # 1x1 shortcut, no bias
    spk = (sc + h) * (1.0 / math.sqrt(2.0)) * xmc_ref[0]   # (T, H) * (T, 1)
    xspk_ref[0] = spk.astype(xspk_ref.dtype)
    # uv embedding: uv in {0,1} -> select between the two embedding rows (no gather)
    uvb = uv_ref[0]                                        # (T, 1)
    uv_e = uvb * uvemb_ref[1:2, :] + (1.0 - uvb) * uvemb_ref[0:1, :]
    xp_ref[0] = (spk + uv_e).astype(xp_ref.dtype)


def _decoder_kernel(x_in_ref, f0n_ref, xmc_ref, xmr_ref, cmr_ref, cond_ref,
                    apw_ref, apb_ref, dpw_ref, dpb_ref,
                    lng_ref, lnb_ref,
                    saqkv_ref, sao_ref, caq_ref, cakv_ref, cao_ref,
                    f1w_ref, f1b_ref, f2w_ref, f2b_ref,
                    pw_ref, pb_ref,
                    out_ref, x_sc,
                    *, n_heads, dim_head, kernel_size):
    l = pl.program_id(1)
    n_l = pl.num_programs(1)
    T, H = x_sc.shape
    HD = n_heads * dim_head
    pad_ffn = kernel_size // 2
    mcol = xmc_ref[0]                                      # (T, 1) row mask

    # ---- decoder prenet, run once per batch element (layer 0) ----
    @pl.when(l == 0)
    def _init():
        xb0 = x_in_ref[0]                                  # (T, H) f32
        xb0 = xb0 + _conv1d_cin1(f0n_ref[0], apw_ref[...], apb_ref[...],
                                 kernel_size // 2)
        xb0 = _conv1d(xb0, dpw_ref[...], dpb_ref[...], 1)
        x_sc[...] = xb0 * mcol

    xb = x_sc[...]
    kb_self = jnp.where(xmr_ref[0] > 0.0, 0.0, -1e9)       # (1, T)  additive key bias
    kb_cross = jnp.where(cmr_ref[0] > 0.0, 0.0, -1e9)      # (1, Tc)
    condb = cond_ref[0]                                    # (Tc, H)

    # ---- self-attention block ----
    y = _layernorm(xb, lng_ref[0, 0:1, :], lnb_ref[0, 0:1, :])
    qkv = jnp.dot(y.astype(jnp.bfloat16), saqkv_ref[0],
                  preferred_element_type=jnp.float32)      # fused QKV, K=H contraction
    attn = _mha_core(qkv[:, :HD], qkv[:, HD:2 * HD], qkv[:, 2 * HD:],
                     sao_ref[0], kb_self, n_heads, dim_head, H)
    xb = (xb + attn) * mcol

    # ---- cross-attention block ----
    y = _layernorm(xb, lng_ref[0, 1:2, :], lnb_ref[0, 1:2, :])
    q_all = jnp.dot(y.astype(jnp.bfloat16), caq_ref[0],
                    preferred_element_type=jnp.float32)
    kv = jnp.dot(condb.astype(jnp.bfloat16), cakv_ref[0],
                 preferred_element_type=jnp.float32)
    attn = _mha_core(q_all, kv[:, :HD], kv[:, HD:],
                     cao_ref[0], kb_cross, n_heads, dim_head, H)
    xb = (xb + attn) * mcol

    # ---- conv FFN block ----
    y = _layernorm(xb, lng_ref[0, 2:3, :], lnb_ref[0, 2:3, :])
    hmid = _conv1d(y, f1w_ref[0], f1b_ref[0], pad_ffn)
    hmid = jnp.maximum(hmid, 0.0)
    hmid = _conv1d(hmid, f2w_ref[0], f2b_ref[0], pad_ffn)
    xb = (xb + hmid) * mcol

    x_sc[...] = xb

    # ---- final 1x1 projection (lane-dense (1, T) output) ----
    @pl.when(l == n_l - 1)
    def _proj():
        pred = jnp.einsum('ch,th->ct', pw_ref[...], xb,
                          preferred_element_type=jnp.float32)   # (1, T)
        out_ref[0] = (pred + pb_ref[0, 0]) * xmr_ref[0]


# ---------------------------------------------------------------------------
# pallas_call wrappers
# ---------------------------------------------------------------------------

def ssl_prenet_call(params, x_tc, xm_col, uv_col):
    B, T, ssl_dim = x_tc.shape
    H = params["uv_emb"].shape[1]
    in_specs = [
        pl.BlockSpec((1, T, ssl_dim), lambda b: (b, 0, 0)),
        pl.BlockSpec((1, T, 1), lambda b: (b, 0, 0)),
        pl.BlockSpec((1, T, 1), lambda b: (b, 0, 0)),
        pl.BlockSpec((2, H), lambda b: (0, 0)),
        pl.BlockSpec((5, ssl_dim, ssl_dim), lambda b: (0, 0, 0)),
        pl.BlockSpec((1, ssl_dim), lambda b: (0, 0)),
        pl.BlockSpec((5, ssl_dim, H), lambda b: (0, 0, 0)),
        pl.BlockSpec((1, H), lambda b: (0, 0)),
        pl.BlockSpec((1, ssl_dim, H), lambda b: (0, 0, 0)),
    ]
    out_specs = (pl.BlockSpec((1, T, H), lambda b: (b, 0, 0)),
                 pl.BlockSpec((1, T, H), lambda b: (b, 0, 0)))
    out_shape = (jax.ShapeDtypeStruct((B, T, H), jnp.float32),
                 jax.ShapeDtypeStruct((B, T, H), jnp.float32))
    return pl.pallas_call(
        _prenet_kernel,
        grid=(B,),
        in_specs=in_specs,
        out_specs=out_specs,
        out_shape=out_shape,
        compiler_params=pltpu.CompilerParams(dimension_semantics=("parallel",)),
    )(x_tc, xm_col, uv_col, params["uv_emb"],
      params["pre_c1_w"], params["pre_c1_b"],
      params["pre_c2_w"], params["pre_c2_b"], params["pre_sc_w"])


def aux_decoder_call(params, xp, xm_col, xm_row, f0n_col, cond, cm_row,
                     n_heads, dim_head, kernel_size):
    B, T, H = xp.shape
    Tc = cond.shape[1]
    L = params["ln_g"].shape[0]
    HD = n_heads * dim_head
    F = params["ffn1_b"].shape[-1]
    K = kernel_size

    def bcast(shape):   # batch-indexed, layer-invariant block
        return pl.BlockSpec((1,) + shape[1:],
                            lambda b, l: (b,) + (0,) * (len(shape) - 1))

    def const(shape):   # same block every grid step
        return pl.BlockSpec(shape, lambda b, l: (0,) * len(shape))

    def layer(shape):   # per-layer weight stack, leading dim = layer
        return pl.BlockSpec((1,) + shape[1:],
                            lambda b, l: (l,) + (0,) * (len(shape) - 1))

    in_specs = [
        bcast((B, T, H)),        # x_in
        bcast((B, T, 1)),        # f0_norm (column)
        bcast((B, T, 1)),        # x_mask (column)
        bcast((B, 1, T)),        # x_mask (row)
        bcast((B, 1, Tc)),       # cond_mask (row)
        bcast((B, Tc, H)),       # cond
        const((K, H)),           # aux_prenet_w (Cin=1 squeezed)
        const((1, H)),           # aux_prenet_b
        const((3, H, H)),        # dec_prenet_w
        const((1, H)),           # dec_prenet_b
        layer((L, 3, H)),        # ln gamma (stacked ln1/ln2/ln3)
        layer((L, 3, H)),        # ln beta
        layer((L, H, 3 * HD)),   # self-attn fused QKV
        layer((L, HD, H)),       # self-attn out proj
        layer((L, H, HD)),       # cross-attn Q
        layer((L, H, 2 * HD)),   # cross-attn fused KV
        layer((L, HD, H)),       # cross-attn out proj
        layer((L, K, H, F)),     # ffn conv1 w
        layer((L, 1, F)),        # ffn conv1 b
        layer((L, K, F, H)),     # ffn conv2 w
        layer((L, 1, H)),        # ffn conv2 b
        const((1, H)),           # proj_w
        const((1, 1)),           # proj_b
    ]
    out_specs = pl.BlockSpec((1, 1, T), lambda b, l: (b, 0, 0))
    out_shape = jax.ShapeDtypeStruct((B, 1, T), jnp.float32)

    kernel = partial(_decoder_kernel, n_heads=n_heads, dim_head=dim_head,
                     kernel_size=kernel_size)
    return pl.pallas_call(
        kernel,
        grid=(B, L),
        in_specs=in_specs,
        out_specs=out_specs,
        out_shape=out_shape,
        scratch_shapes=[pltpu.VMEM((T, H), jnp.float32)],
        compiler_params=pltpu.CompilerParams(
            dimension_semantics=("parallel", "arbitrary")),
    )(xp, f0n_col, xm_col, xm_row, cm_row, cond,
      params["aux_prenet_w"], params["aux_prenet_b"],
      params["dec_prenet_w"], params["dec_prenet_b"],
      params["ln_g"], params["ln_b"],
      params["sa_wqkv"], params["sa_wo"],
      params["ca_wq"], params["ca_wkv"], params["ca_wo"],
      params["ffn1_w"], params["ffn1_b"], params["ffn2_w"], params["ffn2_b"],
      params["proj_w"], params["proj_b"])


# ---------------------------------------------------------------------------
# Glue: f0 helpers (elementwise / tiny reductions, plain JAX)
# ---------------------------------------------------------------------------

_F0_BIN = 256
_F0_MIN, _F0_MAX = 50.0, 1100.0
_F0_MEL_MIN = 1127.0 * math.log(1.0 + _F0_MIN / 700.0)
_F0_MEL_MAX = 1127.0 * math.log(1.0 + _F0_MAX / 700.0)


def f0_to_coarse(f0):
    f0_mel = 1127.0 * jnp.log(1.0 + f0 / 700.0)
    a = (_F0_BIN - 2) / (_F0_MEL_MAX - _F0_MEL_MIN)
    b = _F0_MEL_MIN * a - 1.0
    f0_mel = jnp.where(f0_mel > 0, f0_mel * a - b, f0_mel)
    c = jnp.round(f0_mel).astype(jnp.int32)
    c = c * (c > 0).astype(jnp.int32)
    c = c + (c < 1).astype(jnp.int32)
    c = c * (c < _F0_BIN).astype(jnp.int32) + (c >= _F0_BIN).astype(jnp.int32) * (_F0_BIN - 1)
    return c


def normalize_f0(lf0, x_mask, uv):
    # lf0, x_mask: (B, 1, T); uv: (B, T).  Deterministic (scale factor = 1).
    uv_sum = jnp.sum(uv, axis=1, keepdims=True)
    uv_sum = jnp.where(uv_sum == 0, 9999.0, uv_sum)
    means = jnp.sum(lf0[:, 0, :] * uv, axis=1, keepdims=True) / uv_sum
    f0_norm = lf0 - means[:, :, None]
    return f0_norm * x_mask


# ---------------------------------------------------------------------------
# Parameters (packed / stacked, bf16 for MXU weights, attn scale folded into Wq)
# ---------------------------------------------------------------------------

def init_params(key, ssl_dim, hidden, kernel_size, n_layers, n_heads, dim_head):
    keys = iter(jax.random.split(key, 64))

    def nrm(shape, scale=0.02):
        return scale * jax.random.normal(next(keys), shape, jnp.float32)

    HD = n_heads * dim_head
    F = hidden * 4
    qscale = 1.0 / math.sqrt(dim_head)
    bf = jnp.bfloat16
    params = {
        "uv_emb": nrm((2, hidden), 1.0),
        "f0_emb": nrm((256, hidden), 1.0),
        # ssl_prenet: ResBlk1d(ssl_dim -> hidden, kernel_size=5, normalize=False)
        "pre_c1_w": nrm((5, ssl_dim, ssl_dim)).astype(bf),
        "pre_c1_b": jnp.zeros((1, ssl_dim), jnp.float32),
        "pre_c2_w": nrm((5, ssl_dim, hidden)).astype(bf),
        "pre_c2_b": jnp.zeros((1, hidden), jnp.float32),
        "pre_sc_w": nrm((1, ssl_dim, hidden)).astype(bf),          # learned shortcut, no bias
        # f0_decoder prenets
        "aux_prenet_w": nrm((kernel_size, hidden)),                # Cin=1 squeezed (VPU path)
        "aux_prenet_b": jnp.zeros((1, hidden), jnp.float32),
        "dec_prenet_w": nrm((3, hidden, hidden)).astype(bf),
        "dec_prenet_b": jnp.zeros((1, hidden), jnp.float32),
        # stacked per-layer decoder weights; 1/sqrt(dim_head) folded into Q projections
        "ln_g": jnp.ones((n_layers, 3, hidden), jnp.float32),
        "ln_b": jnp.zeros((n_layers, 3, hidden), jnp.float32),
        "sa_wqkv": jnp.concatenate(
            [nrm((n_layers, hidden, HD)) * qscale,
             nrm((n_layers, hidden, HD)),
             nrm((n_layers, hidden, HD))], axis=-1).astype(bf),
        "sa_wo": nrm((n_layers, HD, hidden)).astype(bf),
        "ca_wq": (nrm((n_layers, hidden, HD)) * qscale).astype(bf),
        "ca_wkv": jnp.concatenate(
            [nrm((n_layers, hidden, HD)),
             nrm((n_layers, hidden, HD))], axis=-1).astype(bf),
        "ca_wo": nrm((n_layers, HD, hidden)).astype(bf),
        "ffn1_w": nrm((n_layers, kernel_size, hidden, F)).astype(bf),
        "ffn1_b": jnp.zeros((n_layers, 1, F), jnp.float32),
        "ffn2_w": nrm((n_layers, kernel_size, F, hidden)).astype(bf),
        "ffn2_b": jnp.zeros((n_layers, 1, hidden), jnp.float32),
        "proj_w": nrm((1, hidden)),
        "proj_b": jnp.zeros((1, 1), jnp.float32),
    }
    return params


# ---------------------------------------------------------------------------
# Forward pass (PyTorch NCT layout in / out)
# ---------------------------------------------------------------------------

def content_encoder_forward(params, x, x_mask, cond, cond_mask, f0, uv,
                            n_heads, dim_head, kernel_size):
    """x: (B, ssl_dim, T), x_mask: (B, 1, T), cond: (B, hidden, Tc),
       cond_mask: (B, 1, Tc), f0: (B, 1, T), uv: (B, T)."""
    x_tc = jnp.transpose(x, (0, 2, 1))              # (B, T, ssl_dim)
    xm_col = jnp.transpose(x_mask, (0, 2, 1))       # (B, T, 1)
    cond_tc = jnp.transpose(cond, (0, 2, 1))        # (B, Tc, hidden)
    uv_col = uv[:, :, None]                         # (B, T, 1)

    # fused prenet + mask + uv embedding
    x_spk_tc, xp_tc = ssl_prenet_call(params, x_tc, xm_col, uv_col)

    lf0 = 2595.0 * jnp.log10(1.0 + f0 / 700.0) / 500.0     # (B, 1, T)
    f0_norm = normalize_f0(lf0, x_mask, uv)                 # (B, 1, T)
    f0n_col = jnp.transpose(f0_norm, (0, 2, 1))             # (B, T, 1)

    # fused AuxDecoder (all layers in one pallas_call); input detached as in torch
    f0_pred = aux_decoder_call(params, jax.lax.stop_gradient(xp_tc),
                               xm_col, x_mask, f0n_col, cond_tc, cond_mask,
                               n_heads, dim_head, kernel_size)   # (B, 1, T)

    f0_coarse = f0_to_coarse(f0[:, 0, :])                    # (B, T) int32
    f0_e = params["f0_emb"][f0_coarse]                       # (B, T, hidden)
    x_out_tc = xp_tc + f0_e

    return (jnp.transpose(x_spk_tc, (0, 2, 1)),              # (B, hidden, T)
            jnp.transpose(x_out_tc, (0, 2, 1)),              # (B, hidden, T)
            f0_pred,                                         # (B, 1, T)
            lf0)                                             # (B, 1, T)


# ---------------------------------------------------------------------------
# Main
# ---------------------------------------------------------------------------

if __name__ == "__main__":
    B, T, Tc = 2, 32, 16
    ssl_dim, hidden = 32, 64
    kernel_size, n_layers, n_heads, dim_head = 3, 2, 2, 16

    key = jax.random.PRNGKey(0)
    k_x, k_c, k_f0, k_uv, k_p = jax.random.split(key, 5)

    x = jax.random.normal(k_x, (B, ssl_dim, T), jnp.float32)
    x_mask = jnp.ones((B, 1, T), jnp.float32).at[1, :, T - 4:].set(0.0)
    cond = jax.random.normal(k_c, (B, hidden, Tc), jnp.float32)
    cond_mask = jnp.ones((B, 1, Tc), jnp.float32).at[1, :, Tc - 2:].set(0.0)
    uv = (jax.random.uniform(k_uv, (B, T)) > 0.2).astype(jnp.float32) * x_mask[:, 0, :]
    f0 = jax.random.uniform(k_f0, (B, 1, T), minval=80.0, maxval=400.0) * uv[:, None, :]

    params = init_params(k_p, ssl_dim, hidden, kernel_size, n_layers, n_heads, dim_head)

    fwd = jax.jit(partial(content_encoder_forward,
                          n_heads=n_heads, dim_head=dim_head, kernel_size=kernel_size))
    outs = fwd(params, x, x_mask, cond, cond_mask, f0, uv)
    jax.block_until_ready(outs)

    x_spk, x_out, f0_pred, lf0 = outs
    assert x_spk.shape == (B, hidden, T)
    assert x_out.shape == (B, hidden, T)
    assert f0_pred.shape == (B, 1, T)
    assert lf0.shape == (B, 1, T)
    assert bool(jnp.all(jnp.isfinite(x_out))) and bool(jnp.all(jnp.isfinite(f0_pred)))
    print("KERNEL_OK")
</pallas_src>

<mosaic_0001>
module attributes {stable_mosaic.version = 11 : i64} {
  func.func @_prenet_kernel(%arg0: i32, %arg1: memref<1x32x32xf32, #tpu.memory_space<vmem>>, %arg2: memref<1x32x1xf32, #tpu.memory_space<vmem>>, %arg3: memref<1x32x1xf32, #tpu.memory_space<vmem>>, %arg4: memref<2x64xf32, #tpu.memory_space<vmem>>, %arg5: memref<5x32x32xbf16, #tpu.memory_space<vmem>>, %arg6: memref<1x32xf32, #tpu.memory_space<vmem>>, %arg7: memref<5x32x64xbf16, #tpu.memory_space<vmem>>, %arg8: memref<1x64xf32, #tpu.memory_space<vmem>>, %arg9: memref<1x32x64xbf16, #tpu.memory_space<vmem>>, %arg10: memref<1x32x64xf32, #tpu.memory_space<vmem>>, %arg11: memref<1x32x64xf32, #tpu.memory_space<vmem>>) attributes {dimension_semantics = [#tpu.dimension_semantics<parallel>], iteration_bounds = array<i64: 2>, scalar_prefetch = 0 : i64, scratch_operands = 0 : i64, tpu.core_type = #tpu.core_type<tc>, window_params = [{transform_indices = @transform_0, window_bounds = array<i64: 1, 32, 32>}, {transform_indices = @transform_1, window_bounds = array<i64: 1, 32, 1>}, {transform_indices = @transform_2, window_bounds = array<i64: 1, 32, 1>}, {pipeline_mode = #tpu.pipeline_mode<synchronous>, transform_indices = @transform_3, window_bounds = array<i64: 2, 64>}, {pipeline_mode = #tpu.pipeline_mode<synchronous>, transform_indices = @transform_4, window_bounds = array<i64: 5, 32, 32>}, {pipeline_mode = #tpu.pipeline_mode<synchronous>, transform_indices = @transform_5, window_bounds = array<i64: 1, 32>}, {pipeline_mode = #tpu.pipeline_mode<synchronous>, transform_indices = @transform_6, window_bounds = array<i64: 5, 32, 64>}, {pipeline_mode = #tpu.pipeline_mode<synchronous>, transform_indices = @transform_7, window_bounds = array<i64: 1, 64>}, {pipeline_mode = #tpu.pipeline_mode<synchronous>, transform_indices = @transform_8, window_bounds = array<i64: 1, 32, 64>}, {transform_indices = @transform_9, window_bounds = array<i64: 1, 32, 64>}, {transform_indices = @transform_10, window_bounds = array<i64: 1, 32, 64>}]} {
    %c0 = arith.constant 0 : index
    %c0_0 = arith.constant 0 : index
    %c0_1 = arith.constant 0 : index
    %0 = vector.load %arg1[%c0, %c0_0, %c0_1] : memref<1x32x32xf32, #tpu.memory_space<vmem>>, vector<1x32x32xf32>
    %1 = vector.shape_cast %0 : vector<1x32x32xf32> to vector<32x32xf32>
    %cst = arith.constant 0.000000e+00 : f32
    %2 = vector.broadcast %cst : f32 to vector<32x32xf32>
    %3 = arith.cmpf oge, %1, %2 : vector<32x32xf32>
    %cst_2 = arith.constant 2.000000e-01 : f32
    %4 = vector.broadcast %cst_2 : f32 to vector<32x32xf32>
    %5 = arith.mulf %4, %1 : vector<32x32xf32>
    %6 = arith.select %3, %1, %5 : vector<32x32xi1>, vector<32x32xf32>
    %c0_3 = arith.constant 0 : index
    %c0_4 = arith.constant 0 : index
    %c0_5 = arith.constant 0 : index
    %7 = vector.load %arg5[%c0_3, %c0_4, %c0_5] : memref<5x32x32xbf16, #tpu.memory_space<vmem>>, vector<5x32x32xbf16>
    %c0_6 = arith.constant 0 : index
    %c0_7 = arith.constant 0 : index
    %8 = vector.load %arg6[%c0_6, %c0_7] : memref<1x32xf32, #tpu.memory_space<vmem>>, vector<1x32xf32>
    %9 = arith.truncf %6 : vector<32x32xf32> to vector<32x32xbf16>
    %cst_8 = arith.constant 0.000000e+00 : f32
    %10 = vector.broadcast %cst_8 : f32 to vector<32x32xf32>
    %11 = vector.extract_strided_slice %7 {offsets = [0, 0, 0], sizes = [1, 32, 32], strides = [1, 1, 1]} : vector<5x32x32xbf16> to vector<1x32x32xbf16>
    %12 = vector.shape_cast %11 : vector<1x32x32xbf16> to vector<32x32xbf16>
    %cst_9 = arith.constant dense<0.000000e+00> : vector<32x32xf32>
    %13 = tpu.matmul %9, %12, %cst_9 {dimension_numbers = #tpu.dot_dimension_numbers<[1], [0], [0], [1], [0, 0, 1, 1], [], []>} : vector<32x32xbf16>, vector<32x32xbf16>, vector<32x32xf32> -> vector<32x32xf32>
    %c2_i32 = arith.constant 2 : i32
    %14 = tpu.dynamic_rotate %13 by %c2_i32 dim 0 : vector<32x32xf32>, i32 -> vector<32x32xf32>
    %15 = tpu.iota {dimensions = array<i32: 0>} : vector<32x32xi32>
    %c-2_i32 = arith.constant -2 : i32
    %16 = vector.broadcast %c-2_i32 : i32 to vector<32x32xi32>
    %17 = arith.addi %15, %16 : vector<32x32xi32>
    %c0_i32 = arith.constant 0 : i32
    %18 = vector.broadcast %c0_i32 : i32 to vector<32x32xi32>
    %19 = arith.cmpi sge, %17, %18 : vector<32x32xi32>
    %c-2_i32_10 = arith.constant -2 : i32
    %20 = vector.broadcast %c-2_i32_10 : i32 to vector<32x32xi32>
    %21 = arith.addi %15, %20 : vector<32x32xi32>
    %c32_i32 = arith.constant 32 : i32
    %22 = vector.broadcast %c32_i32 : i32 to vector<32x32xi32>
    %23 = arith.cmpi slt, %21, %22 : vector<32x32xi32>
    %24 = arith.andi %19, %23 : vector<32x32xi1>
    %cst_11 = arith.constant 0.000000e+00 : f32
    %25 = vector.broadcast %cst_11 : f32 to vector<32x32xf32>
    %26 = arith.select %24, %14, %25 : vector<32x32xi1>, vector<32x32xf32>
    %27 = arith.addf %10, %26 : vector<32x32xf32>
    %28 = vector.extract_strided_slice %7 {offsets = [1, 0, 0], sizes = [1, 32, 32], strides = [1, 1, 1]} : vector<5x32x32xbf16> to vector<1x32x32xbf16>
    %29 = vector.shape_cast %28 : vector<1x32x32xbf16> to vector<32x32xbf16>
    %cst_12 = arith.constant dense<0.000000e+00> : vector<32x32xf32>
    %30 = tpu.matmul %9, %29, %cst_12 {dimension_numbers = #tpu.dot_dimension_numbers<[1], [0], [0], [1], [0, 0, 1, 1], [], []>} : vector<32x32xbf16>, vector<32x32xbf16>, vector<32x32xf32> -> vector<32x32xf32>
    %c1_i32 = arith.constant 1 : i32
    %31 = tpu.dynamic_rotate %30 by %c1_i32 dim 0 : vector<32x32xf32>, i32 -> vector<32x32xf32>
    %32 = tpu.iota {dimensions = array<i32: 0>} : vector<32x32xi32>
    %c-1_i32 = arith.constant -1 : i32
    %33 = vector.broadcast %c-1_i32 : i32 to vector<32x32xi32>
    %34 = arith.addi %32, %33 : vector<32x32xi32>
    %c0_i32_13 = arith.constant 0 : i32
    %35 = vector.broadcast %c0_i32_13 : i32 to vector<32x32xi32>
    %36 = arith.cmpi sge, %34, %35 : vector<32x32xi32>
    %c-1_i32_14 = arith.constant -1 : i32
    %37 = vector.broadcast %c-1_i32_14 : i32 to vector<32x32xi32>
    %38 = arith.addi %32, %37 : vector<32x32xi32>
    %c32_i32_15 = arith.constant 32 : i32
    %39 = vector.broadcast %c32_i32_15 : i32 to vector<32x32xi32>
    %40 = arith.cmpi slt, %38, %39 : vector<32x32xi32>
    %41 = arith.andi %36, %40 : vector<32x32xi1>
    %cst_16 = arith.constant 0.000000e+00 : f32
    %42 = vector.broadcast %cst_16 : f32 to vector<32x32xf32>
    %43 = arith.select %41, %31, %42 : vector<32x32xi1>, vector<32x32xf32>
    %44 = arith.addf %27, %43 : vector<32x32xf32>
    %45 = vector.extract_strided_slice %7 {offsets = [2, 0, 0], sizes = [1, 32, 32], strides = [1, 1, 1]} : vector<5x32x32xbf16> to vector<1x32x32xbf16>
    %46 = vector.shape_cast %45 : vector<1x32x32xbf16> to vector<32x32xbf16>
    %cst_17 = arith.constant dense<0.000000e+00> : vector<32x32xf32>
    %47 = tpu.matmul %9, %46, %cst_17 {dimension_numbers = #tpu.dot_dimension_numbers<[1], [0], [0], [1], [0, 0, 1, 1], [], []>} : vector<32x32xbf16>, vector<32x32xbf16>, vector<32x32xf32> -> vector<32x32xf32>
    %48 = arith.addf %44, %47 : vector<32x32xf32>
    %49 = vector.extract_strided_slice %7 {offsets = [3, 0, 0], sizes = [1, 32, 32], strides = [1, 1, 1]} : vector<5x32x32xbf16> to vector<1x32x32xbf16>
    %50 = vector.shape_cast %49 : vector<1x32x32xbf16> to vector<32x32xbf16>
    %cst_18 = arith.constant dense<0.000000e+00> : vector<32x32xf32>
    %51 = tpu.matmul %9, %50, %cst_18 {dimension_numbers = #tpu.dot_dimension_numbers<[1], [0], [0], [1], [0, 0, 1, 1], [], []>} : vector<32x32xbf16>, vector<32x32xbf16>, vector<32x32xf32> -> vector<32x32xf32>
    %c31_i32 = arith.constant 31 : i32
    %52 = tpu.dynamic_rotate %51 by %c31_i32 dim 0 : vector<32x32xf32>, i32 -> vector<32x32xf32>
    %53 = tpu.iota {dimensions = array<i32: 0>} : vector<32x32xi32>
    %c1_i32_19 = arith.constant 1 : i32
    %54 = vector.broadcast %c1_i32_19 : i32 to vector<32x32xi32>
    %55 = arith.addi %53, %54 : vector<32x32xi32>
    %c0_i32_20 = arith.constant 0 : i32
    %56 = vector.broadcast %c0_i32_20 : i32 to vector<32x32xi32>
    %57 = arith.cmpi sge, %55, %56 : vector<32x32xi32>
    %c1_i32_21 = arith.constant 1 : i32
    %58 = vector.broadcast %c1_i32_21 : i32 to vector<32x32xi32>
    %59 = arith.addi %53, %58 : vector<32x32xi32>
    %c32_i32_22 = arith.constant 32 : i32
    %60 = vector.broadcast %c32_i32_22 : i32 to vector<32x32xi32>
    %61 = arith.cmpi slt, %59, %60 : vector<32x32xi32>
    %62 = arith.andi %57, %61 : vector<32x32xi1>
    %cst_23 = arith.constant 0.000000e+00 : f32
    %63 = vector.broadcast %cst_23 : f32 to vector<32x32xf32>
    %64 = arith.select %62, %52, %63 : vector<32x32xi1>, vector<32x32xf32>
    %65 = arith.addf %48, %64 : vector<32x32xf32>
    %66 = vector.extract_strided_slice %7 {offsets = [4, 0, 0], sizes = [1, 32, 32], strides = [1, 1, 1]} : vector<5x32x32xbf16> to vector<1x32x32xbf16>
    %67 = vector.shape_cast %66 : vector<1x32x32xbf16> to vector<32x32xbf16>
    %cst_24 = arith.constant dense<0.000000e+00> : vector<32x32xf32>
    %68 = tpu.matmul %9, %67, %cst_24 {dimension_numbers = #tpu.dot_dimension_numbers<[1], [0], [0], [1], [0, 0, 1, 1], [], []>} : vector<32x32xbf16>, vector<32x32xbf16>, vector<32x32xf32> -> vector<32x32xf32>
    %c30_i32 = arith.constant 30 : i32
    %69 = tpu.dynamic_rotate %68 by %c30_i32 dim 0 : vector<32x32xf32>, i32 -> vector<32x32xf32>
    %70 = tpu.iota {dimensions = array<i32: 0>} : vector<32x32xi32>
    %c2_i32_25 = arith.constant 2 : i32
    %71 = vector.broadcast %c2_i32_25 : i32 to vector<32x32xi32>
    %72 = arith.addi %70, %71 : vector<32x32xi32>
    %c0_i32_26 = arith.constant 0 : i32
    %73 = vector.broadcast %c0_i32_26 : i32 to vector<32x32xi32>
    %74 = arith.cmpi sge, %72, %73 : vector<32x32xi32>
    %c2_i32_27 = arith.constant 2 : i32
    %75 = vector.broadcast %c2_i32_27 : i32 to vector<32x32xi32>
    %76 = arith.addi %70, %75 : vector<32x32xi32>
    %c32_i32_28 = arith.constant 32 : i32
    %77 = vector.broadcast %c32_i32_28 : i32 to vector<32x32xi32>
    %78 = arith.cmpi slt, %76, %77 : vector<32x32xi32>
    %79 = arith.andi %74, %78 : vector<32x32xi1>
    %cst_29 = arith.constant 0.000000e+00 : f32
    %80 = vector.broadcast %cst_29 : f32 to vector<32x32xf32>
    %81 = arith.select %79, %69, %80 : vector<32x32xi1>, vector<32x32xf32>
    %82 = arith.addf %65, %81 : vector<32x32xf32>
    %83 = vector.broadcast %8 : vector<1x32xf32> to vector<32x32xf32>
    %84 = arith.addf %82, %83 : vector<32x32xf32>
    %cst_30 = arith.constant 0.000000e+00 : f32
    %85 = vector.broadcast %cst_30 : f32 to vector<32x32xf32>
    %86 = arith.cmpf oge, %84, %85 : vector<32x32xf32>
    %cst_31 = arith.constant 2.000000e-01 : f32
    %87 = vector.broadcast %cst_31 : f32 to vector<32x32xf32>
    %88 = arith.mulf %87, %84 : vector<32x32xf32>
    %89 = arith.select %86, %84, %88 : vector<32x32xi1>, vector<32x32xf32>
    %c0_32 = arith.constant 0 : index
    %c0_33 = arith.constant 0 : index
    %c0_34 = arith.constant 0 : index
    %90 = vector.load %arg7[%c0_32, %c0_33, %c0_34] : memref<5x32x64xbf16, #tpu.memory_space<vmem>>, vector<5x32x64xbf16>
    %c0_35 = arith.constant 0 : index
    %c0_36 = arith.constant 0 : index
    %91 = vector.load %arg8[%c0_35, %c0_36] : memref<1x64xf32, #tpu.memory_space<vmem>>, vector<1x64xf32>
    %92 = arith.truncf %89 : vector<32x32xf32> to vector<32x32xbf16>
    %cst_37 = arith.constant 0.000000e+00 : f32
    %93 = vector.broadcast %cst_37 : f32 to vector<32x64xf32>
    %94 = vector.extract_strided_slice %90 {offsets = [0, 0, 0], sizes = [1, 32, 64], strides = [1, 1, 1]} : vector<5x32x64xbf16> to vector<1x32x64xbf16>
    %95 = vector.shape_cast %94 : vector<1x32x64xbf16> to vector<32x64xbf16>
    %cst_38 = arith.constant dense<0.000000e+00> : vector<32x64xf32>
    %96 = tpu.matmul %92, %95, %cst_38 {dimension_numbers = #tpu.dot_dimension_numbers<[1], [0], [0], [1], [0, 0, 1, 1], [], []>} : vector<32x32xbf16>, vector<32x64xbf16>, vector<32x64xf32> -> vector<32x64xf32>
    %c2_i32_39 = arith.constant 2 : i32
    %97 = tpu.dynamic_rotate %96 by %c2_i32_39 dim 0 : vector<32x64xf32>, i32 -> vector<32x64xf32>
    %98 = tpu.iota {dimensions = array<i32: 0>} : vector<32x64xi32>
    %c-2_i32_40 = arith.constant -2 : i32
    %99 = vector.broadcast %c-2_i32_40 : i32 to vector<32x64xi32>
    %100 = arith.addi %98, %99 : vector<32x64xi32>
    %c0_i32_41 = arith.constant 0 : i32
    %101 = vector.broadcast %c0_i32_41 : i32 to vector<32x64xi32>
    %102 = arith.cmpi sge, %100, %101 : vector<32x64xi32>
    %c-2_i32_42 = arith.constant -2 : i32
    %103 = vector.broadcast %c-2_i32_42 : i32 to vector<32x64xi32>
    %104 = arith.addi %98, %103 : vector<32x64xi32>
    %c32_i32_43 = arith.constant 32 : i32
    %105 = vector.broadcast %c32_i32_43 : i32 to vector<32x64xi32>
    %106 = arith.cmpi slt, %104, %105 : vector<32x64xi32>
    %107 = arith.andi %102, %106 : vector<32x64xi1>
    %cst_44 = arith.constant 0.000000e+00 : f32
    %108 = vector.broadcast %cst_44 : f32 to vector<32x64xf32>
    %109 = arith.select %107, %97, %108 : vector<32x64xi1>, vector<32x64xf32>
    %110 = arith.addf %93, %109 : vector<32x64xf32>
    %111 = vector.extract_strided_slice %90 {offsets = [1, 0, 0], sizes = [1, 32, 64], strides = [1, 1, 1]} : vector<5x32x64xbf16> to vector<1x32x64xbf16>
    %112 = vector.shape_cast %111 : vector<1x32x64xbf16> to vector<32x64xbf16>
    %cst_45 = arith.constant dense<0.000000e+00> : vector<32x64xf32>
    %113 = tpu.matmul %92, %112, %cst_45 {dimension_numbers = #tpu.dot_dimension_numbers<[1], [0], [0], [1], [0, 0, 1, 1], [], []>} : vector<32x32xbf16>, vector<32x64xbf16>, vector<32x64xf32> -> vector<32x64xf32>
    %c1_i32_46 = arith.constant 1 : i32
    %114 = tpu.dynamic_rotate %113 by %c1_i32_46 dim 0 : vector<32x64xf32>, i32 -> vector<32x64xf32>
    %115 = tpu.iota {dimensions = array<i32: 0>} : vector<32x64xi32>
    %c-1_i32_47 = arith.constant -1 : i32
    %116 = vector.broadcast %c-1_i32_47 : i32 to vector<32x64xi32>
    %117 = arith.addi %115, %116 : vector<32x64xi32>
    %c0_i32_48 = arith.constant 0 : i32
    %118 = vector.broadcast %c0_i32_48 : i32 to vector<32x64xi32>
    %119 = arith.cmpi sge, %117, %118 : vector<32x64xi32>
    %c-1_i32_49 = arith.constant -1 : i32
    %120 = vector.broadcast %c-1_i32_49 : i32 to vector<32x64xi32>
    %121 = arith.addi %115, %120 : vector<32x64xi32>
    %c32_i32_50 = arith.constant 32 : i32
    %122 = vector.broadcast %c32_i32_50 : i32 to vector<32x64xi32>
    %123 = arith.cmpi slt, %121, %122 : vector<32x64xi32>
    %124 = arith.andi %119, %123 : vector<32x64xi1>
    %cst_51 = arith.constant 0.000000e+00 : f32
    %125 = vector.broadcast %cst_51 : f32 to vector<32x64xf32>
    %126 = arith.select %124, %114, %125 : vector<32x64xi1>, vector<32x64xf32>
    %127 = arith.addf %110, %126 : vector<32x64xf32>
    %128 = vector.extract_strided_slice %90 {offsets = [2, 0, 0], sizes = [1, 32, 64], strides = [1, 1, 1]} : vector<5x32x64xbf16> to vector<1x32x64xbf16>
    %129 = vector.shape_cast %128 : vector<1x32x64xbf16> to vector<32x64xbf16>
    %cst_52 = arith.constant dense<0.000000e+00> : vector<32x64xf32>
    %130 = tpu.matmul %92, %129, %cst_52 {dimension_numbers = #tpu.dot_dimension_numbers<[1], [0], [0], [1], [0, 0, 1, 1], [], []>} : vector<32x32xbf16>, vector<32x64xbf16>, vector<32x64xf32> -> vector<32x64xf32>
    %131 = arith.addf %127, %130 : vector<32x64xf32>
    %132 = vector.extract_strided_slice %90 {offsets = [3, 0, 0], sizes = [1, 32, 64], strides = [1, 1, 1]} : vector<5x32x64xbf16> to vector<1x32x64xbf16>
    %133 = vector.shape_cast %132 : vector<1x32x64xbf16> to vector<32x64xbf16>
    %cst_53 = arith.constant dense<0.000000e+00> : vector<32x64xf32>
    %134 = tpu.matmul %92, %133, %cst_53 {dimension_numbers = #tpu.dot_dimension_numbers<[1], [0], [0], [1], [0, 0, 1, 1], [], []>} : vector<32x32xbf16>, vector<32x64xbf16>, vector<32x64xf32> -> vector<32x64xf32>
    %c31_i32_54 = arith.constant 31 : i32
    %135 = tpu.dynamic_rotate %134 by %c31_i32_54 dim 0 : vector<32x64xf32>, i32 -> vector<32x64xf32>
    %136 = tpu.iota {dimensions = array<i32: 0>} : vector<32x64xi32>
    %c1_i32_55 = arith.constant 1 : i32
    %137 = vector.broadcast %c1_i32_55 : i32 to vector<32x64xi32>
    %138 = arith.addi %136, %137 : vector<32x64xi32>
    %c0_i32_56 = arith.constant 0 : i32
    %139 = vector.broadcast %c0_i32_56 : i32 to vector<32x64xi32>
    %140 = arith.cmpi sge, %138, %139 : vector<32x64xi32>
    %c1_i32_57 = arith.constant 1 : i32
    %141 = vector.broadcast %c1_i32_57 : i32 to vector<32x64xi32>
    %142 = arith.addi %136, %141 : vector<32x64xi32>
    %c32_i32_58 = arith.constant 32 : i32
    %143 = vector.broadcast %c32_i32_58 : i32 to vector<32x64xi32>
    %144 = arith.cmpi slt, %142, %143 : vector<32x64xi32>
    %145 = arith.andi %140, %144 : vector<32x64xi1>
    %cst_59 = arith.constant 0.000000e+00 : f32
    %146 = vector.broadcast %cst_59 : f32 to vector<32x64xf32>
    %147 = arith.select %145, %135, %146 : vector<32x64xi1>, vector<32x64xf32>
    %148 = arith.addf %131, %147 : vector<32x64xf32>
    %149 = vector.extract_strided_slice %90 {offsets = [4, 0, 0], sizes = [1, 32, 64], strides = [1, 1, 1]} : vector<5x32x64xbf16> to vector<1x32x64xbf16>
    %150 = vector.shape_cast %149 : vector<1x32x64xbf16> to vector<32x64xbf16>
    %cst_60 = arith.constant dense<0.000000e+00> : vector<32x64xf32>
    %151 = tpu.matmul %92, %150, %cst_60 {dimension_numbers = #tpu.dot_dimension_numbers<[1], [0], [0], [1], [0, 0, 1, 1], [], []>} : vector<32x32xbf16>, vector<32x64xbf16>, vector<32x64xf32> -> vector<32x64xf32>
    %c30_i32_61 = arith.constant 30 : i32
    %152 = tpu.dynamic_rotate %151 by %c30_i32_61 dim 0 : vector<32x64xf32>, i32 -> vector<32x64xf32>
    %153 = tpu.iota {dimensions = array<i32: 0>} : vector<32x64xi32>
    %c2_i32_62 = arith.constant 2 : i32
    %154 = vector.broadcast %c2_i32_62 : i32 to vector<32x64xi32>
    %155 = arith.addi %153, %154 : vector<32x64xi32>
    %c0_i32_63 = arith.constant 0 : i32
    %156 = vector.broadcast %c0_i32_63 : i32 to vector<32x64xi32>
    %157 = arith.cmpi sge, %155, %156 : vector<32x64xi32>
    %c2_i32_64 = arith.constant 2 : i32
    %158 = vector.broadcast %c2_i32_64 : i32 to vector<32x64xi32>
    %159 = arith.addi %153, %158 : vector<32x64xi32>
    %c32_i32_65 = arith.constant 32 : i32
    %160 = vector.broadcast %c32_i32_65 : i32 to vector<32x64xi32>
    %161 = arith.cmpi slt, %159, %160 : vector<32x64xi32>
    %162 = arith.andi %157, %161 : vector<32x64xi1>
    %cst_66 = arith.constant 0.000000e+00 : f32
    %163 = vector.broadcast %cst_66 : f32 to vector<32x64xf32>
    %164 = arith.select %162, %152, %163 : vector<32x64xi1>, vector<32x64xf32>
    %165 = arith.addf %148, %164 : vector<32x64xf32>
    %166 = vector.broadcast %91 : vector<1x64xf32> to vector<32x64xf32>
    %167 = arith.addf %165, %166 : vector<32x64xf32>
    %168 = arith.truncf %1 : vector<32x32xf32> to vector<32x32xbf16>
    %c0_67 = arith.constant 0 : index
    %c0_68 = arith.constant 0 : index
    %c0_69 = arith.constant 0 : index
    %169 = vector.load %arg9[%c0_67, %c0_68, %c0_69] : memref<1x32x64xbf16, #tpu.memory_space<vmem>>, vector<1x32x64xbf16>
    %170 = vector.shape_cast %169 : vector<1x32x64xbf16> to vector<32x64xbf16>
    %cst_70 = arith.constant dense<0.000000e+00> : vector<32x64xf32>
    %171 = tpu.matmul %168, %170, %cst_70 {dimension_numbers = #tpu.dot_dimension_numbers<[1], [0], [0], [1], [0, 0, 1, 1], [], []>} : vector<32x32xbf16>, vector<32x64xbf16>, vector<32x64xf32> -> vector<32x64xf32>
    %172 = arith.addf %171, %167 : vector<32x64xf32>
    %cst_71 = arith.constant 0.707106769 : f32
    %173 = vector.broadcast %cst_71 : f32 to vector<32x64xf32>
    %174 = arith.mulf %172, %173 : vector<32x64xf32>
    %c0_72 = arith.constant 0 : index
    %c0_73 = arith.constant 0 : index
    %c0_74 = arith.constant 0 : index
    %175 = vector.load %arg2[%c0_72, %c0_73, %c0_74] : memref<1x32x1xf32, #tpu.memory_space<vmem>>, vector<1x32x1xf32>
    %176 = vector.shape_cast %175 : vector<1x32x1xf32> to vector<32x1xf32>
    %177 = vector.broadcast %176 : vector<32x1xf32> to vector<32x64xf32>
    %178 = arith.mulf %174, %177 : vector<32x64xf32>
    %c0_75 = arith.constant 0 : index
    %c0_76 = arith.constant 0 : index
    %c0_77 = arith.constant 0 : index
    %179 = vector.load %arg10[%c0_75, %c0_76, %c0_77] : memref<1x32x64xf32, #tpu.memory_space<vmem>>, vector<1x32x64xf32>
    %180 = vector.shape_cast %179 : vector<1x32x64xf32> to vector<32x64xf32>
    %181 = vector.shape_cast %178 : vector<32x64xf32> to vector<1x32x64xf32>
    tpu.vector_store %arg10[%c0_75, %c0_76, %c0_77], %181 {strides = array<i32>} : memref<1x32x64xf32, #tpu.memory_space<vmem>>, vector<1x32x64xf32>,
    %c0_78 = arith.constant 0 : index
    %c0_79 = arith.constant 0 : index
    %c0_80 = arith.constant 0 : index
    %182 = vector.load %arg3[%c0_78, %c0_79, %c0_80] : memref<1x32x1xf32, #tpu.memory_space<vmem>>, vector<1x32x1xf32>
    %183 = vector.shape_cast %182 : vector<1x32x1xf32> to vector<32x1xf32>
    %c1 = arith.constant 1 : index
    %c0_81 = arith.constant 0 : index
    %184 = vector.load %arg4[%c1, %c0_81] : memref<2x64xf32, #tpu.memory_space<vmem>>, vector<1x64xf32>
    %185 = vector.broadcast %183 : vector<32x1xf32> to vector<32x64xf32>
    %186 = vector.broadcast %184 : vector<1x64xf32> to vector<32x64xf32>
    %187 = arith.mulf %185, %186 : vector<32x64xf32>
    %cst_82 = arith.constant 1.000000e+00 : f32
    %188 = vector.broadcast %cst_82 : f32 to vector<32x1xf32>
    %189 = arith.subf %188, %183 : vector<32x1xf32>
    %c0_83 = arith.constant 0 : index
    %c0_84 = arith.constant 0 : index
    %190 = vector.load %arg4[%c0_83, %c0_84] : memref<2x64xf32, #tpu.memory_space<vmem>>, vector<1x64xf32>
    %191 = vector.broadcast %189 : vector<32x1xf32> to vector<32x64xf32>
    %192 = vector.broadcast %190 : vector<1x64xf32> to vector<32x64xf32>
    %193 = arith.mulf %191, %192 : vector<32x64xf32>
    %194 = arith.addf %187, %193 : vector<32x64xf32>
    %195 = arith.addf %178, %194 : vector<32x64xf32>
    %c0_85 = arith.constant 0 : index
    %c0_86 = arith.constant 0 : index
    %c0_87 = arith.constant 0 : index
    %196 = vector.load %arg11[%c0_85, %c0_86, %c0_87] : memref<1x32x64xf32, #tpu.memory_space<vmem>>, vector<1x32x64xf32>
    %197 = vector.shape_cast %196 : vector<1x32x64xf32> to vector<32x64xf32>
    %198 = vector.shape_cast %195 : vector<32x64xf32> to vector<1x32x64xf32>
    tpu.vector_store %arg11[%c0_85, %c0_86, %c0_87], %198 {strides = array<i32>} : memref<1x32x64xf32, #tpu.memory_space<vmem>>, vector<1x32x64xf32>,
    return
  }
  func.func @transform_0(%arg0: i32) -> (i32, i32, i32) {
    %c0_i32 = arith.constant 0 : i32
    %c0_i32_0 = arith.constant 0 : i32
    %c0_i32_1 = arith.constant 0 : i32
    return %arg0, %c0_i32, %c0_i32_0 : i32, i32, i32
  }
  func.func @transform_1(%arg0: i32) -> (i32, i32, i32) {
    %c0_i32 = arith.constant 0 : i32
    %c0_i32_0 = arith.constant 0 : i32
    %c0_i32_1 = arith.constant 0 : i32
    return %arg0, %c0_i32, %c0_i32_0 : i32, i32, i32
  }
  func.func @transform_2(%arg0: i32) -> (i32, i32, i32) {
    %c0_i32 = arith.constant 0 : i32
    %c0_i32_0 = arith.constant 0 : i32
    %c0_i32_1 = arith.constant 0 : i32
    return %arg0, %c0_i32, %c0_i32_0 : i32, i32, i32
  }
  func.func @transform_3(%arg0: i32) -> (i32, i32) {
    %c0_i32 = arith.constant 0 : i32
    %c0_i32_0 = arith.constant 0 : i32
    %c0_i32_1 = arith.constant 0 : i32
    return %c0_i32, %c0_i32_0 : i32, i32
  }
  func.func @transform_4(%arg0: i32) -> (i32, i32, i32) {
    %c0_i32 = arith.constant 0 : i32
    %c0_i32_0 = arith.constant 0 : i32
    %c0_i32_1 = arith.constant 0 : i32
    %c0_i32_2 = arith.constant 0 : i32
    return %c0_i32, %c0_i32_0, %c0_i32_1 : i32, i32, i32
  }
  func.func @transform_5(%arg0: i32) -> (i32, i32) {
    %c0_i32 = arith.constant 0 : i32
    %c0_i32_0 = arith.constant 0 : i32
    %c0_i32_1 = arith.constant 0 : i32
    return %c0_i32, %c0_i32_0 : i32, i32
  }
  func.func @transform_6(%arg0: i32) -> (i32, i32, i32) {
    %c0_i32 = arith.constant 0 : i32
    %c0_i32_0 = arith.constant 0 : i32
    %c0_i32_1 = arith.constant 0 : i32
    %c0_i32_2 = arith.constant 0 : i32
    return %c0_i32, %c0_i32_0, %c0_i32_1 : i32, i32, i32
  }
  func.func @transform_7(%arg0: i32) -> (i32, i32) {
    %c0_i32 = arith.constant 0 : i32
    %c0_i32_0 = arith.constant 0 : i32
    %c0_i32_1 = arith.constant 0 : i32
    return %c0_i32, %c0_i32_0 : i32, i32
  }
  func.func @transform_8(%arg0: i32) -> (i32, i32, i32) {
    %c0_i32 = arith.constant 0 : i32
    %c0_i32_0 = arith.constant 0 : i32
    %c0_i32_1 = arith.constant 0 : i32
    %c0_i32_2 = arith.constant 0 : i32
    return %c0_i32, %c0_i32_0, %c0_i32_1 : i32, i32, i32
  }
  func.func @transform_9(%arg0: i32) -> (i32, i32, i32) {
    %c0_i32 = arith.constant 0 : i32
    %c0_i32_0 = arith.constant 0 : i32
    %c0_i32_1 = arith.constant 0 : i32
    return %arg0, %c0_i32, %c0_i32_0 : i32, i32, i32
  }
  func.func @transform_10(%arg0: i32) -> (i32, i32, i32) {
    %c0_i32 = arith.constant 0 : i32
    %c0_i32_0 = arith.constant 0 : i32
    %c0_i32_1 = arith.constant 0 : i32
    return %arg0, %c0_i32, %c0_i32_0 : i32, i32, i32
  }
}

module attributes {stable_mosaic.version = 11 : i64} {
  func.func @_decoder_kernel(%arg0: i32, %arg1: i32, %arg2: memref<1x32x64xf32, #tpu.memory_space<vmem>>, %arg3: memref<1x32x1xf32, #tpu.memory_space<vmem>>, %arg4: memref<1x32x1xf32, #tpu.memory_space<vmem>>, %arg5: memref<1x1x32xf32, #tpu.memory_space<vmem>>, %arg6: memref<1x1x16xf32, #tpu.memory_space<vmem>>, %arg7: memref<1x16x64xf32, #tpu.memory_space<vmem>>, %arg8: memref<3x64xf32, #tpu.memory_space<vmem>>, %arg9: memref<1x64xf32, #tpu.memory_space<vmem>>, %arg10: memref<3x64x64xbf16, #tpu.memory_space<vmem>>, %arg11: memref<1x64xf32, #tpu.memory_space<vmem>>, %arg12: memref<1x3x64xf32, #tpu.memory_space<vmem>>, %arg13: memref<1x3x64xf32, #tpu.memory_space<vmem>>, %arg14: memref<1x64x96xbf16, #tpu.memory_space<vmem>>, %arg15: memref<1x32x64xbf16, #tpu.memory_space<vmem>>, %arg16: memref<1x64x32xbf16, #tpu.memory_space<vmem>>, %arg17: memref<1x64x64xbf16, #tpu.memory_space<vmem>>, %arg18: memref<1x32x64xbf16, #tpu.memory_space<vmem>>, %arg19: memref<1x3x64x256xbf16, #tpu.memory_space<vmem>>, %arg20: memref<1x1x256xf32, #tpu.memory_space<vmem>>, %arg21: memref<1x3x256x64xbf16, #tpu.memory_space<vmem>>, %arg22: memref<1x1x64xf32, #tpu.memory_space<vmem>>, %arg23: memref<1x64xf32, #tpu.memory_space<vmem>>, %arg24: memref<1x1xf32, #tpu.memory_space<vmem>>, %arg25: memref<1x1x32xf32, #tpu.memory_space<vmem>>, %arg26: memref<32x64xf32, #tpu.memory_space<vmem>>) attributes {dimension_semantics = [#tpu.dimension_semantics<parallel>, #tpu.dimension_semantics<arbitrary>], iteration_bounds = array<i64: 2, 2>, scalar_prefetch = 0 : i64, scratch_operands = 1 : i64, tpu.core_type = #tpu.core_type<tc>, window_params = [{transform_indices = @transform_0, window_bounds = array<i64: 1, 32, 64>}, {transform_indices = @transform_1, window_bounds = array<i64: 1, 32, 1>}, {transform_indices = @transform_2, window_bounds = array<i64: 1, 32, 1>}, {transform_indices = @transform_3, window_bounds = array<i64: 1, 1, 32>}, {transform_indices = @transform_4, window_bounds = array<i64: 1, 1, 16>}, {transform_indices = @transform_5, window_bounds = array<i64: 1, 16, 64>}, {pipeline_mode = #tpu.pipeline_mode<synchronous>, transform_indices = @transform_6, window_bounds = array<i64: 3, 64>}, {pipeline_mode = #tpu.pipeline_mode<synchronous>, transform_indices = @transform_7, window_bounds = array<i64: 1, 64>}, {pipeline_mode = #tpu.pipeline_mode<synchronous>, transform_indices = @transform_8, window_bounds = array<i64: 3, 64, 64>}, {pipeline_mode = #tpu.pipeline_mode<synchronous>, transform_indices = @transform_9, window_bounds = array<i64: 1, 64>}, {transform_indices = @transform_10, window_bounds = array<i64: 1, 3, 64>}, {transform_indices = @transform_11, window_bounds = array<i64: 1, 3, 64>}, {transform_indices = @transform_12, window_bounds = array<i64: 1, 64, 96>}, {transform_indices = @transform_13, window_bounds = array<i64: 1, 32, 64>}, {transform_indices = @transform_14, window_bounds = array<i64: 1, 64, 32>}, {transform_indices = @transform_15, window_bounds = array<i64: 1, 64, 64>}, {transform_indices = @transform_16, window_bounds = array<i64: 1, 32, 64>}, {transform_indices = @transform_17, window_bounds = array<i64: 1, 3, 64, 256>}, {transform_indices = @transform_18, window_bounds = array<i64: 1, 1, 256>}, {transform_indices = @transform_19, window_bounds = array<i64: 1, 3, 256, 64>}, {transform_indices = @transform_20, window_bounds = array<i64: 1, 1, 64>}, {pipeline_mode = #tpu.pipeline_mode<synchronous>, transform_indices = @transform_21, window_bounds = array<i64: 1, 64>}, {pipeline_mode = #tpu.pipeline_mode<synchronous>, transform_indices = @transform_22, window_bounds = array<i64: 1, 1>}, {transform_indices = @transform_23, window_bounds = array<i64: 1, 1, 32>}]} {
    %c0 = arith.constant 0 : index
    %c0_0 = arith.constant 0 : index
    %c0_1 = arith.constant 0 : index
    %0 = vector.load %arg4[%c0, %c0_0, %c0_1] : memref<1x32x1xf32, #tpu.memory_space<vmem>>, vector<1x32x1xf32>
    %1 = vector.shape_cast %0 : vector<1x32x1xf32> to vector<32x1xf32>
    %c0_i32 = arith.constant 0 : i32
    %2 = arith.cmpi eq, %arg1, %c0_i32 : i32
    %3 = arith.extui %2 : i1 to i32
    %c0_i32_2 = arith.constant 0 : i32
    %4 = arith.cmpi ne, %3, %c0_i32_2 : i32
    scf.if %4 {
      %c0_137 = arith.constant 0 : index
      %c0_138 = arith.constant 0 : index
      %c0_139 = arith.constant 0 : index
      %330 = vector.load %arg2[%c0_137, %c0_138, %c0_139] : memref<1x32x64xf32, #tpu.memory_space<vmem>>, vector<1x32x64xf32>
      %331 = vector.shape_cast %330 : vector<1x32x64xf32> to vector<32x64xf32>
      %c0_140 = arith.constant 0 : index
      %c0_141 = arith.constant 0 : index
      %c0_142 = arith.constant 0 : index
      %332 = vector.load %arg3[%c0_140, %c0_141, %c0_142] : memref<1x32x1xf32, #tpu.memory_space<vmem>>, vector<1x32x1xf32>
      %333 = vector.shape_cast %332 : vector<1x32x1xf32> to vector<32x1xf32>
      %c0_143 = arith.constant 0 : index
      %c0_144 = arith.constant 0 : index
      %334 = vector.load %arg8[%c0_143, %c0_144] : memref<3x64xf32, #tpu.memory_space<vmem>>, vector<3x64xf32>
      %c0_145 = arith.constant 0 : index
      %c0_146 = arith.constant 0 : index
      %335 = vector.load %arg9[%c0_145, %c0_146] : memref<1x64xf32, #tpu.memory_space<vmem>>, vector<1x64xf32>
      %cst_147 = arith.constant 0.000000e+00 : f32
      %336 = vector.broadcast %cst_147 : f32 to vector<32x64xf32>
      %337 = vector.extract_strided_slice %334 {offsets = [0, 0], sizes = [1, 64], strides = [1, 1]} : vector<3x64xf32> to vector<1x64xf32>
      %338 = vector.broadcast %333 : vector<32x1xf32> to vector<32x64xf32>
      %339 = vector.broadcast %337 : vector<1x64xf32> to vector<32x64xf32>
      %340 = arith.mulf %338, %339 : vector<32x64xf32>
      %c1_i32_148 = arith.constant 1 : i32
      %341 = tpu.dynamic_rotate %340 by %c1_i32_148 dim 0 : vector<32x64xf32>, i32 -> vector<32x64xf32>
      %342 = tpu.iota {dimensions = array<i32: 0>} : vector<32x64xi32>
      %c-1_i32_149 = arith.constant -1 : i32
      %343 = vector.broadcast %c-1_i32_149 : i32 to vector<32x64xi32>
      %344 = arith.addi %342, %343 : vector<32x64xi32>
      %c0_i32_150 = arith.constant 0 : i32
      %345 = vector.broadcast %c0_i32_150 : i32 to vector<32x64xi32>
      %346 = arith.cmpi sge, %344, %345 : vector<32x64xi32>
      %c-1_i32_151 = arith.constant -1 : i32
      %347 = vector.broadcast %c-1_i32_151 : i32 to vector<32x64xi32>
      %348 = arith.addi %342, %347 : vector<32x64xi32>
      %c32_i32_152 = arith.constant 32 : i32
      %349 = vector.broadcast %c32_i32_152 : i32 to vector<32x64xi32>
      %350 = arith.cmpi slt, %348, %349 : vector<32x64xi32>
      %351 = arith.andi %346, %350 : vector<32x64xi1>
      %cst_153 = arith.constant 0.000000e+00 : f32
      %352 = vector.broadcast %cst_153 : f32 to vector<32x64xf32>
      %353 = arith.select %351, %341, %352 : vector<32x64xi1>, vector<32x64xf32>
      %354 = arith.addf %336, %353 : vector<32x64xf32>
      %355 = vector.extract_strided_slice %334 {offsets = [1, 0], sizes = [1, 64], strides = [1, 1]} : vector<3x64xf32> to vector<1x64xf32>
      %356 = vector.broadcast %333 : vector<32x1xf32> to vector<32x64xf32>
      %357 = vector.broadcast %355 : vector<1x64xf32> to vector<32x64xf32>
      %358 = arith.mulf %356, %357 : vector<32x64xf32>
      %359 = arith.addf %354, %358 : vector<32x64xf32>
      %360 = vector.extract_strided_slice %334 {offsets = [2, 0], sizes = [1, 64], strides = [1, 1]} : vector<3x64xf32> to vector<1x64xf32>
      %361 = vector.broadcast %333 : vector<32x1xf32> to vector<32x64xf32>
      %362 = vector.broadcast %360 : vector<1x64xf32> to vector<32x64xf32>
      %363 = arith.mulf %361, %362 : vector<32x64xf32>
      %c31_i32_154 = arith.constant 31 : i32
      %364 = tpu.dynamic_rotate %363 by %c31_i32_154 dim 0 : vector<32x64xf32>, i32 -> vector<32x64xf32>
      %365 = tpu.iota {dimensions = array<i32: 0>} : vector<32x64xi32>
      %c1_i32_155 = arith.constant 1 : i32
      %366 = vector.broadcast %c1_i32_155 : i32 to vector<32x64xi32>
      %367 = arith.addi %365, %366 : vector<32x64xi32>
      %c0_i32_156 = arith.constant 0 : i32
      %368 = vector.broadcast %c0_i32_156 : i32 to vector<32x64xi32>
      %369 = arith.cmpi sge, %367, %368 : vector<32x64xi32>
      %c1_i32_157 = arith.constant 1 : i32
      %370 = vector.broadcast %c1_i32_157 : i32 to vector<32x64xi32>
      %371 = arith.addi %365, %370 : vector<32x64xi32>
      %c32_i32_158 = arith.constant 32 : i32
      %372 = vector.broadcast %c32_i32_158 : i32 to vector<32x64xi32>
      %373 = arith.cmpi slt, %371, %372 : vector<32x64xi32>
      %374 = arith.andi %369, %373 : vector<32x64xi1>
      %cst_159 = arith.constant 0.000000e+00 : f32
      %375 = vector.broadcast %cst_159 : f32 to vector<32x64xf32>
      %376 = arith.select %374, %364, %375 : vector<32x64xi1>, vector<32x64xf32>
      %377 = arith.addf %359, %376 : vector<32x64xf32>
      %378 = vector.broadcast %335 : vector<1x64xf32> to vector<32x64xf32>
      %379 = arith.addf %377, %378 : vector<32x64xf32>
      %380 = arith.addf %331, %379 : vector<32x64xf32>
      %c0_160 = arith.constant 0 : index
      %c0_161 = arith.constant 0 : index
      %c0_162 = arith.constant 0 : index
      %381 = vector.load %arg10[%c0_160, %c0_161, %c0_162] : memref<3x64x64xbf16, #tpu.memory_space<vmem>>, vector<3x64x64xbf16>
      %c0_163 = arith.constant 0 : index
      %c0_164 = arith.constant 0 : index
      %382 = vector.load %arg11[%c0_163, %c0_164] : memref<1x64xf32, #tpu.memory_space<vmem>>, vector<1x64xf32>
      %383 = arith.truncf %380 : vector<32x64xf32> to vector<32x64xbf16>
      %cst_165 = arith.constant 0.000000e+00 : f32
      %384 = vector.broadcast %cst_165 : f32 to vector<32x64xf32>
      %385 = vector.extract_strided_slice %381 {offsets = [0, 0, 0], sizes = [1, 64, 64], strides = [1, 1, 1]} : vector<3x64x64xbf16> to vector<1x64x64xbf16>
      %386 = vector.shape_cast %385 : vector<1x64x64xbf16> to vector<64x64xbf16>
      %cst_166 = arith.constant dense<0.000000e+00> : vector<32x64xf32>
      %387 = tpu.matmul %383, %386, %cst_166 {dimension_numbers = #tpu.dot_dimension_numbers<[1], [0], [0], [1], [0, 0, 1, 1], [], []>} : vector<32x64xbf16>, vector<64x64xbf16>, vector<32x64xf32> -> vector<32x64xf32>
      %c1_i32_167 = arith.constant 1 : i32
      %388 = tpu.dynamic_rotate %387 by %c1_i32_167 dim 0 : vector<32x64xf32>, i32 -> vector<32x64xf32>
      %389 = tpu.iota {dimensions = array<i32: 0>} : vector<32x64xi32>
      %c-1_i32_168 = arith.constant -1 : i32
      %390 = vector.broadcast %c-1_i32_168 : i32 to vector<32x64xi32>
      %391 = arith.addi %389, %390 : vector<32x64xi32>
      %c0_i32_169 = arith.constant 0 : i32
      %392 = vector.broadcast %c0_i32_169 : i32 to vector<32x64xi32>
      %393 = arith.cmpi sge, %391, %392 : vector<32x64xi32>
      %c-1_i32_170 = arith.constant -1 : i32
      %394 = vector.broadcast %c-1_i32_170 : i32 to vector<32x64xi32>
      %395 = arith.addi %389, %394 : vector<32x64xi32>
      %c32_i32_171 = arith.constant 32 : i32
      %396 = vector.broadcast %c32_i32_171 : i32 to vector<32x64xi32>
      %397 = arith.cmpi slt, %395, %396 : vector<32x64xi32>
      %398 = arith.andi %393, %397 : vector<32x64xi1>
      %cst_172 = arith.constant 0.000000e+00 : f32
      %399 = vector.broadcast %cst_172 : f32 to vector<32x64xf32>
      %400 = arith.select %398, %388, %399 : vector<32x64xi1>, vector<32x64xf32>
      %401 = arith.addf %384, %400 : vector<32x64xf32>
      %402 = vector.extract_strided_slice %381 {offsets = [1, 0, 0], sizes = [1, 64, 64], strides = [1, 1, 1]} : vector<3x64x64xbf16> to vector<1x64x64xbf16>
      %403 = vector.shape_cast %402 : vector<1x64x64xbf16> to vector<64x64xbf16>
      %cst_173 = arith.constant dense<0.000000e+00> : vector<32x64xf32>
      %404 = tpu.matmul %383, %403, %cst_173 {dimension_numbers = #tpu.dot_dimension_numbers<[1], [0], [0], [1], [0, 0, 1, 1], [], []>} : vector<32x64xbf16>, vector<64x64xbf16>, vector<32x64xf32> -> vector<32x64xf32>
      %405 = arith.addf %401, %404 : vector<32x64xf32>
      %406 = vector.extract_strided_slice %381 {offsets = [2, 0, 0], sizes = [1, 64, 64], strides = [1, 1, 1]} : vector<3x64x64xbf16> to vector<1x64x64xbf16>
      %407 = vector.shape_cast %406 : vector<1x64x64xbf16> to vector<64x64xbf16>
      %cst_174 = arith.constant dense<0.000000e+00> : vector<32x64xf32>
      %408 = tpu.matmul %383, %407, %cst_174 {dimension_numbers = #tpu.dot_dimension_numbers<[1], [0], [0], [1], [0, 0, 1, 1], [], []>} : vector<32x64xbf16>, vector<64x64xbf16>, vector<32x64xf32> -> vector<32x64xf32>
      %c31_i32_175 = arith.constant 31 : i32
      %409 = tpu.dynamic_rotate %408 by %c31_i32_175 dim 0 : vector<32x64xf32>, i32 -> vector<32x64xf32>
      %410 = tpu.iota {dimensions = array<i32: 0>} : vector<32x64xi32>
      %c1_i32_176 = arith.constant 1 : i32
      %411 = vector.broadcast %c1_i32_176 : i32 to vector<32x64xi32>
      %412 = arith.addi %410, %411 : vector<32x64xi32>
      %c0_i32_177 = arith.constant 0 : i32
      %413 = vector.broadcast %c0_i32_177 : i32 to vector<32x64xi32>
      %414 = arith.cmpi sge, %412, %413 : vector<32x64xi32>
      %c1_i32_178 = arith.constant 1 : i32
      %415 = vector.broadcast %c1_i32_178 : i32 to vector<32x64xi32>
      %416 = arith.addi %410, %415 : vector<32x64xi32>
      %c32_i32_179 = arith.constant 32 : i32
      %417 = vector.broadcast %c32_i32_179 : i32 to vector<32x64xi32>
      %418 = arith.cmpi slt, %416, %417 : vector<32x64xi32>
      %419 = arith.andi %414, %418 : vector<32x64xi1>
      %cst_180 = arith.constant 0.000000e+00 : f32
      %420 = vector.broadcast %cst_180 : f32 to vector<32x64xf32>
      %421 = arith.select %419, %409, %420 : vector<32x64xi1>, vector<32x64xf32>
      %422 = arith.addf %405, %421 : vector<32x64xf32>
      %423 = vector.broadcast %382 : vector<1x64xf32> to vector<32x64xf32>
      %424 = arith.addf %422, %423 : vector<32x64xf32>
      %425 = vector.broadcast %1 : vector<32x1xf32> to vector<32x64xf32>
      %426 = arith.mulf %424, %425 : vector<32x64xf32>
      %c0_181 = arith.constant 0 : index
      %c0_182 = arith.constant 0 : index
      %427 = vector.load %arg26[%c0_181, %c0_182] : memref<32x64xf32, #tpu.memory_space<vmem>>, vector<32x64xf32>
      tpu.vector_store %arg26[%c0_181, %c0_182], %426 {strides = array<i32>} : memref<32x64xf32, #tpu.memory_space<vmem>>, vector<32x64xf32>,
    } else {
    }
    %c0_3 = arith.constant 0 : index
    %c0_4 = arith.constant 0 : index
    %5 = vector.load %arg26[%c0_3, %c0_4] : memref<32x64xf32, #tpu.memory_space<vmem>>, vector<32x64xf32>
    %c0_5 = arith.constant 0 : index
    %c0_6 = arith.constant 0 : index
    %c0_7 = arith.constant 0 : index
    %6 = vector.load %arg5[%c0_5, %c0_6, %c0_7] : memref<1x1x32xf32, #tpu.memory_space<vmem>>, vector<1x1x32xf32>
    %7 = vector.shape_cast %6 : vector<1x1x32xf32> to vector<1x32xf32>
    %cst = arith.constant 0.000000e+00 : f32
    %8 = vector.broadcast %cst : f32 to vector<1x32xf32>
    %9 = arith.cmpf ogt, %7, %8 : vector<1x32xf32>
    %cst_8 = arith.constant 0.000000e+00 : f32
    %cst_9 = arith.constant -1.000000e+09 : f32
    %10 = vector.broadcast %cst_8 : f32 to vector<1x32xf32>
    %11 = vector.broadcast %cst_9 : f32 to vector<1x32xf32>
    %12 = arith.select %9, %10, %11 : vector<1x32xi1>, vector<1x32xf32>
    %c0_10 = arith.constant 0 : index
    %c0_11 = arith.constant 0 : index
    %c0_12 = arith.constant 0 : index
    %13 = vector.load %arg6[%c0_10, %c0_11, %c0_12] : memref<1x1x16xf32, #tpu.memory_space<vmem>>, vector<1x1x16xf32>
    %14 = vector.shape_cast %13 : vector<1x1x16xf32> to vector<1x16xf32>
    %cst_13 = arith.constant 0.000000e+00 : f32
    %15 = vector.broadcast %cst_13 : f32 to vector<1x16xf32>
    %16 = arith.cmpf ogt, %14, %15 : vector<1x16xf32>
    %cst_14 = arith.constant 0.000000e+00 : f32
    %cst_15 = arith.constant -1.000000e+09 : f32
    %17 = vector.broadcast %cst_14 : f32 to vector<1x16xf32>
    %18 = vector.broadcast %cst_15 : f32 to vector<1x16xf32>
    %19 = arith.select %16, %17, %18 : vector<1x16xi1>, vector<1x16xf32>
    %c0_16 = arith.constant 0 : index
    %c0_17 = arith.constant 0 : index
    %c0_18 = arith.constant 0 : index
    %20 = vector.load %arg7[%c0_16, %c0_17, %c0_18] : memref<1x16x64xf32, #tpu.memory_space<vmem>>, vector<1x16x64xf32>
    %21 = vector.shape_cast %20 : vector<1x16x64xf32> to vector<16x64xf32>
    %c0_19 = arith.constant 0 : index
    %c0_20 = arith.constant 0 : index
    %c0_21 = arith.constant 0 : index
    %22 = vector.load %arg12[%c0_19, %c0_20, %c0_21] : memref<1x3x64xf32, #tpu.memory_space<vmem>>, vector<1x1x64xf32>
    %23 = vector.shape_cast %22 : vector<1x1x64xf32> to vector<1x64xf32>
    %c0_22 = arith.constant 0 : index
    %c0_23 = arith.constant 0 : index
    %c0_24 = arith.constant 0 : index
    %24 = vector.load %arg13[%c0_22, %c0_23, %c0_24] : memref<1x3x64xf32, #tpu.memory_space<vmem>>, vector<1x1x64xf32>
    %25 = vector.shape_cast %24 : vector<1x1x64xf32> to vector<1x64xf32>
    %cst_25 = arith.constant dense<0.000000e+00> : vector<32xf32>
    %26 = vector.multi_reduction <add>, %5, %cst_25 [1] : vector<32x64xf32> to vector<32xf32>
    %27 = vector.shape_cast %26 : vector<32xf32> to vector<32x1xf32>
    %cst_26 = arith.constant 6.400000e+01 : f32
    %28 = vector.broadcast %cst_26 : f32 to vector<32x1xf32>
    %29 = arith.divf %27, %28 : vector<32x1xf32>
    %30 = vector.broadcast %29 : vector<32x1xf32> to vector<32x64xf32>
    %31 = arith.subf %5, %30 : vector<32x64xf32>
    %32 = arith.mulf %31, %31 : vector<32x64xf32>
    %cst_27 = arith.constant dense<0.000000e+00> : vector<32xf32>
    %33 = vector.multi_reduction <add>, %32, %cst_27 [1] : vector<32x64xf32> to vector<32xf32>
    %34 = vector.shape_cast %33 : vector<32xf32> to vector<32x1xf32>
    %cst_28 = arith.constant 6.400000e+01 : f32
    %35 = vector.broadcast %cst_28 : f32 to vector<32x1xf32>
    %36 = arith.divf %34, %35 : vector<32x1xf32>
    %37 = vector.broadcast %29 : vector<32x1xf32> to vector<32x64xf32>
    %38 = arith.subf %5, %37 : vector<32x64xf32>
    %cst_29 = arith.constant 9.99999974E-6 : f32
    %39 = vector.broadcast %cst_29 : f32 to vector<32x1xf32>
    %40 = arith.addf %36, %39 : vector<32x1xf32>
    %41 = math.rsqrt %40 : vector<32x1xf32>
    %42 = vector.broadcast %41 : vector<32x1xf32> to vector<32x64xf32>
    %43 = arith.mulf %38, %42 : vector<32x64xf32>
    %44 = vector.broadcast %23 : vector<1x64xf32> to vector<32x64xf32>
    %45 = arith.mulf %43, %44 : vector<32x64xf32>
    %46 = vector.broadcast %25 : vector<1x64xf32> to vector<32x64xf32>
    %47 = arith.addf %45, %46 : vector<32x64xf32>
    %48 = arith.truncf %47 : vector<32x64xf32> to vector<32x64xbf16>
    %c0_30 = arith.constant 0 : index
    %c0_31 = arith.constant 0 : index
    %c0_32 = arith.constant 0 : index
    %49 = vector.load %arg14[%c0_30, %c0_31, %c0_32] : memref<1x64x96xbf16, #tpu.memory_space<vmem>>, vector<1x64x96xbf16>
    %50 = vector.shape_cast %49 : vector<1x64x96xbf16> to vector<64x96xbf16>
    %cst_33 = arith.constant dense<0.000000e+00> : vector<32x96xf32>
    %51 = tpu.matmul %48, %50, %cst_33 {dimension_numbers = #tpu.dot_dimension_numbers<[1], [0], [0], [1], [0, 0, 1, 1], [], []>} : vector<32x64xbf16>, vector<64x96xbf16>, vector<32x96xf32> -> vector<32x96xf32>
    %52 = vector.extract_strided_slice %51 {offsets = [0, 0], sizes = [32, 32], strides = [1, 1]} : vector<32x96xf32> to vector<32x32xf32>
    %53 = vector.extract_strided_slice %51 {offsets = [0, 32], sizes = [32, 32], strides = [1, 1]} : vector<32x96xf32> to vector<32x32xf32>
    %54 = vector.extract_strided_slice %51 {offsets = [0, 64], sizes = [32, 32], strides = [1, 1]} : vector<32x96xf32> to vector<32x32xf32>
    %c0_34 = arith.constant 0 : index
    %c0_35 = arith.constant 0 : index
    %c0_36 = arith.constant 0 : index
    %55 = vector.load %arg15[%c0_34, %c0_35, %c0_36] : memref<1x32x64xbf16, #tpu.memory_space<vmem>>, vector<1x32x64xbf16>
    %56 = vector.shape_cast %55 : vector<1x32x64xbf16> to vector<32x64xbf16>
    %cst_37 = arith.constant 0.000000e+00 : f32
    %57 = vector.broadcast %cst_37 : f32 to vector<32x64xf32>
    %58 = vector.extract_strided_slice %52 {offsets = [0, 0], sizes = [32, 16], strides = [1, 1]} : vector<32x32xf32> to vector<32x16xf32>
    %59 = arith.truncf %58 : vector<32x16xf32> to vector<32x16xbf16>
    %60 = vector.extract_strided_slice %53 {offsets = [0, 0], sizes = [32, 16], strides = [1, 1]} : vector<32x32xf32> to vector<32x16xf32>
    %61 = arith.truncf %60 : vector<32x16xf32> to vector<32x16xbf16>
    %62 = vector.extract_strided_slice %54 {offsets = [0, 0], sizes = [32, 16], strides = [1, 1]} : vector<32x32xf32> to vector<32x16xf32>
    %63 = arith.truncf %62 : vector<32x16xf32> to vector<32x16xbf16>
    "tpu.trace_start"() <{level = 10 : i32, message = "qd,kd->qk"}> : () -> ()
    %cst_38 = arith.constant dense<0.000000e+00> : vector<32x32xf32>
    %64 = tpu.matmul %59, %61, %cst_38 {dimension_numbers = #tpu.dot_dimension_numbers<[1], [1], [0], [0], [0, 0, 1, 0], [], []>} : vector<32x16xbf16>, vector<32x16xbf16>, vector<32x32xf32> -> vector<32x32xf32>
    "tpu.trace_stop"() : () -> ()
    %65 = vector.broadcast %12 : vector<1x32xf32> to vector<32x32xf32>
    %66 = arith.addf %64, %65 : vector<32x32xf32>
    %cst_39 = arith.constant dense<0xFF800000> : vector<32xf32>
    %67 = vector.multi_reduction <maximumf>, %66, %cst_39 [1] : vector<32x32xf32> to vector<32xf32>
    %68 = vector.shape_cast %67 : vector<32xf32> to vector<32x1xf32>
    %69 = vector.broadcast %68 : vector<32x1xf32> to vector<32x32xf32>
    %70 = arith.subf %66, %69 : vector<32x32xf32>
    %71 = math.exp %70 : vector<32x32xf32>
    %cst_40 = arith.constant dense<0.000000e+00> : vector<32xf32>
    %72 = vector.multi_reduction <add>, %71, %cst_40 [1] : vector<32x32xf32> to vector<32xf32>
    %73 = vector.shape_cast %72 : vector<32xf32> to vector<32x1xf32>
    %74 = arith.truncf %71 : vector<32x32xf32> to vector<32x32xbf16>
    "tpu.trace_start"() <{level = 10 : i32, message = "qk,kd->qd"}> : () -> ()
    %cst_41 = arith.constant dense<0.000000e+00> : vector<32x16xf32>
    %75 = tpu.matmul %74, %63, %cst_41 {dimension_numbers = #tpu.dot_dimension_numbers<[1], [0], [0], [1], [0, 0, 1, 1], [], []>} : vector<32x32xbf16>, vector<32x16xbf16>, vector<32x16xf32> -> vector<32x16xf32>
    "tpu.trace_stop"() : () -> ()
    %76 = tpu.reciprocal %73 {approx = true} : vector<32x1xf32> -> vector<32x1xf32>
    %77 = vector.broadcast %76 : vector<32x1xf32> to vector<32x16xf32>
    %78 = arith.mulf %75, %77 : vector<32x16xf32>
    %79 = arith.truncf %78 : vector<32x16xf32> to vector<32x16xbf16>
    %80 = vector.extract_strided_slice %56 {offsets = [0, 0], sizes = [16, 64], strides = [1, 1]} : vector<32x64xbf16> to vector<16x64xbf16>
    %cst_42 = arith.constant dense<0.000000e+00> : vector<32x64xf32>
    %81 = tpu.matmul %79, %80, %cst_42 {dimension_numbers = #tpu.dot_dimension_numbers<[1], [0], [0], [1], [0, 0, 1, 1], [], []>} : vector<32x16xbf16>, vector<16x64xbf16>, vector<32x64xf32> -> vector<32x64xf32>
    %82 = arith.addf %57, %81 : vector<32x64xf32>
    %83 = vector.extract_strided_slice %52 {offsets = [0, 16], sizes = [32, 16], strides = [1, 1]} : vector<32x32xf32> to vector<32x16xf32>
    %84 = arith.truncf %83 : vector<32x16xf32> to vector<32x16xbf16>
    %85 = vector.extract_strided_slice %53 {offsets = [0, 16], sizes = [32, 16], strides = [1, 1]} : vector<32x32xf32> to vector<32x16xf32>
    %86 = arith.truncf %85 : vector<32x16xf32> to vector<32x16xbf16>
    %87 = vector.extract_strided_slice %54 {offsets = [0, 16], sizes = [32, 16], strides = [1, 1]} : vector<32x32xf32> to vector<32x16xf32>
    %88 = arith.truncf %87 : vector<32x16xf32> to vector<32x16xbf16>
    "tpu.trace_start"() <{level = 10 : i32, message = "qd,kd->qk"}> : () -> ()
    %cst_43 = arith.constant dense<0.000000e+00> : vector<32x32xf32>
    %89 = tpu.matmul %84, %86, %cst_43 {dimension_numbers = #tpu.dot_dimension_numbers<[1], [1], [0], [0], [0, 0, 1, 0], [], []>} : vector<32x16xbf16>, vector<32x16xbf16>, vector<32x32xf32> -> vector<32x32xf32>
    "tpu.trace_stop"() : () -> ()
    %90 = vector.broadcast %12 : vector<1x32xf32> to vector<32x32xf32>
    %91 = arith.addf %89, %90 : vector<32x32xf32>
    %cst_44 = arith.constant dense<0xFF800000> : vector<32xf32>
    %92 = vector.multi_reduction <maximumf>, %91, %cst_44 [1] : vector<32x32xf32> to vector<32xf32>
    %93 = vector.shape_cast %92 : vector<32xf32> to vector<32x1xf32>
    %94 = vector.broadcast %93 : vector<32x1xf32> to vector<32x32xf32>
    %95 = arith.subf %91, %94 : vector<32x32xf32>
    %96 = math.exp %95 : vector<32x32xf32>
    %cst_45 = arith.constant dense<0.000000e+00> : vector<32xf32>
    %97 = vector.multi_reduction <add>, %96, %cst_45 [1] : vector<32x32xf32> to vector<32xf32>
    %98 = vector.shape_cast %97 : vector<32xf32> to vector<32x1xf32>
    %99 = arith.truncf %96 : vector<32x32xf32> to vector<32x32xbf16>
    "tpu.trace_start"() <{level = 10 : i32, message = "qk,kd->qd"}> : () -> ()
    %cst_46 = arith.constant dense<0.000000e+00> : vector<32x16xf32>
    %100 = tpu.matmul %99, %88, %cst_46 {dimension_numbers = #tpu.dot_dimension_numbers<[1], [0], [0], [1], [0, 0, 1, 1], [], []>} : vector<32x32xbf16>, vector<32x16xbf16>, vector<32x16xf32> -> vector<32x16xf32>
    "tpu.trace_stop"() : () -> ()
    %101 = tpu.reciprocal %98 {approx = true} : vector<32x1xf32> -> vector<32x1xf32>
    %102 = vector.broadcast %101 : vector<32x1xf32> to vector<32x16xf32>
    %103 = arith.mulf %100, %102 : vector<32x16xf32>
    %104 = arith.truncf %103 : vector<32x16xf32> to vector<32x16xbf16>
    %105 = vector.extract_strided_slice %56 {offsets = [16, 0], sizes = [16, 64], strides = [1, 1]} : vector<32x64xbf16> to vector<16x64xbf16>
    %cst_47 = arith.constant dense<0.000000e+00> : vector<32x64xf32>
    %106 = tpu.matmul %104, %105, %cst_47 {dimension_numbers = #tpu.dot_dimension_numbers<[1], [0], [0], [1], [0, 0, 1, 1], [], []>} : vector<32x16xbf16>, vector<16x64xbf16>, vector<32x64xf32> -> vector<32x64xf32>
    %107 = arith.addf %82, %106 : vector<32x64xf32>
    %108 = arith.addf %5, %107 : vector<32x64xf32>
    %109 = vector.broadcast %1 : vector<32x1xf32> to vector<32x64xf32>
    %110 = arith.mulf %108, %109 : vector<32x64xf32>
    %c0_48 = arith.constant 0 : index
    %c1 = arith.constant 1 : index
    %c0_49 = arith.constant 0 : index
    %111 = vector.load %arg12[%c0_48, %c1, %c0_49] : memref<1x3x64xf32, #tpu.memory_space<vmem>>, vector<1x1x64xf32>
    %112 = vector.shape_cast %111 : vector<1x1x64xf32> to vector<1x64xf32>
    %c0_50 = arith.constant 0 : index
    %c1_51 = arith.constant 1 : index
    %c0_52 = arith.constant 0 : index
    %113 = vector.load %arg13[%c0_50, %c1_51, %c0_52] : memref<1x3x64xf32, #tpu.memory_space<vmem>>, vector<1x1x64xf32>
    %114 = vector.shape_cast %113 : vector<1x1x64xf32> to vector<1x64xf32>
    %cst_53 = arith.constant dense<0.000000e+00> : vector<32xf32>
    %115 = vector.multi_reduction <add>, %110, %cst_53 [1] : vector<32x64xf32> to vector<32xf32>
    %116 = vector.shape_cast %115 : vector<32xf32> to vector<32x1xf32>
    %cst_54 = arith.constant 6.400000e+01 : f32
    %117 = vector.broadcast %cst_54 : f32 to vector<32x1xf32>
    %118 = arith.divf %116, %117 : vector<32x1xf32>
    %119 = vector.broadcast %118 : vector<32x1xf32> to vector<32x64xf32>
    %120 = arith.subf %110, %119 : vector<32x64xf32>
    %121 = arith.mulf %120, %120 : vector<32x64xf32>
    %cst_55 = arith.constant dense<0.000000e+00> : vector<32xf32>
    %122 = vector.multi_reduction <add>, %121, %cst_55 [1] : vector<32x64xf32> to vector<32xf32>
    %123 = vector.shape_cast %122 : vector<32xf32> to vector<32x1xf32>
    %cst_56 = arith.constant 6.400000e+01 : f32
    %124 = vector.broadcast %cst_56 : f32 to vector<32x1xf32>
    %125 = arith.divf %123, %124 : vector<32x1xf32>
    %126 = vector.broadcast %118 : vector<32x1xf32> to vector<32x64xf32>
    %127 = arith.subf %110, %126 : vector<32x64xf32>
    %cst_57 = arith.constant 9.99999974E-6 : f32
    %128 = vector.broadcast %cst_57 : f32 to vector<32x1xf32>
    %129 = arith.addf %125, %128 : vector<32x1xf32>
    %130 = math.rsqrt %129 : vector<32x1xf32>
    %131 = vector.broadcast %130 : vector<32x1xf32> to vector<32x64xf32>
    %132 = arith.mulf %127, %131 : vector<32x64xf32>
    %133 = vector.broadcast %112 : vector<1x64xf32> to vector<32x64xf32>
    %134 = arith.mulf %132, %133 : vector<32x64xf32>
    %135 = vector.broadcast %114 : vector<1x64xf32> to vector<32x64xf32>
    %136 = arith.addf %134, %135 : vector<32x64xf32>
    %137 = arith.truncf %136 : vector<32x64xf32> to vector<32x64xbf16>
    %c0_58 = arith.constant 0 : index
    %c0_59 = arith.constant 0 : index
    %c0_60 = arith.constant 0 : index
    %138 = vector.load %arg16[%c0_58, %c0_59, %c0_60] : memref<1x64x32xbf16, #tpu.memory_space<vmem>>, vector<1x64x32xbf16>
    %139 = vector.shape_cast %138 : vector<1x64x32xbf16> to vector<64x32xbf16>
    %cst_61 = arith.constant dense<0.000000e+00> : vector<32x32xf32>
    %140 = tpu.matmul %137, %139, %cst_61 {dimension_numbers = #tpu.dot_dimension_numbers<[1], [0], [0], [1], [0, 0, 1, 1], [], []>} : vector<32x64xbf16>, vector<64x32xbf16>, vector<32x32xf32> -> vector<32x32xf32>
    %141 = arith.truncf %21 : vector<16x64xf32> to vector<16x64xbf16>
    %c0_62 = arith.constant 0 : index
    %c0_63 = arith.constant 0 : index
    %c0_64 = arith.constant 0 : index
    %142 = vector.load %arg17[%c0_62, %c0_63, %c0_64] : memref<1x64x64xbf16, #tpu.memory_space<vmem>>, vector<1x64x64xbf16>
    %143 = vector.shape_cast %142 : vector<1x64x64xbf16> to vector<64x64xbf16>
    %cst_65 = arith.constant dense<0.000000e+00> : vector<16x64xf32>
    %144 = tpu.matmul %141, %143, %cst_65 {dimension_numbers = #tpu.dot_dimension_numbers<[1], [0], [0], [1], [0, 0, 1, 1], [], []>} : vector<16x64xbf16>, vector<64x64xbf16>, vector<16x64xf32> -> vector<16x64xf32>
    %145 = vector.extract_strided_slice %144 {offsets = [0, 0], sizes = [16, 32], strides = [1, 1]} : vector<16x64xf32> to vector<16x32xf32>
    %146 = vector.extract_strided_slice %144 {offsets = [0, 32], sizes = [16, 32], strides = [1, 1]} : vector<16x64xf32> to vector<16x32xf32>
    %c0_66 = arith.constant 0 : index
    %c0_67 = arith.constant 0 : index
    %c0_68 = arith.constant 0 : index
    %147 = vector.load %arg18[%c0_66, %c0_67, %c0_68] : memref<1x32x64xbf16, #tpu.memory_space<vmem>>, vector<1x32x64xbf16>
    %148 = vector.shape_cast %147 : vector<1x32x64xbf16> to vector<32x64xbf16>
    %cst_69 = arith.constant 0.000000e+00 : f32
    %149 = vector.broadcast %cst_69 : f32 to vector<32x64xf32>
    %150 = vector.extract_strided_slice %140 {offsets = [0, 0], sizes = [32, 16], strides = [1, 1]} : vector<32x32xf32> to vector<32x16xf32>
    %151 = arith.truncf %150 : vector<32x16xf32> to vector<32x16xbf16>
    %152 = vector.extract_strided_slice %145 {offsets = [0, 0], sizes = [16, 16], strides = [1, 1]} : vector<16x32xf32> to vector<16x16xf32>
    %153 = arith.truncf %152 : vector<16x16xf32> to vector<16x16xbf16>
    %154 = vector.extract_strided_slice %146 {offsets = [0, 0], sizes = [16, 16], strides = [1, 1]} : vector<16x32xf32> to vector<16x16xf32>
    %155 = arith.truncf %154 : vector<16x16xf32> to vector<16x16xbf16>
    "tpu.trace_start"() <{level = 10 : i32, message = "qd,kd->qk"}> : () -> ()
    %cst_70 = arith.constant dense<0.000000e+00> : vector<32x16xf32>
    %156 = tpu.matmul %151, %153, %cst_70 {dimension_numbers = #tpu.dot_dimension_numbers<[1], [1], [0], [0], [0, 0, 1, 0], [], []>} : vector<32x16xbf16>, vector<16x16xbf16>, vector<32x16xf32> -> vector<32x16xf32>
    "tpu.trace_stop"() : () -> ()
    %157 = vector.broadcast %19 : vector<1x16xf32> to vector<32x16xf32>
    %158 = arith.addf %156, %157 : vector<32x16xf32>
    %cst_71 = arith.constant dense<0xFF800000> : vector<32xf32>
    %159 = vector.multi_reduction <maximumf>, %158, %cst_71 [1] : vector<32x16xf32> to vector<32xf32>
    %160 = vector.shape_cast %159 : vector<32xf32> to vector<32x1xf32>
    %161 = vector.broadcast %160 : vector<32x1xf32> to vector<32x16xf32>
    %162 = arith.subf %158, %161 : vector<32x16xf32>
    %163 = math.exp %162 : vector<32x16xf32>
    %cst_72 = arith.constant dense<0.000000e+00> : vector<32xf32>
    %164 = vector.multi_reduction <add>, %163, %cst_72 [1] : vector<32x16xf32> to vector<32xf32>
    %165 = vector.shape_cast %164 : vector<32xf32> to vector<32x1xf32>
    %166 = arith.truncf %163 : vector<32x16xf32> to vector<32x16xbf16>
    "tpu.trace_start"() <{level = 10 : i32, message = "qk,kd->qd"}> : () -> ()
    %cst_73 = arith.constant dense<0.000000e+00> : vector<32x16xf32>
    %167 = tpu.matmul %166, %155, %cst_73 {dimension_numbers = #tpu.dot_dimension_numbers<[1], [0], [0], [1], [0, 0, 1, 1], [], []>} : vector<32x16xbf16>, vector<16x16xbf16>, vector<32x16xf32> -> vector<32x16xf32>
    "tpu.trace_stop"() : () -> ()
    %168 = tpu.reciprocal %165 {approx = true} : vector<32x1xf32> -> vector<32x1xf32>
    %169 = vector.broadcast %168 : vector<32x1xf32> to vector<32x16xf32>
    %170 = arith.mulf %167, %169 : vector<32x16xf32>
    %171 = arith.truncf %170 : vector<32x16xf32> to vector<32x16xbf16>
    %172 = vector.extract_strided_slice %148 {offsets = [0, 0], sizes = [16, 64], strides = [1, 1]} : vector<32x64xbf16> to vector<16x64xbf16>
    %cst_74 = arith.constant dense<0.000000e+00> : vector<32x64xf32>
    %173 = tpu.matmul %171, %172, %cst_74 {dimension_numbers = #tpu.dot_dimension_numbers<[1], [0], [0], [1], [0, 0, 1, 1], [], []>} : vector<32x16xbf16>, vector<16x64xbf16>, vector<32x64xf32> -> vector<32x64xf32>
    %174 = arith.addf %149, %173 : vector<32x64xf32>
    %175 = vector.extract_strided_slice %140 {offsets = [0, 16], sizes = [32, 16], strides = [1, 1]} : vector<32x32xf32> to vector<32x16xf32>
    %176 = arith.truncf %175 : vector<32x16xf32> to vector<32x16xbf16>
    %177 = vector.extract_strided_slice %145 {offsets = [0, 16], sizes = [16, 16], strides = [1, 1]} : vector<16x32xf32> to vector<16x16xf32>
    %178 = arith.truncf %177 : vector<16x16xf32> to vector<16x16xbf16>
    %179 = vector.extract_strided_slice %146 {offsets = [0, 16], sizes = [16, 16], strides = [1, 1]} : vector<16x32xf32> to vector<16x16xf32>
    %180 = arith.truncf %179 : vector<16x16xf32> to vector<16x16xbf16>
    "tpu.trace_start"() <{level = 10 : i32, message = "qd,kd->qk"}> : () -> ()
    %cst_75 = arith.constant dense<0.000000e+00> : vector<32x16xf32>
    %181 = tpu.matmul %176, %178, %cst_75 {dimension_numbers = #tpu.dot_dimension_numbers<[1], [1], [0], [0], [0, 0, 1, 0], [], []>} : vector<32x16xbf16>, vector<16x16xbf16>, vector<32x16xf32> -> vector<32x16xf32>
    "tpu.trace_stop"() : () -> ()
    %182 = vector.broadcast %19 : vector<1x16xf32> to vector<32x16xf32>
    %183 = arith.addf %181, %182 : vector<32x16xf32>
    %cst_76 = arith.constant dense<0xFF800000> : vector<32xf32>
    %184 = vector.multi_reduction <maximumf>, %183, %cst_76 [1] : vector<32x16xf32> to vector<32xf32>
    %185 = vector.shape_cast %184 : vector<32xf32> to vector<32x1xf32>
    %186 = vector.broadcast %185 : vector<32x1xf32> to vector<32x16xf32>
    %187 = arith.subf %183, %186 : vector<32x16xf32>
    %188 = math.exp %187 : vector<32x16xf32>
    %cst_77 = arith.constant dense<0.000000e+00> : vector<32xf32>
    %189 = vector.multi_reduction <add>, %188, %cst_77 [1] : vector<32x16xf32> to vector<32xf32>
    %190 = vector.shape_cast %189 : vector<32xf32> to vector<32x1xf32>
    %191 = arith.truncf %188 : vector<32x16xf32> to vector<32x16xbf16>
    "tpu.trace_start"() <{level = 10 : i32, message = "qk,kd->qd"}> : () -> ()
    %cst_78 = arith.constant dense<0.000000e+00> : vector<32x16xf32>
    %192 = tpu.matmul %191, %180, %cst_78 {dimension_numbers = #tpu.dot_dimension_numbers<[1], [0], [0], [1], [0, 0, 1, 1], [], []>} : vector<32x16xbf16>, vector<16x16xbf16>, vector<32x16xf32> -> vector<32x16xf32>
    "tpu.trace_stop"() : () -> ()
    %193 = tpu.reciprocal %190 {approx = true} : vector<32x1xf32> -> vector<32x1xf32>
    %194 = vector.broadcast %193 : vector<32x1xf32> to vector<32x16xf32>
    %195 = arith.mulf %192, %194 : vector<32x16xf32>
    %196 = arith.truncf %195 : vector<32x16xf32> to vector<32x16xbf16>
    %197 = vector.extract_strided_slice %148 {offsets = [16, 0], sizes = [16, 64], strides = [1, 1]} : vector<32x64xbf16> to vector<16x64xbf16>
    %cst_79 = arith.constant dense<0.000000e+00> : vector<32x64xf32>
    %198 = tpu.matmul %196, %197, %cst_79 {dimension_numbers = #tpu.dot_dimension_numbers<[1], [0], [0], [1], [0, 0, 1, 1], [], []>} : vector<32x16xbf16>, vector<16x64xbf16>, vector<32x64xf32> -> vector<32x64xf32>
    %199 = arith.addf %174, %198 : vector<32x64xf32>
    %200 = arith.addf %110, %199 : vector<32x64xf32>
    %201 = vector.broadcast %1 : vector<32x1xf32> to vector<32x64xf32>
    %202 = arith.mulf %200, %201 : vector<32x64xf32>
    %c0_80 = arith.constant 0 : index
    %c2 = arith.constant 2 : index
    %c0_81 = arith.constant 0 : index
    %203 = vector.load %arg12[%c0_80, %c2, %c0_81] : memref<1x3x64xf32, #tpu.memory_space<vmem>>, vector<1x1x64xf32>
    %204 = vector.shape_cast %203 : vector<1x1x64xf32> to vector<1x64xf32>
    %c0_82 = arith.constant 0 : index
    %c2_83 = arith.constant 2 : index
    %c0_84 = arith.constant 0 : index
    %205 = vector.load %arg13[%c0_82, %c2_83, %c0_84] : memref<1x3x64xf32, #tpu.memory_space<vmem>>, vector<1x1x64xf32>
    %206 = vector.shape_cast %205 : vector<1x1x64xf32> to vector<1x64xf32>
    %cst_85 = arith.constant dense<0.000000e+00> : vector<32xf32>
    %207 = vector.multi_reduction <add>, %202, %cst_85 [1] : vector<32x64xf32> to vector<32xf32>
    %208 = vector.shape_cast %207 : vector<32xf32> to vector<32x1xf32>
    %cst_86 = arith.constant 6.400000e+01 : f32
    %209 = vector.broadcast %cst_86 : f32 to vector<32x1xf32>
    %210 = arith.divf %208, %209 : vector<32x1xf32>
    %211 = vector.broadcast %210 : vector<32x1xf32> to vector<32x64xf32>
    %212 = arith.subf %202, %211 : vector<32x64xf32>
    %213 = arith.mulf %212, %212 : vector<32x64xf32>
    %cst_87 = arith.constant dense<0.000000e+00> : vector<32xf32>
    %214 = vector.multi_reduction <add>, %213, %cst_87 [1] : vector<32x64xf32> to vector<32xf32>
    %215 = vector.shape_cast %214 : vector<32xf32> to vector<32x1xf32>
    %cst_88 = arith.constant 6.400000e+01 : f32
    %216 = vector.broadcast %cst_88 : f32 to vector<32x1xf32>
    %217 = arith.divf %215, %216 : vector<32x1xf32>
    %218 = vector.broadcast %210 : vector<32x1xf32> to vector<32x64xf32>
    %219 = arith.subf %202, %218 : vector<32x64xf32>
    %cst_89 = arith.constant 9.99999974E-6 : f32
    %220 = vector.broadcast %cst_89 : f32 to vector<32x1xf32>
    %221 = arith.addf %217, %220 : vector<32x1xf32>
    %222 = math.rsqrt %221 : vector<32x1xf32>
    %223 = vector.broadcast %222 : vector<32x1xf32> to vector<32x64xf32>
    %224 = arith.mulf %219, %223 : vector<32x64xf32>
    %225 = vector.broadcast %204 : vector<1x64xf32> to vector<32x64xf32>
    %226 = arith.mulf %224, %225 : vector<32x64xf32>
    %227 = vector.broadcast %206 : vector<1x64xf32> to vector<32x64xf32>
    %228 = arith.addf %226, %227 : vector<32x64xf32>
    %c0_90 = arith.constant 0 : index
    %c0_91 = arith.constant 0 : index
    %c0_92 = arith.constant 0 : index
    %c0_93 = arith.constant 0 : index
    %229 = vector.load %arg19[%c0_90, %c0_91, %c0_92, %c0_93] : memref<1x3x64x256xbf16, #tpu.memory_space<vmem>>, vector<1x3x64x256xbf16>
    %230 = vector.shape_cast %229 : vector<1x3x64x256xbf16> to vector<3x64x256xbf16>
    %c0_94 = arith.constant 0 : index
    %c0_95 = arith.constant 0 : index
    %c0_96 = arith.constant 0 : index
    %231 = vector.load %arg20[%c0_94, %c0_95, %c0_96] : memref<1x1x256xf32, #tpu.memory_space<vmem>>, vector<1x1x256xf32>
    %232 = vector.shape_cast %231 : vector<1x1x256xf32> to vector<1x256xf32>
    %233 = arith.truncf %228 : vector<32x64xf32> to vector<32x64xbf16>
    %cst_97 = arith.constant 0.000000e+00 : f32
    %234 = vector.broadcast %cst_97 : f32 to vector<32x256xf32>
    %235 = vector.extract_strided_slice %230 {offsets = [0, 0, 0], sizes = [1, 64, 256], strides = [1, 1, 1]} : vector<3x64x256xbf16> to vector<1x64x256xbf16>
    %236 = vector.shape_cast %235 : vector<1x64x256xbf16> to vector<64x256xbf16>
    %cst_98 = arith.constant dense<0.000000e+00> : vector<32x256xf32>
    %237 = tpu.matmul %233, %236, %cst_98 {dimension_numbers = #tpu.dot_dimension_numbers<[1], [0], [0], [1], [0, 0, 1, 1], [], []>} : vector<32x64xbf16>, vector<64x256xbf16>, vector<32x256xf32> -> vector<32x256xf32>
    %c1_i32 = arith.constant 1 : i32
    %238 = tpu.dynamic_rotate %237 by %c1_i32 dim 0 : vector<32x256xf32>, i32 -> vector<32x256xf32>
    %239 = tpu.iota {dimensions = array<i32: 0>} : vector<32x256xi32>
    %c-1_i32 = arith.constant -1 : i32
    %240 = vector.broadcast %c-1_i32 : i32 to vector<32x256xi32>
    %241 = arith.addi %239, %240 : vector<32x256xi32>
    %c0_i32_99 = arith.constant 0 : i32
    %242 = vector.broadcast %c0_i32_99 : i32 to vector<32x256xi32>
    %243 = arith.cmpi sge, %241, %242 : vector<32x256xi32>
    %c-1_i32_100 = arith.constant -1 : i32
    %244 = vector.broadcast %c-1_i32_100 : i32 to vector<32x256xi32>
    %245 = arith.addi %239, %244 : vector<32x256xi32>
    %c32_i32 = arith.constant 32 : i32
    %246 = vector.broadcast %c32_i32 : i32 to vector<32x256xi32>
    %247 = arith.cmpi slt, %245, %246 : vector<32x256xi32>
    %248 = arith.andi %243, %247 : vector<32x256xi1>
    %cst_101 = arith.constant 0.000000e+00 : f32
    %249 = vector.broadcast %cst_101 : f32 to vector<32x256xf32>
    %250 = arith.select %248, %238, %249 : vector<32x256xi1>, vector<32x256xf32>
    %251 = arith.addf %234, %250 : vector<32x256xf32>
    %252 = vector.extract_strided_slice %230 {offsets = [1, 0, 0], sizes = [1, 64, 256], strides = [1, 1, 1]} : vector<3x64x256xbf16> to vector<1x64x256xbf16>
    %253 = vector.shape_cast %252 : vector<1x64x256xbf16> to vector<64x256xbf16>
    %cst_102 = arith.constant dense<0.000000e+00> : vector<32x256xf32>
    %254 = tpu.matmul %233, %253, %cst_102 {dimension_numbers = #tpu.dot_dimension_numbers<[1], [0], [0], [1], [0, 0, 1, 1], [], []>} : vector<32x64xbf16>, vector<64x256xbf16>, vector<32x256xf32> -> vector<32x256xf32>
    %255 = arith.addf %251, %254 : vector<32x256xf32>
    %256 = vector.extract_strided_slice %230 {offsets = [2, 0, 0], sizes = [1, 64, 256], strides = [1, 1, 1]} : vector<3x64x256xbf16> to vector<1x64x256xbf16>
    %257 = vector.shape_cast %256 : vector<1x64x256xbf16> to vector<64x256xbf16>
    %cst_103 = arith.constant dense<0.000000e+00> : vector<32x256xf32>
    %258 = tpu.matmul %233, %257, %cst_103 {dimension_numbers = #tpu.dot_dimension_numbers<[1], [0], [0], [1], [0, 0, 1, 1], [], []>} : vector<32x64xbf16>, vector<64x256xbf16>, vector<32x256xf32> -> vector<32x256xf32>
    %c31_i32 = arith.constant 31 : i32
    %259 = tpu.dynamic_rotate %258 by %c31_i32 dim 0 : vector<32x256xf32>, i32 -> vector<32x256xf32>
    %260 = tpu.iota {dimensions = array<i32: 0>} : vector<32x256xi32>
    %c1_i32_104 = arith.constant 1 : i32
    %261 = vector.broadcast %c1_i32_104 : i32 to vector<32x256xi32>
    %262 = arith.addi %260, %261 : vector<32x256xi32>
    %c0_i32_105 = arith.constant 0 : i32
    %263 = vector.broadcast %c0_i32_105 : i32 to vector<32x256xi32>
    %264 = arith.cmpi sge, %262, %263 : vector<32x256xi32>
    %c1_i32_106 = arith.constant 1 : i32
    %265 = vector.broadcast %c1_i32_106 : i32 to vector<32x256xi32>
    %266 = arith.addi %260, %265 : vector<32x256xi32>
    %c32_i32_107 = arith.constant 32 : i32
    %267 = vector.broadcast %c32_i32_107 : i32 to vector<32x256xi32>
    %268 = arith.cmpi slt, %266, %267 : vector<32x256xi32>
    %269 = arith.andi %264, %268 : vector<32x256xi1>
    %cst_108 = arith.constant 0.000000e+00 : f32
    %270 = vector.broadcast %cst_108 : f32 to vector<32x256xf32>
    %271 = arith.select %269, %259, %270 : vector<32x256xi1>, vector<32x256xf32>
    %272 = arith.addf %255, %271 : vector<32x256xf32>
    %273 = vector.broadcast %232 : vector<1x256xf32> to vector<32x256xf32>
    %274 = arith.addf %272, %273 : vector<32x256xf32>
    %cst_109 = arith.constant 0.000000e+00 : f32
    %275 = vector.broadcast %cst_109 : f32 to vector<32x256xf32>
    %276 = arith.maximumf %274, %275 : vector<32x256xf32>
    %c0_110 = arith.constant 0 : index
    %c0_111 = arith.constant 0 : index
    %c0_112 = arith.constant 0 : index
    %c0_113 = arith.constant 0 : index
    %277 = vector.load %arg21[%c0_110, %c0_111, %c0_112, %c0_113] : memref<1x3x256x64xbf16, #tpu.memory_space<vmem>>, vector<1x3x256x64xbf16>
    %278 = vector.shape_cast %277 : vector<1x3x256x64xbf16> to vector<3x256x64xbf16>
    %c0_114 = arith.constant 0 : index
    %c0_115 = arith.constant 0 : index
    %c0_116 = arith.constant 0 : index
    %279 = vector.load %arg22[%c0_114, %c0_115, %c0_116] : memref<1x1x64xf32, #tpu.memory_space<vmem>>, vector<1x1x64xf32>
    %280 = vector.shape_cast %279 : vector<1x1x64xf32> to vector<1x64xf32>
    %281 = arith.truncf %276 : vector<32x256xf32> to vector<32x256xbf16>
    %cst_117 = arith.constant 0.000000e+00 : f32
    %282 = vector.broadcast %cst_117 : f32 to vector<32x64xf32>
    %283 = vector.extract_strided_slice %278 {offsets = [0, 0, 0], sizes = [1, 256, 64], strides = [1, 1, 1]} : vector<3x256x64xbf16> to vector<1x256x64xbf16>
    %284 = vector.shape_cast %283 : vector<1x256x64xbf16> to vector<256x64xbf16>
    %cst_118 = arith.constant dense<0.000000e+00> : vector<32x64xf32>
    %285 = tpu.matmul %281, %284, %cst_118 {dimension_numbers = #tpu.dot_dimension_numbers<[1], [0], [0], [1], [0, 0, 1, 1], [], []>} : vector<32x256xbf16>, vector<256x64xbf16>, vector<32x64xf32> -> vector<32x64xf32>
    %c1_i32_119 = arith.constant 1 : i32
    %286 = tpu.dynamic_rotate %285 by %c1_i32_119 dim 0 : vector<32x64xf32>, i32 -> vector<32x64xf32>
    %287 = tpu.iota {dimensions = array<i32: 0>} : vector<32x64xi32>
    %c-1_i32_120 = arith.constant -1 : i32
    %288 = vector.broadcast %c-1_i32_120 : i32 to vector<32x64xi32>
    %289 = arith.addi %287, %288 : vector<32x64xi32>
    %c0_i32_121 = arith.constant 0 : i32
    %290 = vector.broadcast %c0_i32_121 : i32 to vector<32x64xi32>
    %291 = arith.cmpi sge, %289, %290 : vector<32x64xi32>
    %c-1_i32_122 = arith.constant -1 : i32
    %292 = vector.broadcast %c-1_i32_122 : i32 to vector<32x64xi32>
    %293 = arith.addi %287, %292 : vector<32x64xi32>
    %c32_i32_123 = arith.constant 32 : i32
    %294 = vector.broadcast %c32_i32_123 : i32 to vector<32x64xi32>
    %295 = arith.cmpi slt, %293, %294 : vector<32x64xi32>
    %296 = arith.andi %291, %295 : vector<32x64xi1>
    %cst_124 = arith.constant 0.000000e+00 : f32
    %297 = vector.broadcast %cst_124 : f32 to vector<32x64xf32>
    %298 = arith.select %296, %286, %297 : vector<32x64xi1>, vector<32x64xf32>
    %299 = arith.addf %282, %298 : vector<32x64xf32>
    %300 = vector.extract_strided_slice %278 {offsets = [1, 0, 0], sizes = [1, 256, 64], strides = [1, 1, 1]} : vector<3x256x64xbf16> to vector<1x256x64xbf16>
    %301 = vector.shape_cast %300 : vector<1x256x64xbf16> to vector<256x64xbf16>
    %cst_125 = arith.constant dense<0.000000e+00> : vector<32x64xf32>
    %302 = tpu.matmul %281, %301, %cst_125 {dimension_numbers = #tpu.dot_dimension_numbers<[1], [0], [0], [1], [0, 0, 1, 1], [], []>} : vector<32x256xbf16>, vector<256x64xbf16>, vector<32x64xf32> -> vector<32x64xf32>
    %303 = arith.addf %299, %302 : vector<32x64xf32>
    %304 = vector.extract_strided_slice %278 {offsets = [2, 0, 0], sizes = [1, 256, 64], strides = [1, 1, 1]} : vector<3x256x64xbf16> to vector<1x256x64xbf16>
    %305 = vector.shape_cast %304 : vector<1x256x64xbf16> to vector<256x64xbf16>
    %cst_126 = arith.constant dense<0.000000e+00> : vector<32x64xf32>
    %306 = tpu.matmul %281, %305, %cst_126 {dimension_numbers = #tpu.dot_dimension_numbers<[1], [0], [0], [1], [0, 0, 1, 1], [], []>} : vector<32x256xbf16>, vector<256x64xbf16>, vector<32x64xf32> -> vector<32x64xf32>
    %c31_i32_127 = arith.constant 31 : i32
    %307 = tpu.dynamic_rotate %306 by %c31_i32_127 dim 0 : vector<32x64xf32>, i32 -> vector<32x64xf32>
    %308 = tpu.iota {dimensions = array<i32: 0>} : vector<32x64xi32>
    %c1_i32_128 = arith.constant 1 : i32
    %309 = vector.broadcast %c1_i32_128 : i32 to vector<32x64xi32>
    %310 = arith.addi %308, %309 : vector<32x64xi32>
    %c0_i32_129 = arith.constant 0 : i32
    %311 = vector.broadcast %c0_i32_129 : i32 to vector<32x64xi32>
    %312 = arith.cmpi sge, %310, %311 : vector<32x64xi32>
    %c1_i32_130 = arith.constant 1 : i32
    %313 = vector.broadcast %c1_i32_130 : i32 to vector<32x64xi32>
    %314 = arith.addi %308, %313 : vector<32x64xi32>
    %c32_i32_131 = arith.constant 32 : i32
    %315 = vector.broadcast %c32_i32_131 : i32 to vector<32x64xi32>
    %316 = arith.cmpi slt, %314, %315 : vector<32x64xi32>
    %317 = arith.andi %312, %316 : vector<32x64xi1>
    %cst_132 = arith.constant 0.000000e+00 : f32
    %318 = vector.broadcast %cst_132 : f32 to vector<32x64xf32>
    %319 = arith.select %317, %307, %318 : vector<32x64xi1>, vector<32x64xf32>
    %320 = arith.addf %303, %319 : vector<32x64xf32>
    %321 = vector.broadcast %280 : vector<1x64xf32> to vector<32x64xf32>
    %322 = arith.addf %320, %321 : vector<32x64xf32>
    %323 = arith.addf %202, %322 : vector<32x64xf32>
    %324 = vector.broadcast %1 : vector<32x1xf32> to vector<32x64xf32>
    %325 = arith.mulf %323, %324 : vector<32x64xf32>
    %c0_133 = arith.constant 0 : index
    %c0_134 = arith.constant 0 : index
    %326 = vector.load %arg26[%c0_133, %c0_134] : memref<32x64xf32, #tpu.memory_space<vmem>>, vector<32x64xf32>
    tpu.vector_store %arg26[%c0_133, %c0_134], %325 {strides = array<i32>} : memref<32x64xf32, #tpu.memory_space<vmem>>, vector<32x64xf32>,
    %c1_i32_135 = arith.constant 1 : i32
    %327 = arith.cmpi eq, %arg1, %c1_i32_135 : i32
    %328 = arith.extui %327 : i1 to i32
    %c0_i32_136 = arith.constant 0 : i32
    %329 = arith.cmpi ne, %328, %c0_i32_136 : i32
    scf.if %329 {
      %c0_137 = arith.constant 0 : index
      %c0_138 = arith.constant 0 : index
      %330 = vector.load %arg23[%c0_137, %c0_138] : memref<1x64xf32, #tpu.memory_space<vmem>>, vector<1x64xf32>
      "tpu.trace_start"() <{level = 10 : i32, message = "ch,th->ct"}> : () -> ()
      %cst_139 = arith.constant dense<0.000000e+00> : vector<1x32xf32>
      %331 = tpu.matmul %330, %325, %cst_139 {dimension_numbers = #tpu.dot_dimension_numbers<[1], [1], [0], [0], [0, 0, 1, 0], [], []>} : vector<1x64xf32>, vector<32x64xf32>, vector<1x32xf32> -> vector<1x32xf32>
      "tpu.trace_stop"() : () -> ()
      %c0_140 = arith.constant 0 : index
      %c0_141 = arith.constant 0 : index
      %332 = vector.load %arg24[%c0_140, %c0_141] : memref<1x1xf32, #tpu.memory_space<vmem>>, vector<1x1xf32>
      %333 = vector.extract %332[0, 0] : f32 from vector<1x1xf32>
      %334 = vector.broadcast %333 : f32 to vector<1x32xf32>
      %335 = arith.addf %331, %334 : vector<1x32xf32>
      %c0_142 = arith.constant 0 : index
      %c0_143 = arith.constant 0 : index
      %c0_144 = arith.constant 0 : index
      %336 = vector.load %arg5[%c0_142, %c0_143, %c0_144] : memref<1x1x32xf32, #tpu.memory_space<vmem>>, vector<1x1x32xf32>
      %337 = vector.shape_cast %336 : vector<1x1x32xf32> to vector<1x32xf32>
      %338 = arith.mulf %335, %337 : vector<1x32xf32>
      %c0_145 = arith.constant 0 : index
      %c0_146 = arith.constant 0 : index
      %c0_147 = arith.constant 0 : index
      %339 = vector.load %arg25[%c0_145, %c0_146, %c0_147] : memref<1x1x32xf32, #tpu.memory_space<vmem>>, vector<1x1x32xf32>
      %340 = vector.shape_cast %339 : vector<1x1x32xf32> to vector<1x32xf32>
      %341 = vector.shape_cast %338 : vector<1x32xf32> to vector<1x1x32xf32>
      tpu.vector_store %arg25[%c0_145, %c0_146, %c0_147], %341 {strides = array<i32>} : memref<1x1x32xf32, #tpu.memory_space<vmem>>, vector<1x1x32xf32>,
    } else {
    }
    return
  }
  func.func @transform_0(%arg0: i32, %arg1: i32) -> (i32, i32, i32) {
    %c0_i32 = arith.constant 0 : i32
    %c0_i32_0 = arith.constant 0 : i32
    %c0_i32_1 = arith.constant 0 : i32
    return %arg0, %c0_i32, %c0_i32_0 : i32, i32, i32
  }
  func.func @transform_1(%arg0: i32, %arg1: i32) -> (i32, i32, i32) {
    %c0_i32 = arith.constant 0 : i32
    %c0_i32_0 = arith.constant 0 : i32
    %c0_i32_1 = arith.constant 0 : i32
    return %arg0, %c0_i32, %c0_i32_0 : i32, i32, i32
  }
  func.func @transform_2(%arg0: i32, %arg1: i32) -> (i32, i32, i32) {
    %c0_i32 = arith.constant 0 : i32
    %c0_i32_0 = arith.constant 0 : i32
    %c0_i32_1 = arith.constant 0 : i32
    return %arg0, %c0_i32, %c0_i32_0 : i32, i32, i32
  }
  func.func @transform_3(%arg0: i32, %arg1: i32) -> (i32, i32, i32) {
    %c0_i32 = arith.constant 0 : i32
    %c0_i32_0 = arith.constant 0 : i32
    %c0_i32_1 = arith.constant 0 : i32
    return %arg0, %c0_i32, %c0_i32_0 : i32, i32, i32
  }
  func.func @transform_4(%arg0: i32, %arg1: i32) -> (i32, i32, i32) {
    %c0_i32 = arith.constant 0 : i32
    %c0_i32_0 = arith.constant 0 : i32
    %c0_i32_1 = arith.constant 0 : i32
    return %arg0, %c0_i32, %c0_i32_0 : i32, i32, i32
  }
  func.func @transform_5(%arg0: i32, %arg1: i32) -> (i32, i32, i32) {
    %c0_i32 = arith.constant 0 : i32
    %c0_i32_0 = arith.constant 0 : i32
    %c0_i32_1 = arith.constant 0 : i32
    return %arg0, %c0_i32, %c0_i32_0 : i32, i32, i32
  }
  func.func @transform_6(%arg0: i32, %arg1: i32) -> (i32, i32) {
    %c0_i32 = arith.constant 0 : i32
    %c0_i32_0 = arith.constant 0 : i32
    %c0_i32_1 = arith.constant 0 : i32
    return %c0_i32, %c0_i32_0 : i32, i32
  }
  func.func @transform_7(%arg0: i32, %arg1: i32) -> (i32, i32) {
    %c0_i32 = arith.constant 0 : i32
    %c0_i32_0 = arith.constant 0 : i32
    %c0_i32_1 = arith.constant 0 : i32
    return %c0_i32, %c0_i32_0 : i32, i32
  }
  func.func @transform_8(%arg0: i32, %arg1: i32) -> (i32, i32, i32) {
    %c0_i32 = arith.constant 0 : i32
    %c0_i32_0 = arith.constant 0 : i32
    %c0_i32_1 = arith.constant 0 : i32
    %c0_i32_2 = arith.constant 0 : i32
    return %c0_i32, %c0_i32_0, %c0_i32_1 : i32, i32, i32
  }
  func.func @transform_9(%arg0: i32, %arg1: i32) -> (i32, i32) {
    %c0_i32 = arith.constant 0 : i32
    %c0_i32_0 = arith.constant 0 : i32
    %c0_i32_1 = arith.constant 0 : i32
    return %c0_i32, %c0_i32_0 : i32, i32
  }
  func.func @transform_10(%arg0: i32, %arg1: i32) -> (i32, i32, i32) {
    %c0_i32 = arith.constant 0 : i32
    %c0_i32_0 = arith.constant 0 : i32
    %c0_i32_1 = arith.constant 0 : i32
    return %arg1, %c0_i32, %c0_i32_0 : i32, i32, i32
  }
  func.func @transform_11(%arg0: i32, %arg1: i32) -> (i32, i32, i32) {
    %c0_i32 = arith.constant 0 : i32
    %c0_i32_0 = arith.constant 0 : i32
    %c0_i32_1 = arith.constant 0 : i32
    return %arg1, %c0_i32, %c0_i32_0 : i32, i32, i32
  }
  func.func @transform_12(%arg0: i32, %arg1: i32) -> (i32, i32, i32) {
    %c0_i32 = arith.constant 0 : i32
    %c0_i32_0 = arith.constant 0 : i32
    %c0_i32_1 = arith.constant 0 : i32
    return %arg1, %c0_i32, %c0_i32_0 : i32, i32, i32
  }
  func.func @transform_13(%arg0: i32, %arg1: i32) -> (i32, i32, i32) {
    %c0_i32 = arith.constant 0 : i32
    %c0_i32_0 = arith.constant 0 : i32
    %c0_i32_1 = arith.constant 0 : i32
    return %arg1, %c0_i32, %c0_i32_0 : i32, i32, i32
  }
  func.func @transform_14(%arg0: i32, %arg1: i32) -> (i32, i32, i32) {
    %c0_i32 = arith.constant 0 : i32
    %c0_i32_0 = arith.constant 0 : i32
    %c0_i32_1 = arith.constant 0 : i32
    return %arg1, %c0_i32, %c0_i32_0 : i32, i32, i32
  }
  func.func @transform_15(%arg0: i32, %arg1: i32) -> (i32, i32, i32) {
    %c0_i32 = arith.constant 0 : i32
    %c0_i32_0 = arith.constant 0 : i32
    %c0_i32_1 = arith.constant 0 : i32
    return %arg1, %c0_i32, %c0_i32_0 : i32, i32, i32
  }
  func.func @transform_16(%arg0: i32, %arg1: i32) -> (i32, i32, i32) {
    %c0_i32 = arith.constant 0 : i32
    %c0_i32_0 = arith.constant 0 : i32
    %c0_i32_1 = arith.constant 0 : i32
    return %arg1, %c0_i32, %c0_i32_0 : i32, i32, i32
  }
  func.func @transform_17(%arg0: i32, %arg1: i32) -> (i32, i32, i32, i32) {
    %c0_i32 = arith.constant 0 : i32
    %c0_i32_0 = arith.constant 0 : i32
    %c0_i32_1 = arith.constant 0 : i32
    %c0_i32_2 = arith.constant 0 : i32
    return %arg1, %c0_i32, %c0_i32_0, %c0_i32_1 : i32, i32, i32, i32
  }
  func.func @transform_18(%arg0: i32, %arg1: i32) -> (i32, i32, i32) {
    %c0_i32 = arith.constant 0 : i32
    %c0_i32_0 = arith.constant 0 : i32
    %c0_i32_1 = arith.constant 0 : i32
    return %arg1, %c0_i32, %c0_i32_0 : i32, i32, i32
  }
  func.func @transform_19(%arg0: i32, %arg1: i32) -> (i32, i32, i32, i32) {
    %c0_i32 = arith.constant 0 : i32
    %c0_i32_0 = arith.constant 0 : i32
    %c0_i32_1 = arith.constant 0 : i32
    %c0_i32_2 = arith.constant 0 : i32
    return %arg1, %c0_i32, %c0_i32_0, %c0_i32_1 : i32, i32, i32, i32
  }
  func.func @transform_20(%arg0: i32, %arg1: i32) -> (i32, i32, i32) {
    %c0_i32 = arith.constant 0 : i32
    %c0_i32_0 = arith.constant 0 : i32
    %c0_i32_1 = arith.constant 0 : i32
    return %arg1, %c0_i32, %c0_i32_0 : i32, i32, i32
  }
  func.func @transform_21(%arg0: i32, %arg1: i32) -> (i32, i32) {
    %c0_i32 = arith.constant 0 : i32
    %c0_i32_0 = arith.constant 0 : i32
    %c0_i32_1 = arith.constant 0 : i32
    return %c0_i32, %c0_i32_0 : i32, i32
  }
  func.func @transform_22(%arg0: i32, %arg1: i32) -> (i32, i32) {
    %c0_i32 = arith.constant 0 : i32
    %c0_i32_0 = arith.constant 0 : i32
    %c0_i32_1 = arith.constant 0 : i32
    return %c0_i32, %c0_i32_0 : i32, i32
  }
  func.func @transform_23(%arg0: i32, %arg1: i32) -> (i32, i32, i32) {
    %c0_i32 = arith.constant 0 : i32
    %c0_i32_0 = arith.constant 0 : i32
    %c0_i32_1 = arith.constant 0 : i32
    return %arg0, %c0_i32, %c0_i32_0 : i32, i32, i32
  }
}

</mosaic_0001>

<bundles_post_ra>
// kernel: content_encoder_forward.2
= control target key start
LH: loop header
LB: loop body
LE: loop exit
PB: predicated region body
PF: predicated region fallthrough
CT: control target
= control target key end

     0   :  { %16 = vsyncpa [#allocation3], 0  ;;  %s2452_s0 = inlined_call_operand.vmem [shape: f32[2,32,32], index: 0, kind: input, shape index: {}]   ;;  %s2453_s1 = inlined_call_operand.vmem [shape: f32[2,32,1], index: 1, kind: input, shape index: {}]   ;;  %s2454_s2 = inlined_call_operand.vmem [shape: f32[2,32,1], index: 2, kind: input, shape index: {}]   ;;  %s2455_s3 = inlined_call_operand.vmem [shape: f32[2,64], index: 3, kind: input, shape index: {}]   ;;  %s2456_s4 = inlined_call_operand.vmem [shape: bf16[5,32,32], index: 4, kind: input, shape index: {}]   ;;  %s2457_s5 = inlined_call_operand.vmem [shape: f32[1,32], index: 5, kind: input, shape index: {}]   ;;  %s2458_s6 = inlined_call_operand.vmem [shape: bf16[5,32,64], index: 6, kind: input, shape index: {}]   ;;  %s2459_s7 = inlined_call_operand.vmem [shape: f32[1,64], index: 7, kind: input, shape index: {}]   ;;  %s2460_s8 = inlined_call_operand.vmem [shape: bf16[1,32,64], index: 8, kind: input, shape index: {}]   ;;  %s2461_s9 = inlined_call_operand.hbm [shape: f32[2,32,64], index: 9, kind: output, shape index: {0}]   ;;  %s2462_s10 = inlined_call_operand.vmem [shape: f32[2,32,64], index: 10, kind: output, shape index: {1}]  }
   0x1   :  { %18 = vsyncpa [#allocation3 + $0x1], 0  ;;  %s2071_s13 = smov 0   ;;  %s2073_s14 = smov 0  }
   0x2   :  { %s2075_s15 = smov 0   ;;  %s2077_s16 = smov 0  }
   0x3 LB: > { %s2092_s17 = sadd.s32 4294967295, %s2010_s16   ;;  %s1659_s18 = sadd.s32 4294967294, %s2010_s16   ;;  %s2010_s16 = sphi %s2077_s16, %s2468_s16   ;;  %s2006_s15 = sphi %s2075_s15, %s2467_s15   ;;  %s2002_s14 = sphi %s2073_s14, %s2466_s14   ;;  %s1998_s13 = sphi %s2071_s13, %s2465_s13  }
   0x4   : > { %s2096_s19 = sadd.s32 1, %s2010_s16   ;;  %s235_s20 = sadd.s32 1, %s2006_s15 }
   0x5   : > { %s232_s21 = ssub.s32 %s2010_s16, %s2096_s19  ;;  %p245_p0 = scmp.ne.s32.totalorder %s2006_s15, %s2002_s14 }
   0x6   : > { %p233_p1 = scmp.eq.s32.totalorder %s232_s21, 0  ;;  %p246_p2 = scmp.eq.s32.totalorder %s2092_s17, 1 }
   0x7   : > { %p251_p3 = scmp.ne.s32.totalorder %s2002_s14, %s1998_s13  ;;  %p252_p4 = scmp.eq.s32.totalorder %s1659_s18, 1 }
   0x8   : > { %s2107_s22 = scalar_select %p233_p1, %s2006_s15, %s235_s20  }
   0x9   : > { %p2109_p5 = por %p246_p2, %p245_p0  ;;  %p2113_p6 = por %p252_p4, %p251_p3 }
   0xa   : > { %p1662_p7 = scmp.ge.s32.totalorder %s2010_s16, 1  ;;  %p338_p8 = scmp.lt.s32.totalorder %s2010_s16, 3 }
   0xc   : > { %p339_p9 = pnand %p1662_p7, %p338_p8 }
   0xd   : > { %v1926_v0 = vld [vmem:[%s2456_s4] sm:$0xff] (!%p339_p9)   ;;  %p391_p10 = scmp.lt.s32.totalorder (!%p339_p9), %s2092_s17, 1  ;;  %v1927_v1 = vld [vmem:[%s2456_s4 + $0x10] sm:$0xff] (!%p339_p9)   ;;  %v1928_v2 = vld [vmem:[%s2456_s4 + $0x8] sm:$0xff] (!%p339_p9)   ;;  %vm463_vm0 = vcmask (!%p339_p9), 261120   ;;  %v2012_v30 = vmov (!%p339_p9), 0   ;;  %v523_v43 = vlaneseq (!%p339_p9) }
   0xe   : > { %342 = sbr.rel (%p339_p9) target bundleno = 539 (0x21b), region = 56  ;;  %1774 = vmatprep.subr.bf16.mxu0 (!%p339_p9), %v1926_v0  ;;  %1782 = vmatprep.subr.bf16.mxu1 (!%p339_p9), %v1927_v1  ;;  %v1929_v3 = vld [vmem:[%s2456_s4 + $0x18] sm:$0xff] (!%p339_p9)   ;;  %v1930_v4 = vld [vmem:[%s2456_s4 + $0x20] sm:$0xff] (!%p339_p9)   ;;  %v1931_v5 = vld [vmem:[%s2456_s4 + $0x30] sm:$0xff] (!%p339_p9)   ;;  %s1729_s29 = sshll.u32 (!%p339_p9), %s2092_s17, 9 }
   0xf   : > { %1775 = vmatpush3.bf16.msra.mxu0 (!%p339_p9), %v1926_v0  ;;  %1783 = vmatpush3.bf16.msra.mxu1 (!%p339_p9), %v1927_v1  ;;  %v1932_v19 = vld [vmem:[%s2456_s4 + $0x28] sm:$0xff] (!%p339_p9)   ;;  %v1933_v21 = vld [vmem:[%s2456_s4 + $0x38] sm:$0xff] (!%p339_p9)   ;;  %v1934_v22 = vld [vmem:[%s2456_s4 + $0x40] sm:$0xff] (!%p339_p9)   ;;  %v2219_v44 = vshrl.u32 (!%p339_p9), %v523_v43, 7  ;;  %s2394_s27 = scalar_lea.hbm (!%p339_p9), %s2461_s9, %s1729_s29  ;;  %s2013_s29 = smov (!%p339_p9), [#allocation2]  }
  0x10   : > { %1776 = vmatprep.subr.bf16.mxu0 (!%p339_p9), %v1928_v2  ;;  %1784 = vmatprep.subr.bf16.mxu1 (!%p339_p9), %v1929_v3  ;;  %v1935_v23 = vld [vmem:[%s2456_s4 + $0x48] sm:$0xff] (!%p339_p9)   ;;  %v1936_v24 = vld [vmem:[%s2458_s6] sm:$0xff] (!%p339_p9)   ;;  %v1937_v25 = vld [vmem:[%s2458_s6 + $0x10] sm:$0xff] (!%p339_p9)   ;;  %s1952_s12 = sshll.u32 (!%p339_p9), %s2013_s29, 4  ;;  %s1953_s12 = int_to_ptr.vmem [resolvable:$false] %s1952_s12 }
  0x11   : > { %v1938_v26 = vld [vmem:[%s2458_s6 + $0x8] sm:$0xff] (!%p339_p9)   ;;  %v1939_v27 = vld [vmem:[%s2458_s6 + $0x18] sm:$0xff] (!%p339_p9)   ;;  %v2202_v28 = vld [vmem:[%s2458_s6 + $0x20] sm:$0xff] (!%p339_p9)   ;;  %1925 = vset.pattern.permute.xlu1 (!%p339_p9), %v2012_v30  ;;  %1924 = vset.pattern.permute.xlu0 (!%p339_p9), %v2012_v30  ;;  %v2222_v45 = vadd.s32 (!%p339_p9), 4294967294, %v2219_v44  ;;  %v2225_v46 = vadd.s32 (!%p339_p9), 4294967295, %v2219_v44  ;;  %v532_v49 = vadd.s32 (!%p339_p9), 24, %v2219_v44 }
  0x12   : > { %v2207_v29 = vld [vmem:[%s2458_s6 + $0x30] sm:$0xff] (!%p339_p9)   ;;  %vm525_vm5 = vcmp.lt.s32.totalorder (!%p339_p9), %v2219_v44, 2  ;;  %vm622_vm6 = vcmp.lt.s32.totalorder (!%p339_p9), %v2219_v44, 1  ;;  %vm781_vm9 = vcmp.lt.s32.totalorder (!%p339_p9), %v2219_v44, 7  ;;  %vm875_vm11 = vcmp.lt.s32.totalorder (!%p339_p9), %v2219_v44, 6  ;;  %s1954_s21 = scalar_lea.vmem (!%p339_p9), %s1953_s12, 1024 }
  0x13   : > { %1777 = vmatpush3.bf16.msra.mxu0 (!%p339_p9), %v1928_v2  ;;  %1785 = vmatpush3.bf16.msra.mxu1 (!%p339_p9), %v1929_v3  ;;  %vm537_vm7 = vcmp.ge.s32.totalorder (!%p339_p9), %v2222_v45, 0  ;;  %vm631_vm8 = vcmp.ge.s32.totalorder (!%p339_p9), %v2225_v46, 0  ;;  %v2232_v0 = vadd.s32 (!%p339_p9), 1, %v532_v49 }
  0x14   : > { %1790 = vmatprep.subr.bf16.mxu0 (!%p339_p9), %v1930_v4  ;;  %1798 = vmatprep.subr.bf16.mxu1 (!%p339_p9), %v1931_v5 }
  0x15   : > { %s392_s11 = scalar_select %p391_p10, %s2092_s17, 1  ;;  %vm797_vm10 = vcmp.lt.s32.totalorder %v2232_v0, 32 }
  0x17   : > { %s2133_s20 = sshll.u32 %s392_s11, 5 }
  0x18   : > { %s395_s28 = scalar_lea.vmem %s2452_s0, %s2133_s20  ;;  %s405_s18 = scalar_lea.vmem %s2454_s2, %s2133_s20 }
  0x19   : > { %v2145_v6 = vld [vmem:[%s395_s28] sm:$0xff]  ;;  %v2147_v7 = vld [vmem:[%s395_s28 + $0x8] sm:$0xff]  ;;  %v2149_v8 = vld [vmem:[%s395_s28 + $0x10] sm:$0xff]  ;;  %s400_s26 = scalar_lea.vmem %s2453_s1, %s2133_s20  ;;  %s2388_s25 = scalar_lea.vmem %s2462_s10, %s2133_s20 }
  0x1a   : > { %vm416_vm1 = vcmp.ge.f32.partialorder %v2145_v6, 0.0  ;;  %vm417_vm2 = vcmp.ge.f32.partialorder %v2147_v7, 0.0  ;;  %v420_v9 = vmul.f32 0.2, %v2145_v6  ;;  %v421_v10 = vmul.f32 0.2, %v2147_v7 }
  0x1b   : > { %v2155_v11 = vld [vmem:[%s395_s28 + $0x18] sm:$0xff]  ;;  %vm418_vm3 = vcmp.ge.f32.partialorder %v2149_v8, 0.0  ;;  %v422_v12 = vmul.f32 0.2, %v2149_v8  ;;  %v1450_v31 = vld [vmem:[%s405_s18 + $0x10] sm:$0xff]  ;;  %v1448_v32 = vld [vmem:[%s405_s18] sm:$0xff] }
  0x1c   : > { %v424_v13 = vsel %vm416_vm1, %v2145_v6, %v420_v9  ;;  %v425_v14 = vsel %vm417_vm2, %v2147_v7, %v421_v10  ;;  %vm419_vm4 = vcmp.ge.f32.partialorder %v2155_v11, 0.0  ;;  %v423_v15 = vmul.f32 0.2, %v2155_v11  ;;  %1465 = vperm.xlu1 %1925, %v1450_v31   ;;  %1455 = vperm.xlu0 %1924, %v1448_v32   ;;  %v1451_v33 = vld [vmem:[%s405_s18 + $0x18] sm:$0xff]  ;;  %v1449_v34 = vld [vmem:[%s405_s18 + $0x8] sm:$0xff]  ;;  %v1415_v40 = vld [vmem:[%s400_s26] sm:$0xff] }
  0x1d   : > { %v449_v16 = vpack.c.bf16 %v425_v14, %v424_v13  ;;  %v426_v17 = vsel %vm418_vm3, %v2149_v8, %v422_v12  ;;  %v1481_v35 = vsub.f32 1.0, %v1448_v32  ;;  %v1482_v36 = vsub.f32 1.0, %v1449_v34  ;;  %v1416_v39 = vld [vmem:[%s400_s26 + $0x8] sm:$0xff]  ;;  %v1418_v41 = vld [vmem:[%s400_s26 + $0x18] sm:$0xff]  ;;  %v1417_v42 = vld [vmem:[%s400_s26 + $0x10] sm:$0xff]  ;;  %s381_s18 = sand.u32 1, %s2002_s14  }
  0x1e   : > { %v427_v18 = vsel %vm419_vm4, %v2155_v11, %v423_v15  ;;  %v1483_v37 = vsub.f32 1.0, %v1450_v31  ;;  %v1484_v38 = vsub.f32 1.0, %v1451_v33  ;;  %s1663_s28 = sshll.u32 %s381_s18, 5  ;;  %s2409_s20 = scalar_lea.sflag [#allocation3], %s381_s18 }
  0x1f   : > { %1778 = vmatprep.mubr.msk.bf16.mxu0 %vm463_vm0, %v449_v16  ;;  %1786 = vmatprep.mubr.msk.bf16.mxu1 %vm463_vm0, %v449_v16  ;;  %v450_v20 = vpack.c.bf16 %v427_v18, %v426_v17  ;;  %s383_s30 = scalar_lea.vmem [#allocation2], %s1663_s28 }
  0x20   : > { %1470 = vperm.xlu1 %1925, %v1451_v33   ;;  %1460 = vperm.xlu0 %1924, %v1449_v34   ;;  %s1545_s11 = sshll.u32 %s383_s30, 4  ;;  %s2396_s11 = int_to_ptr.vmem [resolvable:$true] %s1545_s11 }
  0x21   : > { %1779 = vmatmul.mubr.msk.bf16.vlgmr.msra.gmra.mrb[0].mxu0 %vm463_vm0, %v450_v20  ;;  %1787 = vmatmul.mubr.msk.bf16.vlgmr.msra.gmra.mrb[0].mxu1 %vm463_vm0, %v450_v20  ;;  %s1948_s28 = scalar_lea.vmem %s2396_s11, 512  ;;  %p1955_p0 = scmp.lt.s32.totalorder %s2396_s11, %s1953_s12 }
  0x22   : > { %1791 = vmatpush3.bf16.msra.mxu0 %v1930_v4  ;;  %1799 = vmatpush3.bf16.msra.mxu1 %v1931_v5  ;;  %p1949_p11 = scmp.ne.s32.totalorder %s2396_s11, %s1948_s28  ;;  %p1956_p1 = scmp.lt.s32.totalorder %s1954_s21, %s1948_s28 }
  0x23   : > { %1792 = vmatprep.subr.bf16.mxu0 %v1932_v19  ;;  %1800 = vmatprep.subr.bf16.mxu1 %v1933_v21 }
  0x24   : > { %1794 = vmatprep.mubr.msk.bf16.mxu0 %vm463_vm0, %v449_v16  ;;  %1802 = vmatprep.mubr.msk.bf16.mxu1 %vm463_vm0, %v449_v16  ;;  %p1950_p12 = pnand %p1949_p11, %p2109_p5  ;;  %p1957_p2 = por %p1956_p1, %p1955_p0 }
  0x25   : > { %1493 = vperm.xlu1 %1925, %v1482_v36   ;;  %1488 = vperm.xlu0 %1924, %v1481_v35  }
  0x26   : > { %1793 = vmatpush3.bf16.msra.mxu0 %v1932_v19  ;;  %1801 = vmatpush3.bf16.msra.mxu1 %v1933_v21  ;;  %p1951_p13 = pneg %p1950_p12 }
  0x27   : > { %1806 = vmatprep.subr.bf16.mxu0 %v1934_v22  ;;  %1814 = vmatprep.subr.bf16.mxu1 %v1936_v24 }
  0x28   : > { %p1958_p3 = pnand %p1957_p2, %p1951_p13 }
  0x29   : > { %1795 = vmatmul.mubr.msk.bf16.vlgmr.msra.gmra.mrb[4].mxu0 %vm463_vm0, %v450_v20  ;;  %1803 = vmatmul.mubr.msk.bf16.vlgmr.msra.gmra.mrb[4].mxu1 %vm463_vm0, %v450_v20 }
  0x2a   : > { %1807 = vmatpush3.bf16.msra.mxu0 %v1934_v22  ;;  %1810 = vmatprep.mubr.msk.bf16.mxu0 %vm463_vm0, %v449_v16 }
  0x2b   : > { %1808 = vmatprep.subr.bf16.mxu0 %v1935_v23  ;;  %1815 = vmatpush3.bf16.msra.mxu1 %v1936_v24 }
  0x2c   : > { %1816 = vmatprep.subr.bf16.mxu1 %v1938_v26  ;;  %1503 = vperm.xlu1 %1925, %v1484_v38  }
  0x2d   : > { %1498 = vperm.xlu0 %1924, %v1483_v37  }
  0x2e   : > { %1809 = vmatpush3.bf16.msra.mxu0 %v1935_v23 }
  0x2f   : > { %1822 = vmatprep.subr.bf16.mxu0 %v1937_v25  ;;  %1817 = vmatpush3.bf16.msra.mxu1 %v1938_v26 }
  0x30   : > { %1830 = vmatprep.subr.bf16.mxu1 %v2202_v28  ;;  %1426 = vperm.xlu1 %1925, %v1416_v39  }
  0x31   : > { %1811 = vmatmul.mubr.msk.bf16.vlgmr.msra.gmra.mrb[8].mxu0 %vm463_vm0, %v450_v20  ;;  %1421 = vperm.xlu0 %1924, %v1415_v40  }
  0x32   : > { %1823 = vmatpush3.bf16.msra.mxu0 %v1937_v25 }
  0x33   : > { %1824 = vmatprep.subr.bf16.mxu0 %v1939_v27 }
  0x34   : > { %1436 = vperm.xlu1 %1925, %v1418_v41  }
  0x35   : > { %1431 = vperm.xlu0 %1924, %v1417_v42  }
  0x36   : > { %1825 = vmatpush3.bf16.msra.mxu0 %v1939_v27 }
  0x37   : > { %1838 = vmatprep.subr.bf16.mxu0 %v2207_v29 }
  0xf4   : > { %v1780_v47 = vpop.f32.mrb[0].mxu0  ;;  %v1788_v48 = vpop.f32.mrb[0].mxu1 }
  0xf5   : > { %v620_v50 = vrot.slane %v1788_v48, 7  ;;  %v504_v51 = vpop.f32.mrb[1].mxu0  ;;  %v603_v52 = vpop.f32.mrb[1].mxu1  ;;  %v521_v57 = vrot.slane %v1780_v47, 6 }
  0xf6   : > { %v519_v53 = vrot.slane %v504_v51, 6  ;;  %v618_v54 = vrot.slane %v603_v52, 7  ;;  %v1781_v55 = vpop.f32.mrb[2].mxu0  ;;  %v1789_v56 = vpop.f32.mrb[2].mxu1 }
  0xf7   : > { %v522_v58 = vrot.slane %v1781_v55, 6  ;;  %v621_v59 = vrot.slane %v1789_v56, 7  ;;  %v507_v60 = vpop.f32.mrb[3].mxu0  ;;  %v606_v61 = vpop.f32.mrb[3].mxu1 }
  0xf8   : > { %v520_v62 = vrot.slane %v507_v60, 6  ;;  %v619_v63 = vrot.slane %v606_v61, 7 }
  0xf9   : > { %v529_v1 = vsel %vm525_vm5, %v522_v58, %v519_v53  ;;  %v626_v2 = vsel %vm622_vm6, %v621_v59, %v618_v54  ;;  %v526_v3 = vsel %vm525_vm5, %v521_v57, %v522_v58  ;;  %v623_v4 = vsel %vm622_vm6, %v620_v50, %v621_v59  ;;  %v1692_v59 = vld [vmem:[%s2457_s5] ss:$0 sm:$0xff] }
  0xfa   : > { %v527_v5 = vsel %vm525_vm5, %v520_v62, %v521_v57  ;;  %v624_v9 = vsel %vm622_vm6, %v619_v63, %v620_v50  ;;  %v549_v10 = vsel %vm537_vm7, %v529_v1, 0.0  ;;  %v643_v12 = vsel %vm631_vm8, %v626_v2, 0.0 }
  0xfb   : > { %v649_v13 = vadd.f32 %v624_v9, %v527_v5  ;;  %v647_v14 = vadd.f32 %v643_v12, %v549_v10  ;;  %v650_v15 = vadd.f32 %v623_v4, %v526_v3  ;;  %v528_v16 = vsel %vm525_vm5, %v519_v53, %v520_v62 }
  0xfc   : > { %v1796_v17 = vpop.f32.mrb[4].mxu0  ;;  %v1804_v18 = vpop.f32.mrb[4].mxu1  ;;  %v625_v19 = vsel %vm622_vm6, %v618_v54, %v619_v63  ;;  %v2266_v50 = vadd.s32 2, %v532_v49 }
  0xfd   : > { %v714_v20 = vadd.f32 %v1796_v17, %v649_v13  ;;  %v779_v21 = vrot.slane %v1804_v18, 1  ;;  %v697_v22 = vpop.f32.mrb[5].mxu0  ;;  %v762_v23 = vpop.f32.mrb[5].mxu1  ;;  %v648_v24 = vadd.f32 %v625_v19, %v528_v16 }
  0xfe   : > { %v712_v25 = vadd.f32 %v697_v22, %v647_v14  ;;  %v777_v26 = vrot.slane %v762_v23, 1  ;;  %v1797_v27 = vpop.f32.mrb[6].mxu0  ;;  %v1805_v30 = vpop.f32.mrb[6].mxu1  ;;  %vm891_vm12 = vcmp.lt.s32.totalorder %v2266_v50, 32  ;;  %v1942_v23 = vld [vmem:[%s2458_s6 + $0x28] sm:$0xff]  }
  0xff   : > { %v715_v31 = vadd.f32 %v1797_v27, %v650_v15  ;;  %v780_v32 = vrot.slane %v1805_v30, 1  ;;  %v700_v33 = vpop.f32.mrb[7].mxu0  ;;  %v765_v34 = vpop.f32.mrb[7].mxu1  ;;  %v1947_v27 = vld [vmem:[%s2460_s8 + $0x8] sm:$0xff]   ;;  %v1339_v30 = vpack.c.bf16 %v2155_v11, %v2149_v8 }
 0x100   : > { %v713_v35 = vadd.f32 %v700_v33, %v648_v24  ;;  %v778_v36 = vrot.slane %v765_v34, 1  ;;  %v1943_v24 = vld [vmem:[%s2458_s6 + $0x38] sm:$0xff]  }
 0x101   : > { %v782_v37 = vsel %vm781_vm9, %v779_v21, %v780_v32  ;;  %v785_v38 = vsel %vm781_vm9, %v780_v32, %v777_v26 }
 0x102   : > { %v805_v39 = vsel %vm797_vm10, %v785_v38, 0.0  ;;  %v808_v40 = vadd.f32 %v782_v37, %v714_v20  ;;  %v783_v41 = vsel %vm781_vm9, %v778_v36, %v779_v21  ;;  %v784_v42 = vsel %vm781_vm9, %v777_v26, %v778_v36  ;;  %v1945_v26 = vld [vmem:[%s2458_s6 + $0x48] sm:$0xff]  }
 0x103   : > { %v809_v43 = vadd.f32 %v805_v39, %v715_v31  ;;  %v806_v47 = vadd.f32 %v784_v42, %v712_v25  ;;  %v807_v48 = vadd.f32 %v783_v41, %v713_v35  ;;  %v1944_v25 = vld [vmem:[%s2458_s6 + $0x40] sm:$0xff]   ;;  %v2319_v31 = vpop.permute.xlu0 %1455 }
 0x104   : > { %v1812_v51 = vpop.f32.mrb[8].mxu0 }
 0x105   : > { %v856_v52 = vpop.f32.mrb[9].mxu0  ;;  %v873_v55 = vrot.slane %v1812_v51, 2 }
 0x106   : > { %v871_v53 = vrot.slane %v856_v52, 2  ;;  %v1813_v54 = vpop.f32.mrb[10].mxu0 }
 0x107   : > { %v874_v56 = vrot.slane %v1813_v54, 2  ;;  %v859_v57 = vpop.f32.mrb[11].mxu0 }
 0x108   : > { %v872_v58 = vrot.slane %v859_v57, 2 }
 0x109   : > { %v876_v49 = vsel %vm875_vm11, %v873_v55, %v874_v56  ;;  %v879_v60 = vsel %vm875_vm11, %v874_v56, %v871_v53 }
 0x10a   : > { %v899_v61 = vsel %vm891_vm12, %v879_v60, 0.0  ;;  %v902_v62 = vadd.f32 %v876_v49, %v808_v40  ;;  %v877_v63 = vsel %vm875_vm11, %v872_v58, %v873_v55  ;;  %v878_v1 = vsel %vm875_vm11, %v871_v53, %v872_v58 }
 0x10b   : > { %v903_v2 = vadd.f32 %v899_v61, %v809_v43  ;;  %v900_v3 = vadd.f32 %v878_v1, %v806_v47  ;;  %v901_v4 = vadd.f32 %v877_v63, %v807_v48  ;;  %v2323_v43 = vpop.permute.xlu0 %1460 }
 0x10c   : > { %v912_v5 = vadd.f32 %v1692_v59, %v902_v62 }
 0x10d   : > { %v913_v9 = vadd.f32 %v1692_v59, %v903_v2  ;;  %v910_v10 = vadd.f32 %v1692_v59, %v900_v3  ;;  %v911_v12 = vadd.f32 %v1692_v59, %v901_v4  ;;  %v1713_v3 = vld [vmem:[%s2459_s7] ss:$0 sm:$0xff] }
 0x10e   : > { %vm916_vm13 = vcmp.ge.f32.partialorder %v912_v5, 0.0  ;;  %v920_v13 = vmul.f32 0.2, %v912_v5 }
 0x10f   : > { %vm917_vm14 = vcmp.ge.f32.partialorder %v913_v9, 0.0  ;;  %v921_v14 = vmul.f32 0.2, %v913_v9  ;;  %vm914_vm15 = vcmp.ge.f32.partialorder %v910_v10, 0.0  ;;  %vm915_vm1 = vcmp.ge.f32.partialorder %v911_v12, 0.0  ;;  %v1489_v2 = vpop.permute.xlu0 %1488 }
 0x110   : > { %v924_v15 = vsel %vm916_vm13, %v912_v5, %v920_v13  ;;  %v918_v16 = vmul.f32 0.2, %v910_v10  ;;  %v919_v17 = vmul.f32 0.2, %v911_v12 }
 0x111   : > { %v925_v18 = vsel %vm917_vm14, %v913_v9, %v921_v14 }
 0x112   : > { %v922_v19 = vsel %vm914_vm15, %v910_v10, %v918_v16  ;;  %v923_v20 = vsel %vm915_vm1, %v911_v12, %v919_v17  ;;  %v948_v21 = vpack.c.bf16 %v925_v18, %v924_v15 }
 0x113   : > { %v947_v22 = vpack.c.bf16 %v923_v20, %v922_v19 }
 0x115   : > { %1818 = vmatprep.mubr.msk.bf16.mxu1 %vm463_vm0, %v947_v22  ;;  %1826 = vmatprep.mubr.msk.bf16.mxu0 %vm463_vm0, %v947_v22 }
 0x116   : > { %1819 = vmatmul.mubr.msk.bf16.vlgmr.msra.gmra.mrb[8].mxu1 %vm463_vm0, %v948_v21  ;;  %1827 = vmatmul.mubr.msk.bf16.vlgmr.msra.gmra.mrb[12].mxu0 %vm463_vm0, %v948_v21 }
 0x117   : > { %1831 = vmatpush3.bf16.msra.mxu1 %v2202_v28  ;;  %1834 = vmatprep.mubr.msk.bf16.mxu1 %vm463_vm0, %v947_v22  ;;  %v1946_v28 = vld [vmem:[%s2460_s8] sm:$0xff]  }
 0x118   : > { %1839 = vmatpush3.bf16.msra.mxu0 %v2207_v29  ;;  %1842 = vmatprep.mubr.msk.bf16.mxu0 %vm463_vm0, %v947_v22  ;;  %v1338_v29 = vpack.c.bf16 %v2147_v7, %v2145_v6  ;;  %v2321_v6 = vpop.permute.xlu1 %1465 }
 0x119   : > { %1832 = vmatprep.subr.bf16.mxu1 %v1942_v23  ;;  %1840 = vmatprep.subr.bf16.mxu0 %v1943_v24 }
 0x11b   : > { %1833 = vmatpush3.bf16.msra.mxu1 %v1942_v23 }
 0x11c   : > { %1841 = vmatpush3.bf16.msra.mxu0 %v1943_v24  ;;  %1846 = vmatprep.subr.bf16.mxu1 %v1944_v25  ;;  %v2333_v55 = vpop.permute.xlu1 %1470 }
 0x11e   : > { %1835 = vmatmul.mubr.msk.bf16.vlgmr.msra.gmra.mrb[12].mxu1 %vm463_vm0, %v948_v21 }
 0x11f   : > { %1843 = vmatmul.mubr.msk.bf16.vlgmr.msra.gmra.mrb[16].mxu0 %vm463_vm0, %v948_v21  ;;  %1847 = vmatpush3.bf16.msra.mxu1 %v1944_v25  ;;  %v1499_v25 = vpop.permute.xlu0 %1498 }
 0x120   : > { %1850 = vmatprep.mubr.msk.bf16.mxu1 %vm463_vm0, %v947_v22  ;;  %1848 = vmatprep.subr.bf16.mxu1 %v1945_v26  ;;  %v1494_v9 = vpop.permute.xlu1 %1493 }
 0x123   : > { %1849 = vmatpush3.bf16.msra.mxu1 %v1945_v26 }
 0x124   : > { %1854 = vmatprep.subr.bf16.mxu1 %v1946_v28 }
 0x126   : > { %1851 = vmatmul.mubr.msk.bf16.vlgmr.msra.gmra.mrb[16].mxu1 %vm463_vm0, %v948_v21 }
 0x127   : > { %1855 = vmatpush3.bf16.msra.mxu1 %v1946_v28  ;;  %1858 = vmatprep.mubr.msk.bf16.mxu1 %vm463_vm0, %v1338_v29 }
 0x128   : > { %1856 = vmatprep.subr.bf16.mxu1 %v1947_v27 }
 0x12b   : > { %1857 = vmatpush3.bf16.msra.mxu1 %v1947_v27 }
 0x12e   : > { %1859 = vmatmul.mubr.msk.bf16.vlgmr.msra.gmra.mrb[12].mxu1 %vm463_vm0, %v1339_v30  ;;  %vm1443_vm0 = vcmask 523264  }
 0x1e9   : > { %v1820_v7 = vpop.f32.mrb[8].mxu1  ;;  %v1828_v32 = vpop.f32.mrb[12].mxu0 }
 0x1ea   : > { %v1001_v33 = vpop.f32.mrb[9].mxu1  ;;  %v1078_v34 = vpop.f32.mrb[13].mxu0  ;;  %v1018_v39 = vrot.slane %v1820_v7, 6  ;;  %v1095_v40 = vrot.slane %v1828_v32, 7 }
 0x1eb   : > { %v1016_v35 = vrot.slane %v1001_v33, 6  ;;  %v1093_v36 = vrot.slane %v1078_v34, 7  ;;  %v1821_v37 = vpop.f32.mrb[10].mxu1  ;;  %v1829_v38 = vpop.f32.mrb[14].mxu0 }
 0x1ec   : > { %v1019_v41 = vrot.slane %v1821_v37, 6  ;;  %v1096_v42 = vrot.slane %v1829_v38, 7  ;;  %v1004_v8 = vpop.f32.mrb[11].mxu1  ;;  %v1081_v11 = vpop.f32.mrb[15].mxu0 }
 0x1ed   : > { %v1017_v47 = vrot.slane %v1004_v8, 6  ;;  %v1094_v48 = vrot.slane %v1081_v11, 7  ;;  %v1504_v7 = vpop.permute.xlu1 %1503 }
 0x1ee   : > { %v1020_v51 = vsel %vm525_vm5, %v1018_v39, %v1019_v41  ;;  %v1023_v52 = vsel %vm525_vm5, %v1019_v41, %v1016_v35  ;;  %v1097_v53 = vsel %vm622_vm6, %v1095_v40, %v1096_v42  ;;  %v1100_v54 = vsel %vm622_vm6, %v1096_v42, %v1093_v36  ;;  %v1422_v41 = vpop.permute.xlu0 %1421 }
 0x1ef   : > { %v1024_v56 = vsel %vm537_vm7, %v1023_v52, 0.0  ;;  %v1101_v57 = vsel %vm631_vm8, %v1100_v54, 0.0  ;;  %v1108_v58 = vadd.f32 %v1097_v53, %v1020_v51  ;;  %v1021_v59 = vsel %vm525_vm5, %v1017_v47, %v1018_v39  ;;  %v1718_v39 = vld [vmem:[%s2455_s3 + $0x1] ss:$0 sm:$0xff] }
 0x1f0   : > { %v1105_v49 = vadd.f32 %v1101_v57, %v1024_v56  ;;  %v1022_v60 = vsel %vm525_vm5, %v1016_v35, %v1017_v47  ;;  %v1098_v61 = vsel %vm622_vm6, %v1094_v48, %v1095_v40  ;;  %v1099_v62 = vsel %vm622_vm6, %v1093_v36, %v1094_v48  ;;  %v1719_v40 = vld [vmem:[%s2455_s3] ss:$0 sm:$0xff] }
 0x1f1   : > { %v1106_v63 = vadd.f32 %v1099_v62, %v1022_v60  ;;  %v1107_v45 = vadd.f32 %v1098_v61, %v1021_v59  ;;  %v1870_v16 = vadd.f32 %v1713_v3, %v1108_v58  ;;  %v1427_v53 = vpop.permute.xlu1 %1426  ;;  %v1479_v56 = vmul.f32 %v1718_v39, %v2321_v6 }
 0x1f2   : > { %v1844_v1 = vpop.f32.mrb[16].mxu0  ;;  %v1866_v19 = vadd.f32 %v1713_v3, %v1105_v49  ;;  %v1512_v57 = vmul.f32 %v1719_v40, %v1499_v25  ;;  %v1477_v49 = vmul.f32 %v1718_v39, %v2319_v31  ;;  %v1480_v50 = vmul.f32 %v1718_v39, %v2333_v55  ;;  %v1432_v6 = vpop.permute.xlu0 %1431 }
 0x1f3   : > { %v1220_v46 = vpop.f32.mrb[17].mxu0  ;;  %v1237_v10 = vrot.slane %v1844_v1, 1  ;;  %v1862_v15 = vadd.f32 %v1713_v3, %v1107_v45  ;;  %v1874_v20 = vadd.f32 %v1713_v3, %v1106_v63  ;;  %v1510_v60 = vmul.f32 %v1719_v40, %v1489_v2 }
 0x1f4   : > { %v1235_v4 = vrot.slane %v1220_v46, 1  ;;  %v1845_v5 = vpop.f32.mrb[18].mxu0  ;;  %v1478_v62 = vmul.f32 %v1718_v39, %v2323_v43  ;;  %v1513_v63 = vmul.f32 %v1719_v40, %v1504_v7  ;;  %v1511_v3 = vmul.f32 %v1719_v40, %v1494_v9 }
 0x1f5   : > { %v1238_v12 = vrot.slane %v1845_v5, 1  ;;  %v1223_v13 = vpop.f32.mrb[19].mxu0  ;;  %v1516_v31 = vadd.f32 %v1512_v57, %v1479_v56 }
 0x1f6   : > { %v1236_v14 = vrot.slane %v1223_v13, 1  ;;  %v1517_v13 = vadd.f32 %v1513_v63, %v1480_v50 }
 0x1f7   : > { %v1239_v17 = vsel %vm781_vm9, %v1237_v10, %v1238_v12  ;;  %v1242_v18 = vsel %vm781_vm9, %v1238_v12, %v1235_v4  ;;  %v1437_v12 = vpop.permute.xlu1 %1436 }
 0x1f8   : > { %v1240_v21 = vsel %vm781_vm9, %v1236_v14, %v1237_v10  ;;  %v1241_v22 = vsel %vm781_vm9, %v1235_v4, %v1236_v14  ;;  %v1863_v23 = vadd.f32 %v1862_v15, %v1239_v17  ;;  %v1246_v24 = vsel %vm797_vm10, %v1242_v18, 0.0 }
 0x1f9   : > { %v1852_v26 = vpop.f32.mrb[16].mxu1  ;;  %v1867_v28 = vadd.f32 %v1866_v19, %v1241_v22  ;;  %v1871_v29 = vadd.f32 %v1870_v16, %v1246_v24  ;;  %v1875_v27 = vadd.f32 %v1874_v20, %v1240_v21  ;;  %v1514_v10 = vadd.f32 %v1510_v60, %v1477_v49 }
 0x1fa   : > { %v1297_v30 = vpop.f32.mrb[17].mxu1  ;;  %v1314_v34 = vrot.slane %v1852_v26, 2  ;;  %v1515_v16 = vadd.f32 %v1511_v3, %v1478_v62 }
 0x1fb   : > { %v1312_v32 = vrot.slane %v1297_v30, 2  ;;  %v1853_v33 = vpop.f32.mrb[18].mxu1 }
 0x1fc   : > { %v1315_v35 = vrot.slane %v1853_v33, 2  ;;  %v1300_v36 = vpop.f32.mrb[19].mxu1 }
 0x1fd   : > { %v1313_v37 = vrot.slane %v1300_v36, 2 }
 0x1fe   : > { %v1316_v38 = vsel %vm875_vm11, %v1314_v34, %v1315_v35  ;;  %v1319_v0 = vsel %vm875_vm11, %v1315_v35, %v1312_v32 }
 0x1ff   : > { %v1864_v42 = vadd.f32 %v1863_v23, %v1316_v38  ;;  %v1318_v8 = vsel %vm875_vm11, %v1312_v32, %v1313_v37  ;;  %v1323_v11 = vsel %vm891_vm12, %v1319_v0, 0.0  ;;  %v1317_v47 = vsel %vm875_vm11, %v1313_v37, %v1314_v34 }
 0x200   : > { %v1868_v48 = vadd.f32 %v1867_v28, %v1318_v8  ;;  %v1872_v51 = vadd.f32 %v1871_v29, %v1323_v11  ;;  %v1876_v52 = vadd.f32 %v1875_v27, %v1317_v47 }
 0x201   : > { %v1860_v54 = vpop.f32.mrb[12].mxu1 }
 0x202   : > { %v1865_v58 = vadd.f32 %v1864_v42, %v1860_v54  ;;  %v1396_v59 = vpop.f32.mrb[13].mxu1 }
 0x203   : > { %v1869_v44 = vadd.f32 %v1868_v48, %v1396_v59  ;;  %v1861_v61 = vpop.f32.mrb[14].mxu1 }
 0x204   : > { %v1413_v45 = vmul.f32 0.70710677, %v1865_v58  ;;  %v1873_v1 = vadd.f32 %v1872_v51, %v1861_v61  ;;  %v1399_v46 = vpop.f32.mrb[15].mxu1 }
 0x205   : > { %v1411_v4 = vmul.f32 0.70710677, %v1869_v44  ;;  %v1877_v5 = vadd.f32 %v1876_v52, %v1399_v46 }
 0x206   : > { %v1441_v55 = vmul.f32 %v1432_v6, %v1413_v45  ;;  %v1414_v2 = vmul.f32 0.70710677, %v1873_v1 }
 0x207   : > { %v1439_v43 = vmul.f32 %v1422_v41, %v1411_v4  ;;  %v1412_v9 = vmul.f32 0.70710677, %v1877_v5 }
 0x208   : > { %1446 = vst.msk [vmem:[%s383_s30 + $0x10] sm:$0xff] %vm1443_vm0, %v1441_v55  ;;  %v1520_v14 = vadd.f32 %v1516_v31, %v1441_v55  ;;  %v1442_v15 = vmul.f32 %v1437_v12, %v1414_v2 }
 0x209   : > { %1444 = vst.msk [vmem:[%s383_s30] sm:$0xff] %vm1443_vm0, %v1439_v43  ;;  %v1518_v17 = vadd.f32 %v1514_v10, %v1439_v43  ;;  %v1440_v18 = vmul.f32 %v1427_v53, %v1412_v9 }
 0x20a   : > { %1524 = vst.msk [vmem:[%s2388_s25 + $0x10] sm:$0xff] %vm1443_vm0, %v1520_v14  ;;  %1447 = vst.msk [vmem:[%s383_s30 + $0x18] sm:$0xff] %vm1443_vm0, %v1442_v15  ;;  %v1521_v19 = vadd.f32 %v1517_v13, %v1442_v15 }
 0x20b   : > { %1522 = vst.msk [vmem:[%s2388_s25] sm:$0xff] %vm1443_vm0, %v1518_v17  ;;  %1445 = vst.msk [vmem:[%s383_s30 + $0x8] sm:$0xff] %vm1443_vm0, %v1440_v18  ;;  %v1519_v20 = vadd.f32 %v1515_v16, %v1440_v18 }
 0x20c   : > { %1525 = vst.msk [vmem:[%s2388_s25 + $0x18] sm:$0xff] %vm1443_vm0, %v1521_v19 }
 0x20d   : > { %1961 = shalt.err (!%p1958_p3)
}
 0x20e   : > { %s1962_s18 = scalar_lea.hbm %s2394_s27, 512  ;;  %s1966_s26 = scalar_lea.hbm %s2461_s9, 1024 }
 0x20f   : > { %p1963_p4 = scmp.ne.s32.totalorder %s2394_s27, %s1962_s18  ;;  %p1967_p9 = scmp.lt.u32.totalorder %s2394_s27, %s2461_s9 }
 0x210   : > { %p1968_p10 = scmp.lt.u32.totalorder %s1966_s26, %s1962_s18  ;;  %p1970_p12 = scmp.lt.u32.totalorder %s1962_s18, %s2394_s27 }
 0x211   : > { %p1964_p7 = pnand %p1963_p4, %p2109_p5 }
 0x212   : > { %p1969_p11 = por %p1968_p10, %p1967_p9 }
 0x213   : > { %p1965_p8 = pneg %p1964_p7 }
 0x214   : > { %p1971_p13 = por %p1970_p12, %p1969_p11 }
 0x216   : > { %p1972_p0 = pnand %p1971_p13, %p1965_p8 }
 0x218   : > { %1975 = shalt.err (!%p1972_p0)
}
 0x219   : > { %s2014_s28 = smov 128   ;;  %s2015_s21 = smov 8   ;;  %1523 = vst.msk [vmem:[%s2388_s25 + $0x8] sm:$0xff] %vm1443_vm0, %v1519_v20 }
 0x21a   : > { %1882 = dma.vmem_to_hbm [thread:$0]  (%p2109_p5), %s2396_s11, 512, %s2394_s27, %s2409_s20, %s2014_s28, %s2014_s28, %s2015_s21  }
 0x21b PF: > { %p1888_p1 = scmp.ge.s32.totalorder %s2010_s16, 2  ;;  %s1563_s18 = sand.u32 1, %s1998_s13  }
 0x21c   : > { %s1564_s30 = scalar_lea.sflag [#allocation3], %s1563_s18 }
 0x21d   : > { %p1885_p2 = pnand %p1888_p1, %p2113_p6 }
 0x21f   : > { %1993 = dma.done.wait (!%p1885_p2), %s1564_s30, 512  }
 0x220   : > { %1995 = vsyncadd (!%p1885_p2), %s1564_s30, 4294966784  ;;  %p21_p3 = scmp.ge.s32.totalorder %s2096_s19, 4   ;;  %s2465_s13 = smov %s2002_s14 }
 0x221   : > { %s2466_s14 = smov %s2006_s15  ;;  %s2467_s15 = smov %s2107_s22 }
 0x222   : > { %s2468_s16 = smov %s2096_s19  ;;  %23 = sbr.rel (!%p21_p3) target bundleno = 3 (0x3), region = 109 }
 0x229   :  { %1577 = vsyncpa [#allocation3], 1 }
 0x22a   :  { %1579 = vsyncpa [#allocation3 + $0x1], 1 }

// kernel: content_encoder_forward.3
= control target key start
LH: loop header
LB: loop body
LE: loop exit
PB: predicated region body
PF: predicated region fallthrough
CT: control target
= control target key end

     0   :  { %s6284_s0 = inlined_call_operand.vmem [shape: f32[2,32,64], index: 0, kind: input, shape index: {}]   ;;  %s6285_s1 = inlined_call_operand.vmem [shape: f32[2,32,1], index: 1, kind: input, shape index: {}]   ;;  %s6286_s2 = inlined_call_operand.vmem [shape: f32[2,32,1], index: 2, kind: input, shape index: {}]   ;;  %s6287_s3 = inlined_call_operand.vmem [shape: f32[2,1,32], index: 3, kind: input, shape index: {}]   ;;  %s6288_s4 = inlined_call_operand.vmem [shape: f32[2,1,16], index: 4, kind: input, shape index: {}]   ;;  %s6289_s5 = inlined_call_operand.vmem [shape: f32[2,16,64], index: 5, kind: input, shape index: {}]   ;;  %s6290_s6 = inlined_call_operand.vmem [shape: f32[3,64], index: 6, kind: input, shape index: {}]   ;;  %s6291_s7 = inlined_call_operand.vmem [shape: f32[1,64], index: 7, kind: input, shape index: {}]   ;;  %s6292_s8 = inlined_call_operand.vmem [shape: bf16[3,64,64], index: 8, kind: input, shape index: {}]   ;;  %s6293_s9 = inlined_call_operand.vmem [shape: f32[1,64], index: 9, kind: input, shape index: {}]   ;;  %s6294_s10 = inlined_call_operand.vmem [shape: f32[2,3,64], index: 10, kind: input, shape index: {}]   ;;  %s6295_s11 = inlined_call_operand.vmem [shape: f32[2,3,64], index: 11, kind: input, shape index: {}]   ;;  %s6296_s12 = inlined_call_operand.vmem [shape: bf16[2,64,96], index: 12, kind: input, shape index: {}]   ;;  %s6297_s13 = inlined_call_operand.vmem [shape: bf16[2,32,64], index: 13, kind: input, shape index: {}]   ;;  %s6298_s14 = inlined_call_operand.vmem [shape: bf16[2,64,32], index: 14, kind: input, shape index: {}]   ;;  %s6299_s15 = inlined_call_operand.vmem [shape: bf16[2,64,64], index: 15, kind: input, shape index: {}]   ;;  %s6300_s16 = inlined_call_operand.vmem [shape: bf16[2,32,64], index: 16, kind: input, shape index: {}]   ;;  %s6301_s17 = inlined_call_operand.vmem [shape: bf16[2,3,64,256], index: 17, kind: input, shape index: {}]   ;;  %s6302_s18 = inlined_call_operand.vmem [shape: f32[2,1,256], index: 18, kind: input, shape index: {}]   ;;  %s6303_s19 = inlined_call_operand.vmem [shape: bf16[2,3,256,64], index: 19, kind: input, shape index: {}]   ;;  %s6304_s20 = inlined_call_operand.vmem [shape: f32[2,1,64], index: 20, kind: input, shape index: {}]   ;;  %s6305_s21 = inlined_call_operand.vmem [shape: f32[1,64], index: 21, kind: input, shape index: {}]   ;;  %s6306_s22 = inlined_call_operand.<no memory space> [shape: f32[1,1], index: 22, kind: input, shape index: {}]   ;;  %s6307_s23 = inlined_call_operand.hbm [shape: f32[2,1,32], index: 23, kind: output, shape index: {}]  }
   0x1   :  { %6325 = sst [smem:[#allocation23_spill]] %s6284_s0  ;;  %v28_v0 = vstv %s6306_s22 }
   0x2   :  { %6326 = sst [smem:[#allocation24_spill]] %s6285_s1  ;;  %29 = vst [vmem:[#allocation3] sm:$0x1] %v28_v0 }
   0x3   :  { %6327 = sst [smem:[#allocation25_spill]] %s6286_s2 }
   0x4   :  { %6328 = sst [smem:[#allocation26_spill]] %s6287_s3 }
   0x5   :  { %6329 = sst [smem:[#allocation27_spill]] %s6288_s4 }
   0x6   :  { %6330 = sst [smem:[#allocation28_spill]] %s6289_s5 }
   0x7   :  { %6331 = sst [smem:[#allocation29_spill]] %s6290_s6 }
   0x8   :  { %6332 = sst [smem:[#allocation30_spill]] %s6291_s7 }
   0x9   :  { %6333 = sst [smem:[#allocation31_spill]] %s6292_s8 }
   0xa   :  { %6334 = sst [smem:[#allocation32_spill]] %s6293_s9 }
   0xb   :  { %6335 = sst [smem:[#allocation33_spill]] %s6294_s10 }
   0xc   :  { %6336 = sst [smem:[#allocation34_spill]] %s6295_s11 }
   0xd   :  { %6337 = sst [smem:[#allocation35_spill]] %s6296_s12 }
   0xe   :  { %6338 = sst [smem:[#allocation36_spill]] %s6297_s13 }
   0xf   :  { %6339 = sst [smem:[#allocation37_spill]] %s6298_s14 }
  0x10   :  { %6340 = sst [smem:[#allocation38_spill]] %s6299_s15 }
  0x11   :  { %6341 = sst [smem:[#allocation39_spill]] %s6300_s16 }
  0x12   :  { %6342 = sst [smem:[#allocation40_spill]] %s6303_s19 }
  0x13   :  { %6343 = sst [smem:[#allocation41_spill]] %s6304_s20 }
  0x14   :  { %6344 = sst [smem:[#allocation42_spill]] %s6305_s21 }
  0x15   :  { %6345 = sst [smem:[#allocation43_spill]] %s6307_s23 }
  0x16   :  { %30 = vsyncpa [#allocation5], 0 }
  0x17   :  { %32 = vsyncpa [#allocation5 + $0x1], 0  ;;  %s5445_s24 = smov 0   ;;  %s5447_s25 = smov 0  }
  0x18   :  { %s5449_s5 = smov 0   ;;  %s5451_s1 = smov 0  }
  0x19   :  { %s5453_s26 = smov 0   ;;  %s5455_s2 = smov 0  }
  0x1a   :  { %s5457_s6 = smov 0   ;;  %s5459_s27 = smov 0  }
  0x1b LB: > { %6346 = sst [smem:[#allocation7_spill]] %s5278_s24  ;;  %s4374_s22 = sadd.s32 4294967295, %s5306_s27   ;;  %s5306_s27 = sphi %s5459_s27, %s38_s27   ;;  %s5302_s6 = sphi %s5457_s6, %s6409_s6   ;;  %s5298_s2 = sphi %s5455_s2, %s6408_s2   ;;  %s5294_s26 = sphi %s5453_s26, %s6407_s26   ;;  %s5290_s1 = sphi %s5451_s1, %s6406_s1   ;;  %s5286_s5 = sphi %s5449_s5, %s6405_s5   ;;  %s5282_s25 = sphi %s5447_s25, %s6411_s25   ;;  %s5278_s24 = sphi %s5445_s24, %s6410_s24  }
  0x1c   : > { %6347 = sst [smem:[#allocation8_spill]] %s5286_s5  ;;  %s4375_s7 = sadd.s32 4294967294, %s5306_s27  }
  0x1d   : > { %6348 = sst [smem:[#allocation9_spill]] %s5290_s1  ;;  %s47_s28 = sadd.s32 1, %s5298_s2 }
  0x1e   : > { %6349 = sst [smem:[#allocation10_spill]] %s5294_s26  ;;  %p48_p0 = scmp.ge.s32.totalorder %s47_s28, 2 }
  0x1f   : > { %6350 = sst [smem:[#allocation11_spill]] %s5298_s2  ;;  %s50_s29 = sadd.s32 1, %s5302_s6 }
  0x20   : > { %6351 = sst [smem:[#allocation12_spill]] %s5302_s6  ;;  %p635_p1 = scmp.ne.s32.totalorder %s5286_s5, %s5282_s25 }
  0x21   : > { %6352 = sst [smem:[#allocation13_spill]] %s5306_s27  ;;  %p636_p2 = scmp.eq.s32.totalorder %s4374_s22, 3 }
  0x22   : > { %s6413_s28 = smov (%p48_p0, %s47_s28), 0  ;;  %s6415_s29 = smov (!%p48_p0, %s50_s29), %s5302_s6 }
  0x23   : > { %6353 = sst [smem:[#allocation14_spill]] %s6413_s28  ;;  %p5494_p3 = por %p636_p2, %p635_p1 }
  0x24   : > { %p641_p4 = scmp.ne.s32.totalorder %s5282_s25, %s5278_s24  ;;  %p52_p5 = scmp.ge.s32.totalorder %s6415_s29, 2 }
  0x25   : > { %s6354_s3 = scalar_select %p5494_p3, 1, 0 }
  0x26   : > { %p642_p6 = scmp.eq.s32.totalorder %s4375_s7, 3  ;;  %p4378_p7 = scmp.ge.s32.totalorder %s5306_s27, 1 }
  0x27   : > { %6355 = sst [smem:[#allocation15_spill]] %s6354_s3  ;;  %p805_p8 = scmp.lt.s32.totalorder %s5306_s27, 5 }
  0x28   : > { %s6417_s29 = smov (%p52_p5, %s6415_s29), 0  ;;  %p5504_p9 = por %p642_p6, %p641_p4 }
  0x29   : > { %6356 = sst [smem:[#allocation16_spill]] %s6417_s29  ;;  %p806_p10 = pnand %p4378_p7, %p805_p8 }
  0x2a   : > { %s6357_s0 = scalar_select %p5504_p9, 1, 0 }
  0x2b   : > { %s622_s4 = ssub.s32 %s5302_s6, %s6417_s29  ;;  %s625_s30 = sadd.s32 1, %s5286_s5 }
  0x2c   : > { %6358 = sst [smem:[#allocation17_spill]] %s6357_s0  ;;  %p623_p11 = scmp.eq.s32.totalorder %s622_s4, 0 }
  0x2d   : > { %809 = sbr.rel (%p806_p10) target bundleno = 4621 (0x120d), region = 112 }
  0x2e   : > { %s5512_s22 = scalar_select %p623_p11, %s5286_s5, %s625_s30  }
  0x30   : > { %6359 = sst [smem:[#allocation18_spill]] %s5512_s22 }
  0x34   : > { %p939_p12 = scmp.lt.s32.totalorder %s5294_s26, 1  ;;  %p965_p13 = scmp.lt.s32.totalorder %s5290_s1, 1 }
  0x35   : > { %s6361_s2 = sld [smem:[#allocation26_spill]]  ;;  %s6363_s0 = sld [smem:[#allocation23_spill]] }
  0x36   : > { %s5518_s28 = scalar_select %p939_p12, %s5294_s26, 1 }
  0x37   : > { %s5521_s29 = scalar_select %p965_p13, %s5290_s1, 1 }
  0x38   : > { %6360 = sst [smem:[#allocation19_spill]] %s5518_s28  ;;  %s4562_s4 = sshll.u32 %s5518_s28, 5 }
  0x39   : > { %s6364_s3 = sld [smem:[#allocation24_spill]]  ;;  %s6365_s8 = sld [smem:[#allocation25_spill]] }
  0x3a   : > { %s4565_s30 = sshll.u32 %s5518_s28, 4  ;;  %s6367_s27 = sld [smem:[#allocation28_spill]] }
  0x3b   : > { %s5528_s22 = scalar_lea.vmem %s6361_s2, %s5518_s28  ;;  %s5533_s24 = scalar_lea.vmem %s6363_s0, %s4562_s4 }
  0x3c   : > { %6362 = sst [smem:[#allocation20_spill]] %s5528_s22  ;;  %s4387_s22 = sshll.u32 %s5521_s29, 2 }
  0x3d   : > { %s6369_s10 = sld [smem:[#allocation33_spill]]  ;;  %s6370_s11 = sld [smem:[#allocation34_spill]] }
  0x3e   : > { %s4566_s7 = sshll.u32 %s5521_s29, 5  ;;  %s6371_s12 = sld [smem:[#allocation35_spill]] }
  0x3f   : > { %s5538_s26 = scalar_lea.vmem %s6364_s3, %s4562_s4  ;;  %s953_s1 = scalar_lea.vmem %s6365_s8, %s4562_s4 }
  0x40   : > { %v5549_v1 = vld [vmem:[%s953_s1] sm:$0xff]  ;;  %v5551_v2 = vld [vmem:[%s953_s1 + $0x8] sm:$0xff]  ;;  %v5553_v3 = vld [vmem:[%s953_s1 + $0x10] sm:$0xff]  ;;  %s5558_s9 = scalar_lea.vmem %s6367_s27, %s4565_s30  ;;  %s4567_s23 = sshll.u32 %s5521_s29, 4 }
  0x41   : > { %6368 = sst [smem:[#allocation21_spill]] %s5558_s9  ;;  %v5565_v4 = vld [vmem:[%s953_s1 + $0x18] sm:$0xff]  ;;  %s6372_s13 = sld [smem:[#allocation36_spill]] }
  0x42   : > { %s6373_s14 = sld [smem:[#allocation37_spill]]  ;;  %s6374_s15 = sld [smem:[#allocation38_spill]] }
  0x43   : > { %s5563_s19 = scalar_lea.vmem %s6369_s10, %s4387_s22  ;;  %s5570_s0 = scalar_lea.vmem %s6370_s11, %s4387_s22 }
  0x44   : > { %s5576_s30 = scalar_lea.vmem %s6371_s12, %s4566_s7  ;;  %s6375_s16 = sld [smem:[#allocation39_spill]] }
  0x45   : > { %s4920_s11 = smul.u32 192, %s5521_s29  ;;  %s4400_s12 = sshll.u32 %s5521_s29, 1 }
  0x46   : > { %s4921_s1 = smul.u32 384, %s5521_s29  ;;  %s6377_s22 = sld [smem:[#allocation41_spill]] }
  0x47   : > { %s5582_s8 = scalar_lea.vmem %s6372_s13, %s4567_s23  ;;  %s5604_s13 = scalar_lea.vmem %s6302_s18, %s4400_s12 }
  0x48   : > { %s5587_s2 = scalar_lea.vmem %s6373_s14, %s4566_s7  ;;  %s5592_s3 = scalar_lea.vmem %s6374_s15, %s4566_s7 }
  0x49   : > { %s5610_s28 = scalar_lea.vmem %s6301_s17, %s4920_s11  ;;  %s6378_s4 = sld [smem:[#allocation40_spill]] }
  0x4a   : > { %s5597_s6 = scalar_lea.vmem %s6375_s16, %s4567_s23  ;;  %s6380_s12 = sld [smem:[#allocation9_spill]] }
  0x4b   : > { %6376 = sst [smem:[#allocation22_spill]] %s5597_s6  ;;  %s6379_s6 = sand.u32 1, %s5282_s25  }
  0x4c   : > { %s1014_s15 = scalar_lea.vmem %s6377_s22, %s5521_s29  ;;  %s5623_s9 = scalar_lea.vmem [#allocation4], %s6379_s6 }
  0x4f   : > { %s5619_s16 = scalar_lea.vmem %s6378_s4, %s4921_s1 }
  0x50   : > { %p4402_p0 = scmp.ne.s32.totalorder %s6380_s12, 0 }
  0x51   : > { %v1029_v5 = vld [vmem:[%s5538_s26 + $0x8] sm:$0xff] (!%p4402_p0)  ;;  %v1028_v6 = vld [vmem:[%s5538_s26] sm:$0xff] (!%p4402_p0)  ;;  %v5308_v7 = vmov (!%p4402_p0), 0   ;;  %v1030_v8 = vld [vmem:[%s5538_s26 + $0x10] sm:$0xff] (!%p4402_p0)  ;;  %s6381_s6 = sld [smem:[#allocation31_spill]] (!%p4402_p0)  ;;  %v1054_v19 = vlaneseq (!%p4402_p0)  ;;  %s6384_s10 = sld [smem:[#allocation30_spill]] (!%p4402_p0) }
  0x52   : > { %1023 = sbr.rel (%p4402_p0) target bundleno = 474 (0x1da), region = 116  ;;  %5009 = vset.pattern.permute.xlu1 (!%p4402_p0), %v5308_v7  ;;  %5008 = vset.pattern.permute.xlu0 (!%p4402_p0), %v5308_v7  ;;  %v1031_v9 = vld [vmem:[%s5538_s26 + $0x18] sm:$0xff] (!%p4402_p0)  ;;  %s6383_s26 = sld [smem:[#allocation29_spill]] (!%p4402_p0)  ;;  %vm1218_vm4 = vcmask (!%p4402_p0), 523264  }
  0x53   : > { %1041 = vperm.xlu1 (!%p4402_p0), %5009, %v1029_v5   ;;  %1036 = vperm.xlu0 (!%p4402_p0), %5008, %v1028_v6   ;;  %v5664_v20 = vshrl.u32 (!%p4402_p0), %v1054_v19, 7  ;;  %s6385_s27 = sld [smem:[#allocation32_spill]] (!%p4402_p0) }
  0x55   : > { %v1056_v21 = vsub.s32 (!%p4402_p0), 0, %v5664_v20  ;;  %v1114_v23 = vsub.s32 (!%p4402_p0), 2, %v5664_v20  ;;  %v1102_v25 = vsub.s32 (!%p4402_p0), 1, %v5664_v20  ;;  %v1075_v26 = vadd.s32 (!%p4402_p0), 24, %v5664_v20 }
  0x56   : > { %vm1068_vm0 = vcmp.lt.s32.totalorder (!%p4402_p0), %v5664_v20, 1  ;;  %v5675_v33 = vadd.s32 (!%p4402_p0), 4294967295, %v5664_v20  ;;  %vm1124_vm1 = vcmp.lt.s32.totalorder (!%p4402_p0), %v5664_v20, 7 }
  0x57   : > { %1046 = vperm.xlu1 (!%p4402_p0), %5009, %v1030_v8   ;;  %1051 = vperm.xlu0 (!%p4402_p0), %5008, %v1031_v9   ;;  %s6382_s21 = smov (!%p4402_p0), %s6381_s6  ;;  %v5010_v10 = vld [vmem:[%s6381_s6] sm:$0xff] (!%p4402_p0)   ;;  %v5677_v34 = vadd.s32 (!%p4402_p0), 1, %v1075_v26 }
  0x58   : > { %v5011_v11 = vld [vmem:[%s6382_s21 + $0x20] sm:$0xff] (!%p4402_p0)   ;;  %4735 = vmatprep.subr.bf16.mxu0 (!%p4402_p0), %v5010_v10  ;;  %v5012_v12 = vld [vmem:[%s6382_s21 + $0x8] sm:$0xff] (!%p4402_p0)   ;;  %v5014_v14 = vld [vmem:[%s6382_s21 + $0x10] sm:$0xff] (!%p4402_p0)   ;;  %vm1080_vm2 = vcmp.ge.s32.totalorder (!%p4402_p0), %v5675_v33, 0 }
  0x59   : > { %4736 = vmatpush3.bf16.msra.mxu0 %v5010_v10  ;;  %4747 = vmatprep.subr.bf16.mxu1 %v5011_v11  ;;  %v5013_v13 = vld [vmem:[%s6382_s21 + $0x28] sm:$0xff]   ;;  %v5015_v15 = vld [vmem:[%s6382_s21 + $0x30] sm:$0xff]   ;;  %v5016_v16 = vld [vmem:[%s6382_s21 + $0x18] sm:$0xff]   ;;  %vm1140_vm3 = vcmp.lt.s32.totalorder %v5677_v34, 32 }
  0x5a   : > { %4748 = vmatpush3.bf16.msra.mxu1 %v5011_v11  ;;  %4737 = vmatprep.subr.bf16.mxu0 %v5012_v12  ;;  %v5017_v17 = vld [vmem:[%s6382_s21 + $0x38] sm:$0xff]   ;;  %v5661_v18 = vld [vmem:[%s6382_s21 + $0x40] sm:$0xff]  }
  0x5b   : > { %1473 = vperm.xlu1 %5009, %v5551_v2   ;;  %1468 = vperm.xlu0 %5008, %v5549_v1   ;;  %v1032_v22 = vld [vmem:[%s6383_s26] sm:$0x7] }
  0x5c   : > { %4749 = vmatprep.subr.bf16.mxu1 %v5013_v13  ;;  %v1057_v24 = vrot.slane %v1032_v22, %v1056_v21  ;;  %v1115_v27 = vrot.slane %v1032_v22, %v1114_v23  ;;  %v1103_v32 = vrot.slane %v1032_v22, %v1102_v25  ;;  %v4403_v63 = vld [vmem:[%s6384_s10] ss:$0 sm:$0xff]  ;;  %v1025_v22 = vld [vmem:[%s5533_s24 + $0x8] sm:$0xff] }
  0x5d   : > { %4738 = vmatpush3.bf16.msra.mxu0 %v5012_v12  ;;  %v1024_v21 = vld [vmem:[%s5533_s24] sm:$0xff] }
  0x5e   : > { %4750 = vmatpush3.bf16.msra.mxu1 %v5013_v13  ;;  %4739 = vmatprep.subr.bf16.mxu0 %v5014_v14 }
  0x5f   : > { %1483 = vperm.xlu1 %5009, %v5565_v4   ;;  %1478 = vperm.xlu0 %5008, %v5553_v3  }
  0x60   : > { %4751 = vmatprep.subr.bf16.mxu1 %v5015_v15 }
  0x61   : > { %4740 = vmatpush3.bf16.msra.mxu0 %v5014_v14 }
  0x62   : > { %4741 = vmatprep.subr.bf16.mxu0 %v5016_v16  ;;  %4752 = vmatpush3.bf16.msra.mxu1 %v5015_v15  ;;  %v1026_v15 = vld [vmem:[%s5533_s24 + $0x10] sm:$0xff] }
  0x63   : > { %4753 = vmatprep.subr.bf16.mxu1 %v5017_v17 }
  0x65   : > { %4742 = vmatpush3.bf16.msra.mxu0 %v5016_v16  ;;  %v1027_v16 = vld [vmem:[%s5533_s24 + $0x18] sm:$0xff] }
  0x66   : > { %4754 = vmatpush3.bf16.msra.mxu1 %v5017_v17  ;;  %4759 = vmatprep.subr.bf16.mxu0 %v5661_v18 }
  0xd2   : > { %v1042_v28 = vpop.permute.xlu1 %1041  ;;  %v1037_v29 = vpop.permute.xlu0 %1036 }
  0xd3   : > { %v1059_v30 = vmul.f32 %v1057_v24, %v1042_v28  ;;  %v1058_v31 = vmul.f32 %v1057_v24, %v1037_v29  ;;  %v1117_v36 = vmul.f32 %v1115_v27, %v1042_v28  ;;  %v1105_v38 = vmul.f32 %v1103_v32, %v1042_v28 }
  0xd4   : > { %v1116_v39 = vmul.f32 %v1115_v27, %v1037_v29  ;;  %v1104_v45 = vmul.f32 %v1103_v32, %v1037_v29 }
  0xd5   : > { %v1063_v35 = vrot.slane %v1059_v30, 7  ;;  %v1062_v37 = vrot.slane %v1058_v31, 7  ;;  %v1121_v47 = vrot.slane %v1117_v36, 1  ;;  %v5019_v30 = vld [vmem:[%s6382_s21 + $0x48] sm:$0xff]   ;;  %v5020_v31 = vld [vmem:[%s6382_s21 + $0x50] sm:$0xff]  }
  0xd6   : > { %v1047_v40 = vpop.permute.xlu1 %1046  ;;  %v1052_v41 = vpop.permute.xlu0 %1051  ;;  %v1120_v52 = vrot.slane %v1116_v39, 1 }
  0xd7   : > { %v1071_v42 = vsel %vm1068_vm0, %v1062_v37, %v1063_v35  ;;  %v1060_v43 = vmul.f32 %v1057_v24, %v1047_v40  ;;  %v1118_v44 = vmul.f32 %v1115_v27, %v1047_v40  ;;  %v1061_v46 = vmul.f32 %v1057_v24, %v1052_v41 }
  0xd8   : > { %v1119_v50 = vmul.f32 %v1115_v27, %v1052_v41  ;;  %v1109_v51 = vadd.f32 %v1105_v38, %v1071_v42  ;;  %v1106_v53 = vmul.f32 %v1103_v32, %v1047_v40  ;;  %v1107_v57 = vmul.f32 %v1103_v32, %v1052_v41  ;;  %v5021_v32 = vld [vmem:[%s6382_s21 + $0x58] sm:$0xff]  }
  0xd9   : > { %v1064_v48 = vrot.slane %v1060_v43, 7  ;;  %v1122_v49 = vrot.slane %v1118_v44, 1  ;;  %v1065_v54 = vrot.slane %v1061_v46, 7  ;;  %v1127_v11 = vsel %vm1124_vm1, %v1120_v52, %v1121_v47 }
  0xda   : > { %v1123_v58 = vrot.slane %v1119_v50, 1  ;;  %v1474_v33 = vpop.permute.xlu1 %1473 }
  0xdb   : > { %v1070_v55 = vsel %vm1068_vm0, %v1063_v35, %v1064_v48  ;;  %v1126_v56 = vsel %vm1124_vm1, %v1121_v47, %v1122_v49  ;;  %v1069_v61 = vsel %vm1068_vm0, %v1064_v48, %v1065_v54  ;;  %v1072_v62 = vsel %vm1068_vm0, %v1065_v54, %v1062_v37 }
  0xdc   : > { %v1110_v59 = vadd.f32 %v1106_v53, %v1070_v55  ;;  %v1150_v60 = vadd.f32 %v1126_v56, %v1109_v51  ;;  %v1092_v0 = vsel %vm1080_vm2, %v1072_v62, 0.0  ;;  %v1111_v5 = vadd.f32 %v1107_v57, %v1069_v61 }
  0xdd   : > { %v1125_v6 = vsel %vm1124_vm1, %v1122_v49, %v1123_v58  ;;  %v1128_v7 = vsel %vm1124_vm1, %v1123_v58, %v1120_v52  ;;  %v1108_v8 = vadd.f32 %v1104_v45, %v1092_v0  ;;  %v4422_v0 = vld [vmem:[%s6385_s27] ss:$0 sm:$0xff] }
  0xde   : > { %v1148_v9 = vsel %vm1140_vm3, %v1128_v7, 0.0  ;;  %v1151_v10 = vadd.f32 %v1125_v6, %v1110_v59  ;;  %v1160_v14 = vadd.f32 %v4403_v63, %v1150_v60  ;;  %v1469_v59 = vpop.permute.xlu0 %1468 }
  0xdf   : > { %v1152_v12 = vadd.f32 %v1148_v9, %v1111_v5  ;;  %v1149_v13 = vadd.f32 %v1127_v11, %v1108_v8 }
  0xe0   : > { %v1161_v17 = vadd.f32 %v4403_v63, %v1151_v10  ;;  %v1164_v27 = vadd.f32 %v1160_v14, %v1025_v22 }
  0xe1   : > { %v1162_v19 = vadd.f32 %v4403_v63, %v1152_v12  ;;  %v1159_v23 = vadd.f32 %v4403_v63, %v1149_v13 }
  0xe2   : > { %v1165_v24 = vadd.f32 %v1161_v17, %v1026_v15  ;;  %v1479_v15 = vpop.permute.xlu0 %1478 }
  0xe3   : > { %v1166_v25 = vadd.f32 %v1162_v19, %v1027_v16  ;;  %v1163_v26 = vadd.f32 %v1159_v23, %v1024_v21  ;;  %v1484_v21 = vpop.permute.xlu1 %1483 }
  0xe5   : > { %v1192_v28 = vpack.c.bf16 %v1164_v27, %v1163_v26  ;;  %v1193_v29 = vpack.c.bf16 %v1166_v25, %v1165_v24 }
  0xe7   : > { %4743 = vmatprep.mubr.msk.bf16.mxu0 %vm1218_vm4, %v1192_v28  ;;  %4755 = vmatprep.mubr.msk.bf16.mxu1 %vm1218_vm4, %v1192_v28 }
  0xe8   : > { %4744 = vmatmul.mubr.msk.bf16.vlgmr.msra.gmra.mrb[0].mxu0 %vm1218_vm4, %v1193_v29  ;;  %4756 = vmatmul.mubr.msk.bf16.vlgmr.msra.gmra.mrb[0].mxu1 %vm1218_vm4, %v1193_v29 }
  0xe9   : > { %4760 = vmatpush3.bf16.msra.mxu0 %v5661_v18  ;;  %4767 = vmatprep.mubr.msk.bf16.mxu0 %vm1218_vm4, %v1192_v28 }
  0xea   : > { %4761 = vmatprep.subr.bf16.mxu0 %v5019_v30 }
  0xed   : > { %4762 = vmatpush3.bf16.msra.mxu0 %v5019_v30 }
  0xee   : > { %4763 = vmatprep.subr.bf16.mxu0 %v5020_v31 }
  0xf1   : > { %4764 = vmatpush3.bf16.msra.mxu0 %v5020_v31 }
  0xf2   : > { %4765 = vmatprep.subr.bf16.mxu0 %v5021_v32 }
  0xf5   : > { %4766 = vmatpush3.bf16.msra.mxu0 %v5021_v32 }
  0xf8   : > { %4768 = vmatmul.mubr.msk.bf16.vlgmr.msra.gmra.mrb[4].mxu0 %vm1218_vm4, %v1193_v29 }
 0x1bb   : > { %v4745_v35 = vpop.f32.mrb[0].mxu0  ;;  %v4757_v18 = vpop.f32.mrb[0].mxu1 }
 0x1bc   : > { %v1259_v36 = vpop.f32.mrb[1].mxu0  ;;  %v1348_v37 = vpop.f32.mrb[1].mxu1  ;;  %v1276_v41 = vrot.slane %v4745_v35, 7 }
 0x1bd   : > { %v1274_v38 = vrot.slane %v1259_v36, 7  ;;  %v4746_v39 = vpop.f32.mrb[2].mxu0  ;;  %v4758_v40 = vpop.f32.mrb[2].mxu1 }
 0x1be   : > { %v1277_v42 = vrot.slane %v4746_v39, 7  ;;  %v1262_v43 = vpop.f32.mrb[3].mxu0  ;;  %v1351_v44 = vpop.f32.mrb[3].mxu1 }
 0x1bf   : > { %v1275_v45 = vrot.slane %v1262_v43, 7 }
 0x1c0   : > { %v1281_v46 = vsel %vm1068_vm0, %v1277_v42, %v1274_v38  ;;  %v1278_v47 = vsel %vm1068_vm0, %v1276_v41, %v1277_v42 }
 0x1c1   : > { %v1282_v48 = vsel %vm1080_vm2, %v1281_v46, 0.0  ;;  %v1366_v49 = vadd.f32 %v4758_v40, %v1278_v47  ;;  %v1279_v50 = vsel %vm1068_vm0, %v1275_v45, %v1276_v41  ;;  %v1280_v51 = vsel %vm1068_vm0, %v1274_v38, %v1275_v45 }
 0x1c2   : > { %v1363_v52 = vadd.f32 %v1348_v37, %v1282_v48  ;;  %v1365_v53 = vadd.f32 %v4757_v18, %v1279_v50  ;;  %v1364_v54 = vadd.f32 %v1351_v44, %v1280_v51 }
 0x1cb   : > { %v4769_v55 = vpop.f32.mrb[4].mxu0 }
 0x1cc   : > { %v1425_v56 = vpop.f32.mrb[5].mxu0  ;;  %v1442_v60 = vrot.slane %v4769_v55, 1 }
 0x1cd   : > { %v1440_v57 = vrot.slane %v1425_v56, 1  ;;  %v4770_v58 = vpop.f32.mrb[6].mxu0 }
 0x1ce   : > { %v1443_v61 = vrot.slane %v4770_v58, 1  ;;  %v1428_v62 = vpop.f32.mrb[7].mxu0 }
 0x1cf   : > { %v1441_v63 = vrot.slane %v1428_v62, 1 }
 0x1d0   : > { %v1444_v5 = vsel %vm1124_vm1, %v1442_v60, %v1443_v61  ;;  %v1447_v6 = vsel %vm1124_vm1, %v1443_v61, %v1440_v57 }
 0x1d1   : > { %v1451_v7 = vsel %vm1140_vm3, %v1447_v6, 0.0  ;;  %v1454_v8 = vadd.f32 %v1444_v5, %v1365_v53  ;;  %v1445_v9 = vsel %vm1124_vm1, %v1441_v63, %v1442_v60  ;;  %v1446_v10 = vsel %vm1124_vm1, %v1440_v57, %v1441_v63 }
 0x1d2   : > { %v1455_v11 = vadd.f32 %v1451_v7, %v1366_v49  ;;  %v1452_v12 = vadd.f32 %v1446_v10, %v1363_v52  ;;  %v1453_v13 = vadd.f32 %v1445_v9, %v1364_v54 }
 0x1d3   : > { %v1464_v14 = vadd.f32 %v4422_v0, %v1454_v8 }
 0x1d4   : > { %v1465_v16 = vadd.f32 %v4422_v0, %v1455_v11  ;;  %v1462_v17 = vadd.f32 %v4422_v0, %v1452_v12  ;;  %v1463_v19 = vadd.f32 %v4422_v0, %v1453_v13 }
 0x1d5   : > { %v1488_v22 = vmul.f32 %v1479_v15, %v1464_v14 }
 0x1d6   : > { %v1489_v23 = vmul.f32 %v1484_v21, %v1465_v16  ;;  %v1486_v34 = vmul.f32 %v1469_v59, %v1462_v17  ;;  %v1487_v24 = vmul.f32 %v1474_v33, %v1463_v19 }
 0x1d7   : > { %1492 = vst.msk [vmem:[#allocation2 + $0x10] sm:$0xff] %vm1218_vm4, %v1488_v22 }
 0x1d8   : > { %1493 = vst.msk [vmem:[#allocation2 + $0x18] sm:$0xff] %vm1218_vm4, %v1489_v23  ;;  %1490 = vst.msk [vmem:[#allocation2] sm:$0xff] %vm1218_vm4, %v1486_v34 }
 0x1d9   : > { %1491 = vst.msk [vmem:[#allocation2 + $0x8] sm:$0xff] %vm1218_vm4, %v1487_v24 }
 0x1da PF: > { %vm1508_vm5 = vcmask 523264   ;;  %v5024_v53 = vld [vmem:[%s5576_s30] sm:$0xff]   ;;  %v5025_v54 = vld [vmem:[%s5576_s30 + $0x8] sm:$0xff]   ;;  %v5026_v55 = vld [vmem:[%s5576_s30 + $0x10] sm:$0xff]   ;;  %vm1685_vm6 = vcmask 130048   ;;  %s5310_s1 = smov 80  }
 0x1db   : > { %4771 = vmatprep.subr.bf16.mxu1 %v5024_v53  ;;  %v5027_v56 = vld [vmem:[%s5576_s30 + $0x18] sm:$0xff]   ;;  %v4423_v10 = vld [vmem:[%s5563_s19] ss:$0 sm:$0xff]  ;;  %s5309_s30 = smov 96   ;;  %s5311_s7 = smov 112   ;;  %vm1747_vm8 = vcmask 261120  }
 0x1dc   : > { %4772 = vmatpush3.bf16.msra.mxu1 %v5024_v53  ;;  %v4424_v16 = vld [vmem:[%s5570_s0] ss:$0 sm:$0xff]  ;;  %s6386_s26 = sld [smem:[#allocation20_spill]]  ;;  %v5312_v53 = vmov -1e+09   ;;  %s5313_s20 = smov 64  }
 0x1dd   : > { %4773 = vmatprep.subr.bf16.mxu1 %v5025_v54  ;;  %s5314_s22 = smov 48   ;;  %vm5317_vm9 = vmmov 0   ;;  %s6389_s23 = sld [smem:[#allocation27_spill]] }
 0x1de   : > { %v5754_v25 = vld [vmem:[#allocation2 + $0x10] sm:$0xff]  ;;  %s6391_s24 = sld [smem:[#allocation22_spill]] }
 0x1df   : > { %v5752_v20 = vld [vmem:[#allocation2] sm:$0xff]  ;;  %v1515_v28 = vsel %vm1508_vm5, %v5754_v25, 0.0  ;;  %v5764_v30 = vld [vmem:[#allocation2 + $0x18] sm:$0xff] }
 0x1e0   : > { %v5756_v26 = vld [vmem:[#allocation2 + $0x8] sm:$0xff]  ;;  %v1509_v27 = vsel %vm1508_vm5, %v5752_v20, 0.0  ;;  %1516 = vadd.xlane.f32.xlu1 %v1515_v28  ;;  %v1518_v31 = vsel %vm1508_vm5, %v5764_v30, 0.0  ;;  %4774 = vmatpush3.bf16.msra.mxu1 %v5025_v54 }
 0x1e1   : > { %v1512_v29 = vsel %vm1508_vm5, %v5756_v26, 0.0  ;;  %1510 = vadd.xlane.f32.xlu0 %v1509_v27  ;;  %4775 = vmatprep.subr.bf16.mxu1 %v5026_v55 }
 0x1e4   : > { %1519 = vadd.xlane.f32.xlu1 %v1518_v31  ;;  %4776 = vmatpush3.bf16.msra.mxu1 %v5026_v55 }
 0x1e5   : > { %1513 = vadd.xlane.f32.xlu0 %v1512_v29  ;;  %4777 = vmatprep.subr.bf16.mxu1 %v5027_v56 }
 0x1e8   : > { %4778 = vmatpush3.bf16.msra.mxu1 %v5027_v56 }
 0x26d   : > { %v1517_v35 = vpop.xlane.xlu1 %1516 }
 0x26e   : > { %v1511_v32 = vpop.xlane.xlu0 %1510  ;;  %v1524_v36 = vmul.f32 0.015625, %v1517_v35 }
 0x26f   : > { %v1522_v18 = vmul.f32 0.015625, %v1511_v32 }
 0x270   : > { %v1528_v38 = vsub.f32 %v5754_v25, %v1524_v36 }
 0x271   : > { %v1526_v37 = vsub.f32 %v5752_v20, %v1522_v18  ;;  %v1520_v40 = vpop.xlane.xlu1 %1519 }
 0x272   : > { %v1514_v39 = vpop.xlane.xlu0 %1513  ;;  %v1525_v42 = vmul.f32 0.015625, %v1520_v40  ;;  %v1532_v44 = vmul.f32 %v1528_v38, %v1528_v38 }
 0x273   : > { %v1523_v41 = vmul.f32 0.015625, %v1514_v39  ;;  %v1530_v43 = vmul.f32 %v1526_v37, %v1526_v37 }
 0x274   : > { %v1529_v46 = vsub.f32 %v5764_v30, %v1525_v42  ;;  %v1540_v48 = vsel %vm1508_vm5, %v1532_v44, 0.0 }
 0x275   : > { %v1527_v45 = vsub.f32 %v5756_v26, %v1523_v41  ;;  %v1534_v47 = vsel %vm1508_vm5, %v1530_v43, 0.0 }
 0x276   : > { %1535 = vadd.xlane.f32.xlu0 %v1534_v47  ;;  %v1533_v50 = vmul.f32 %v1529_v46, %v1529_v46 }
 0x277   : > { %v1531_v49 = vmul.f32 %v1527_v45, %v1527_v45 }
 0x278   : > { %v1543_v52 = vsel %vm1508_vm5, %v1533_v50, 0.0  ;;  %v1498_v50 = vld [vmem:[%s6386_s26] sm:$0x1] }
 0x279   : > { %v1537_v51 = vsel %vm1508_vm5, %v1531_v49, 0.0  ;;  %v1674_v49 = vlaneseq  ;;  %vm1499_vm7 = vcmp.gt.f32.partialorder %v1498_v50, 0.0 }
 0x27a   : > { %1541 = vadd.xlane.f32.xlu0 %v1540_v48  ;;  %1538 = vadd.xlane.f32.xlu1 %v1537_v51  ;;  %v1500_v54 = vsel %vm1499_vm7, 0.0, %v5312_v53 }
 0x27b   : > { %v5815_v51 = vshrl.u32 %v1674_v49, 7 }
 0x27d   : > { %vm3107_vm11 = vcmp.lt.s32.totalorder %v5815_v51, 1  ;;  %vm3353_vm13 = vcmp.lt.s32.totalorder %v5815_v51, 7 }
 0x27e   : > { %1544 = vadd.xlane.f32.xlu1 %v1543_v52  ;;  %v5818_v52 = vsub.s32 0, %v5815_v51 }
 0x280   : > { %v1677_v55 = vrot.slane %v1500_v54, %v5818_v52 }
 0x303   : > { %v1536_v57 = vpop.xlane.xlu0 %1535 }
 0x304   : > { %v1546_v58 = vmul.f32 0.015625, %v1536_v57 }
 0x306   : > { %v1550_v59 = vadd.f32 1e-05, %v1546_v58 }
 0x307   : > { %v1539_v60 = vpop.xlane.xlu1 %1538  ;;  %v1542_v61 = vpop.xlane.xlu0 %1541 }
 0x308   : > { %5124 = vrsqrt.f32 %v1550_v59  ;;  %v1547_v62 = vmul.f32 0.015625, %v1539_v60  ;;  %v1548_v33 = vmul.f32 0.015625, %v1542_v61 }
 0x30a   : > { %v1551_v63 = vadd.f32 1e-05, %v1547_v62  ;;  %v1552_v0 = vadd.f32 1e-05, %v1548_v33 }
 0x30b   : > { %v1545_v5 = vpop.xlane.xlu1 %1544 }
 0x30c   : > { %5126 = vrsqrt.f32 %v1551_v63  ;;  %v1549_v6 = vmul.f32 0.015625, %v1545_v5 }
 0x30d   : > { %5128 = vrsqrt.f32 %v1552_v0 }
 0x30e   : > { %v1553_v7 = vadd.f32 1e-05, %v1549_v6 }
 0x310   : > { %5130 = vrsqrt.f32 %v1553_v7 }
 0x312   : > { %v5125_v8 = vpop.eup %5124 }
 0x313   : > { %v1558_v9 = vmul.f32 %v5125_v8, %v1526_v37 }
 0x315   : > { %v1566_v14 = vmul.f32 %v4423_v10, %v1558_v9 }
 0x316   : > { %v5127_v11 = vpop.eup %5126 }
 0x317   : > { %v5129_v12 = vpop.eup %5128  ;;  %v1559_v13 = vmul.f32 %v5127_v11, %v1527_v45  ;;  %v1574_v22 = vadd.f32 %v4424_v16, %v1566_v14 }
 0x318   : > { %v1560_v15 = vmul.f32 %v5129_v12, %v1528_v38 }
 0x319   : > { %v1567_v17 = vmul.f32 %v4423_v10, %v1559_v13 }
 0x31a   : > { %v5131_v19 = vpop.eup %5130  ;;  %v1568_v34 = vmul.f32 %v4423_v10, %v1560_v15 }
 0x31b   : > { %v1561_v21 = vmul.f32 %v5131_v19, %v1529_v46  ;;  %v1575_v23 = vadd.f32 %v4424_v16, %v1567_v17 }
 0x31c   : > { %v1576_v28 = vadd.f32 %v4424_v16, %v1568_v34 }
 0x31d   : > { %v1578_v24 = vpack.c.bf16 %v1575_v23, %v1574_v22  ;;  %v1569_v27 = vmul.f32 %v4423_v10, %v1561_v21 }
 0x31f   : > { %4779 = vmatprep.mubr.msk.bf16.mxu1 %vm1508_vm5, %v1578_v24  ;;  %v1577_v29 = vadd.f32 %v4424_v16, %v1569_v27 }
 0x321   : > { %v1579_v31 = vpack.c.bf16 %v1577_v29, %v1576_v28 }
 0x323   : > { %4780 = vmatmul.mubr.msk.bf16.vlgmr.msra.gmra.mrb[0].mxu1 %vm1508_vm5, %v1579_v31 }
 0x3f6   : > { %v4781_v32 = vpop.f32.mrb[0].mxu1 }
 0x3f7   : > { %v1652_v35 = vpop.f32.mrb[1].mxu1 }
 0x3f8   : > { %v4782_v18 = vpop.f32.mrb[2].mxu1 }
 0x3f9   : > { %v5784_v36 = vpack.c.bf16 %v4782_v18, %v4781_v32  ;;  %v1655_v37 = vpop.f32.mrb[3].mxu1 }
 0x3fa   : > { %v5786_v38 = vpack.c.bf16 %v1655_v37, %v1652_v35 }
 0x3fb   : > { %1683 = vrot.lane.b32.xlu1 %v5784_v36, %s5309_s30 }
 0x3fc   : > { %1681 = vrot.lane.b32.xlu0 %v5786_v38, %s5309_s30  ;;  %4787 = vmatprep.mubr.msk.bf16.mxu1 %vm1685_vm6, %v5786_v38 }
 0x3ff   : > { %1861 = vrot.lane.b32.xlu1 %v5786_v38, %s5310_s1 }
 0x400   : > { %1857 = vrot.lane.b32.xlu0 %v5786_v38, %s5311_s7 }
 0x403   : > { %1863 = vrot.lane.b32.xlu1 %v5784_v36, %s5310_s1 }
 0x407   : > { %1859 = vrot.lane.b32.xlu1 %v5784_v36, %s5311_s7 }
 0x46d   : > { %v1684_v41 = vpop.permute.xlu1 %1683 }
 0x46e   : > { %v1682_v39 = vpop.permute.xlu0 %1681  ;;  %v1696_v42 = vsel %vm1685_vm6, %v1684_v41, 0 }
 0x46f   : > { %v1693_v40 = vsel %vm1685_vm6, %v1682_v39, 0  ;;  %4914 = vmatprep.subr.msk.bf16.mxu1 %vm1685_vm6, %v1682_v39 }
 0x470   : > { %4784 = vmatpush3.bf16.xpose.msra.mxu1 %v1693_v40 }
 0x471   : > { %4915 = vmatprep.subr.msk.bf16.mxu1 %vm1685_vm6, %v1684_v41  ;;  %v1862_v43 = vpop.permute.xlu1 %1861 }
 0x472   : > { %v1872_v44 = vsel %vm1685_vm6, %v1862_v43, 0  ;;  %v1858_v45 = vpop.permute.xlu0 %1857 }
 0x475   : > { %v1864_v46 = vpop.permute.xlu1 %1863 }
 0x476   : > { %v1875_v47 = vsel %vm1685_vm6, %v1864_v46, 0 }
 0x478   : > { %4786 = vmatpush3.bf16.xpose.msra.mxu1 %v1696_v42 }
 0x479   : > { %4916 = vmatprep.subr.msk.bf16.mxu1 %vm1685_vm6, %v1862_v43  ;;  %v1860_v48 = vpop.permute.xlu1 %1859 }
 0x47f   : > { %4788 = vmatmul.mubr.msk.bf16.vlgmr.msra.gmra.mrb[4].mxu1 %vm1685_vm6, %v5784_v36 }
 0x480   : > { %4800 = vmatpush3.bf16.xpose.msra.mxu1 %v1872_v44  ;;  %4803 = vmatprep.mubr.msk.bf16.mxu1 %vm1685_vm6, %v1858_v45 }
 0x481   : > { %4917 = vmatprep.subr.msk.bf16.mxu1 %vm1685_vm6, %v1864_v46 }
 0x488   : > { %4802 = vmatpush3.bf16.xpose.msra.mxu1 %v1875_v47 }
 0x48f   : > { %4804 = vmatmul.mubr.msk.bf16.vlgmr.msra.gmra.mrb[8].mxu1 %vm1685_vm6, %v1860_v48 }
 0x552   : > { %v4789_v56 = vpop.f32.mrb[4].mxu1 }
 0x553   : > { %v1741_v57 = vadd.f32 %v4789_v56, %v1677_v55  ;;  %v1732_v58 = vpop.f32.mrb[5].mxu1 }
 0x554   : > { %v4790_v59 = vpop.f32.mrb[6].mxu1  ;;  %v1733_v60 = vadd.f32 %v1732_v58, %v1677_v55 }
 0x555   : > { %v1735_v61 = vpop.f32.mrb[7].mxu1  ;;  %v1754_v62 = vsel %vm1747_vm8, %v1741_v57, -inf  ;;  %v1744_v0 = vadd.f32 %v4790_v59, %v1677_v55 }
 0x556   : > { %v1736_v33 = vadd.f32 %v1735_v61, %v1677_v55  ;;  %1755 = vmax.xlane.f32.xlu0 %v1754_v62  ;;  %v1748_v5 = vsel %vm1747_vm8, %v1733_v60, -inf }
 0x557   : > { %v1757_v6 = vsel %vm1747_vm8, %v1744_v0, -inf }
 0x558   : > { %v1751_v63 = vsel %vm1747_vm8, %v1736_v33, -inf }
 0x559   : > { %1752 = vmax.xlane.f32.xlu1 %v1751_v63 }
 0x55a   : > { %1749 = vmax.xlane.f32.xlu0 %v1748_v5 }
 0x55e   : > { %1758 = vmax.xlane.f32.xlu0 %v1757_v6 }
 0x562   : > { %v4805_v7 = vpop.f32.mrb[8].mxu1 }
 0x563   : > { %v1920_v8 = vadd.f32 %v4805_v7, %v1677_v55  ;;  %v1911_v9 = vpop.f32.mrb[9].mxu1 }
 0x564   : > { %v4806_v10 = vpop.f32.mrb[10].mxu1  ;;  %v1912_v11 = vadd.f32 %v1911_v9, %v1677_v55 }
 0x565   : > { %v1914_v12 = vpop.f32.mrb[11].mxu1  ;;  %v1932_v13 = vsel %vm1747_vm8, %v1920_v8, -inf  ;;  %v1923_v16 = vadd.f32 %v4806_v10, %v1677_v55 }
 0x566   : > { %v5827_v14 = vadd.f32 %v1914_v12, %v1677_v55  ;;  %1933 = vmax.xlane.f32.xlu0 %v1932_v13  ;;  %v1926_v15 = vsel %vm1747_vm8, %v1912_v11, -inf }
 0x567   : > { %v1935_v17 = vsel %vm1747_vm8, %v1923_v16, -inf }
 0x568   : > { %v1929_v19 = vsel %vm1747_vm8, %v5827_v14, -inf }
 0x56a   : > { %1788 = vrot.lane.b32.xlu1 %v5784_v36, %s5313_s20  ;;  %1927 = vmax.xlane.f32.xlu0 %v1926_v15  ;;  %v5029_v15 = vld [vmem:[%s5582_s8] sm:$0xff]  }
 0x56e   : > { %1964 = vrot.lane.b32.xlu1 %v5786_v38, %s5314_s22 }
 0x580   : > { %1786 = vrot.lane.b32.xlu0 %v5786_v38, %s5313_s20 }
 0x592   : > { %1936 = vmax.xlane.f32.xlu1 %v1935_v17 }
 0x596   : > { %1930 = vmax.xlane.f32.xlu1 %v1929_v19 }
 0x5a7   : > { %1966 = vrot.lane.b32.xlu1 %v5784_v36, %s5314_s22 }
 0x5e3   : > { %v1756_v21 = vpop.xlane.xlu0 %1755 }
 0x5e4   : > { %v1762_v32 = vsub.f32 %v1741_v57, %v1756_v21 }
 0x5e6   : > { %v1753_v22 = vpop.xlane.xlu1 %1752  ;;  %v1768_v18 = vmul.f32 1.442695, %v1762_v32 }
 0x5e7   : > { %v1761_v23 = vsub.f32 %v1736_v33, %v1753_v22  ;;  %v1750_v34 = vpop.xlane.xlu0 %1749 }
 0x5e8   : > { %v1760_v24 = vsub.f32 %v1733_v60, %v1750_v34 }
 0x5e9   : > { %v1766_v27 = vmul.f32 1.442695, %v1761_v23 }
 0x5ea   : > { %v1764_v28 = vmul.f32 1.442695, %v1760_v24  ;;  %v1789_v45 = vpop.permute.xlu1 %1788 }
 0x5eb   : > { %5132 = vpow2.f32 %v1766_v27  ;;  %v1759_v29 = vpop.xlane.xlu0 %1758 }
 0x5ec   : > { %5134 = vpow2.f32 %v1764_v28  ;;  %v1763_v31 = vsub.f32 %v1744_v0, %v1759_v29 }
 0x5ee   : > { %v1770_v35 = vmul.f32 1.442695, %v1763_v31  ;;  %v1965_v49 = vpop.permute.xlu1 %1964 }
 0x5f0   : > { %5136 = vpow2.f32 %v1770_v35 }
 0x5f1   : > { %5138 = vpow2.f32 %v1768_v18 }
 0x5f3   : > { %v1934_v37 = vpop.xlane.xlu0 %1933 }
 0x5f4   : > { %v1940_v40 = vsub.f32 %v1920_v8, %v1934_v37 }
 0x5f5   : > { %v5133_v38 = vpop.eup %5132 }
 0x5f6   : > { %v5135_v39 = vpop.eup %5134  ;;  %v1946_v43 = vmul.f32 1.442695, %v1940_v40 }
 0x5f7   : > { %v1928_v36 = vpop.xlane.xlu0 %1927  ;;  %v1784_v41 = vpack.c.bf16 %v5133_v38, %v5135_v39  ;;  %v1772_v8 = vsel %vm1747_vm8, %v5135_v39, 0.0 }
 0x5f8   : > { %v1938_v42 = vsub.f32 %v1912_v11, %v1928_v36  ;;  %v1775_v11 = vsel %vm1747_vm8, %v5133_v38, 0.0 }
 0x5f9   : > { %4795 = vmatprep.mubr.msk.bf16.mxu0 %vm1747_vm8, %v1784_v41 }
 0x5fa   : > { %v1942_v44 = vmul.f32 1.442695, %v1938_v42  ;;  %v5137_v47 = vpop.eup %5136 }
 0x5fb   : > { %v1787_v46 = vpop.permute.xlu0 %1786  ;;  %v5139_v48 = vpop.eup %5138  ;;  %v1781_v13 = vsel %vm1747_vm8, %v5137_v47, 0.0 }
 0x5fc   : > { %5140 = vpow2.f32 %v1942_v44  ;;  %4791 = vmatprep.subr.bf16.mxu0 %v1787_v46  ;;  %v1785_v50 = vpack.c.bf16 %v5137_v47, %v5139_v48  ;;  %v1778_v12 = vsel %vm1747_vm8, %v5139_v48, 0.0 }
 0x5fd   : > { %4792 = vmatpush3.bf16.msra.mxu0 %v1787_v46  ;;  %5142 = vpow2.f32 %v1946_v43 }
 0x5fe   : > { %4793 = vmatprep.subr.bf16.mxu0 %v1789_v45 }
 0x601   : > { %4794 = vmatpush3.bf16.msra.mxu0 %v1789_v45 }
 0x602   : > { %4807 = vmatprep.subr.bf16.mxu0 %v1965_v49 }
 0x604   : > { %4796 = vmatmul.mubr.msk.bf16.vlgmr.msra.gmra.mrb[0].mxu0 %vm1747_vm8, %v1785_v50 }
 0x605   : > { %4808 = vmatpush3.bf16.msra.mxu0 %v1965_v49 }
 0x606   : > { %v5141_v54 = vpop.eup %5140 }
 0x607   : > { %v1950_v55 = vsel %vm1747_vm8, %v5141_v54, 0.0  ;;  %v5143_v56 = vpop.eup %5142 }
 0x608   : > { %1951 = vadd.xlane.f32.xlu0 %v1950_v55  ;;  %v1956_v57 = vsel %vm1747_vm8, %v5143_v56, 0.0 }
 0x60c   : > { %1957 = vadd.xlane.f32.xlu0 %v1956_v57 }
 0x61f   : > { %v1937_v58 = vpop.xlane.xlu1 %1936 }
 0x620   : > { %v1941_v59 = vsub.f32 %v1923_v16, %v1937_v58  ;;  %v5315_v16 = vmov 0  }
 0x621   : > { %5023 = vset.pattern.permute.xlu1 %v5315_v16  ;;  %5022 = vset.pattern.permute.xlu0 %v5315_v16 }
 0x622   : > { %v1948_v60 = vmul.f32 1.442695, %v1941_v59 }
 0x623   : > { %v1931_v61 = vpop.xlane.xlu1 %1930 }
 0x624   : > { %5144 = vpow2.f32 %v1948_v60  ;;  %v1939_v62 = vsub.f32 %v5827_v14, %v1931_v61  ;;  %v5028_v14 = vld [vmem:[%s5582_s8 + $0x8] sm:$0xff]   ;;  %s6387_s8 = sld [smem:[#allocation21_spill]] }
 0x626   : > { %v1944_v33 = vmul.f32 1.442695, %v1939_v62 }
 0x627   : > { %v1967_v63 = vpop.permute.xlu1 %1966 }
 0x628   : > { %5146 = vpow2.f32 %v1944_v33  ;;  %4809 = vmatprep.subr.bf16.mxu0 %v1967_v63 }
 0x629   : > { %4810 = vmatpush3.bf16.msra.mxu0 %v1967_v63 }
 0x62a   : > { %4815 = vmatprep.subr.bf16.mxu0 %v5028_v14 }
 0x62e   : > { %v5145_v0 = vpop.eup %5144 }
 0x62f   : > { %v1959_v5 = vsel %vm1747_vm8, %v5145_v0, 0.0  ;;  %v1963_v10 = vpack.c.bf16 %v5145_v0, %v5143_v56 }
 0x630   : > { %1960 = vadd.xlane.f32.xlu0 %v1959_v5 }
 0x632   : > { %v5147_v6 = vpop.eup %5146 }
 0x633   : > { %v1953_v7 = vsel %vm1747_vm8, %v5147_v6, 0.0  ;;  %v1962_v9 = vpack.c.bf16 %v5147_v6, %v5141_v54 }
 0x634   : > { %1954 = vadd.xlane.f32.xlu1 %v1953_v7  ;;  %1773 = vadd.xlane.f32.xlu0 %v1772_v8 }
 0x635   : > { %4811 = vmatprep.mubr.msk.bf16.mxu0 %vm1747_vm8, %v1962_v9 }
 0x636   : > { %4812 = vmatmul.mubr.msk.bf16.vlgmr.msra.gmra.mrb[4].mxu0 %vm1747_vm8, %v1963_v10 }
 0x637   : > { %4816 = vmatpush3.bf16.msra.mxu0 %v5028_v14 }
 0x638   : > { %1776 = vadd.xlane.f32.xlu1 %v1775_v11  ;;  %1779 = vadd.xlane.f32.xlu0 %v1778_v12 }
 0x639   : > { %4821 = vmatprep.subr.bf16.mxu0 %v5029_v15 }
 0x63c   : > { %1782 = vadd.xlane.f32.xlu1 %v1781_v13 }
 0x64d   : > { %2168 = vperm.xlu1 %5023, %v5551_v2  }
 0x64e   : > { %2163 = vperm.xlu0 %5022, %v5549_v1  }
 0x651   : > { %2173 = vperm.xlu1 %5023, %v5553_v3  }
 0x655   : > { %2178 = vperm.xlu1 %5023, %v5565_v4  }
 0x695   : > { %v1952_v17 = vpop.xlane.xlu0 %1951 }
 0x699   : > { %v1958_v19 = vpop.xlane.xlu0 %1957 }
 0x6bd   : > { %v1961_v21 = vpop.xlane.xlu0 %1960 }
 0x6c1   : > { %v1955_v22 = vpop.xlane.xlu1 %1954  ;;  %v1774_v23 = vpop.xlane.xlu0 %1773 }
 0x6c2   : > { %5148 = vrcp.f32 %v1774_v23 }
 0x6c5   : > { %v1777_v34 = vpop.xlane.xlu1 %1776  ;;  %v1780_v24 = vpop.xlane.xlu0 %1779 }
 0x6c6   : > { %5150 = vrcp.f32 %v1780_v24 }
 0x6c9   : > { %v1783_v27 = vpop.xlane.xlu1 %1782 }
 0x6ca   : > { %5152 = vrcp.f32 %v1783_v27 }
 0x6cb   : > { %5154 = vrcp.f32 %v1777_v34 }
 0x6cc   : > { %v5149_v28 = vpop.eup %5148  ;;  %5156 = vrcp.f32 %v1952_v17 }
 0x6cd   : > { %5158 = vrcp.f32 %v1958_v19  ;;  %v5862_v57 = vpop.permute.xlu1 %2168  ;;  %v5866_v61 = vpop.permute.xlu0 %2163 }
 0x6ce   : > { %5160 = vrcp.f32 %v1961_v21 }
 0x6cf   : > { %5162 = vrcp.f32 %v1955_v22 }
 0x6d0   : > { %v5151_v29 = vpop.eup %5150 }
 0x6d1   : > { %v5864_v58 = vpop.permute.xlu1 %2173 }
 0x6d4   : > { %v5153_v31 = vpop.eup %5152 }
 0x6d5   : > { %v5155_v32 = vpop.eup %5154  ;;  %v5883_v10 = vpop.permute.xlu1 %2178 }
 0x6d6   : > { %v5157_v36 = vpop.eup %5156 }
 0x6d7   : > { %v4797_v2 = vpop.f32.mrb[0].mxu0  ;;  %v5159_v42 = vpop.eup %5158 }
 0x6d8   : > { %v1832_v1 = vpop.f32.mrb[1].mxu0  ;;  %v1853_v4 = vmul.f32 %v5151_v29, %v4797_v2  ;;  %v5161_v44 = vpop.eup %5160 }
 0x6d9   : > { %v4798_v3 = vpop.f32.mrb[2].mxu0  ;;  %v1851_v37 = vmul.f32 %v5149_v28, %v1832_v1  ;;  %v5163_v46 = vpop.eup %5162 }
 0x6da   : > { %v1854_v35 = vmul.f32 %v5153_v31, %v4798_v3  ;;  %v1835_v18 = vpop.f32.mrb[3].mxu0 }
 0x6db   : > { %v1852_v38 = vmul.f32 %v5155_v32, %v1835_v18  ;;  %v5316_v18 = vmov 0.0  }
 0x6dc   : > { %v1856_v39 = vpack.c.bf16 %v1854_v35, %v1853_v4  ;;  %v5030_v35 = vld [vmem:[%s5592_s3] sm:$0xff]  }
 0x6dd   : > { %v1855_v40 = vpack.c.bf16 %v1852_v38, %v1851_v37  ;;  %v5031_v37 = vld [vmem:[%s5592_s3 + $0x8] sm:$0xff]   ;;  %v5032_v38 = vld [vmem:[%s5587_s2] sm:$0xff]  }
 0x6de   : > { %4827 = vmatprep.subr.bf16.mxu1 %v5032_v38 }
 0x6df   : > { %4828 = vmatpush3.bf16.msra.mxu1 %v5032_v38 }
 0x709   : > { %v4813_v41 = vpop.f32.mrb[4].mxu0 }
 0x70a   : > { %v2010_v43 = vpop.f32.mrb[5].mxu0  ;;  %v2031_v47 = vmul.f32 %v5159_v42, %v4813_v41  ;;  %v5036_v41 = vld [vmem:[%s5587_s2 + $0x10] sm:$0xff]   ;;  %v1504_v42 = vld [vmem:[%s6387_s8] sm:$0xff] }
 0x70b   : > { %v4814_v45 = vpop.f32.mrb[6].mxu0  ;;  %v2029_v50 = vmul.f32 %v5157_v36, %v2010_v43  ;;  %v5035_v36 = vld [vmem:[%s5592_s3 + $0x18] sm:$0xff]   ;;  %v1505_v43 = vld [vmem:[%s6387_s8 + $0x8] sm:$0xff] }
 0x70c   : > { %v2032_v48 = vmul.f32 %v5161_v44, %v4814_v45  ;;  %v2013_v49 = vpop.f32.mrb[7].mxu0  ;;  %v2344_v44 = vpack.c.bf16 %v1505_v43, %v1504_v42  ;;  %v5037_v45 = vld [vmem:[%s5587_s2 + $0x18] sm:$0xff]  }
 0x70d   : > { %v2030_v54 = vmul.f32 %v5163_v46, %v2013_v49 }
 0x70e   : > { %v2034_v55 = vpack.c.bf16 %v2032_v48, %v2031_v47 }
 0x70f   : > { %v2033_v56 = vpack.c.bf16 %v2030_v54, %v2029_v50 }
 0x711   : > { %4817 = vmatprep.mubr.msk.bf16.mxu0 %vm1685_vm6, %v2033_v56 }
 0x712   : > { %4818 = vmatmul.mubr.msk.bf16.vlgmr.msra.gmra.mrb[8].mxu0 %vm1685_vm6, %v2034_v55 }
 0x713   : > { %4822 = vmatpush3.bf16.msra.mxu0 %v5029_v15  ;;  %4823 = vmatprep.mubr.msk.bf16.mxu0 %vm1685_vm6, %v1855_v40  ;;  %v5034_v40 = vld [vmem:[%s5587_s2 + $0x8] sm:$0xff]   ;;  %s6388_s2 = sld [smem:[#allocation19_spill]] }
 0x714   : > { %4839 = vmatprep.subr.bf16.mxu0 %v5316_v18  ;;  %4829 = vmatprep.subr.bf16.mxu1 %v5034_v40 }
 0x715   : > { %4830 = vmatpush3.bf16.msra.mxu1 %v5034_v40 }
 0x716   : > { %4831 = vmatprep.subr.bf16.mxu1 %v5036_v41 }
 0x719   : > { %4832 = vmatpush3.bf16.msra.mxu1 %v5036_v41  ;;  %s6390_s4 = scalar_lea.vmem %s6389_s23, %s6388_s2 }
 0x71a   : > { %4833 = vmatprep.subr.bf16.mxu1 %v5037_v45  ;;  %v1501_v42 = vld [vmem:[%s6390_s4] sm:$0x1] }
 0x71b   : > { %vm1502_vm10 = vcmp.gt.f32.partialorder %v1501_v42, 0.0 }
 0x71c   : > { %v1503_v43 = vsel %vm1502_vm10, 0.0, %v5312_v53 }
 0x71d   : > { %4834 = vmatpush3.bf16.msra.mxu1 %v5037_v45 }
 0x71e   : > { %4824 = vmatmul.mubr.msk.bf16.vlgmr.msra.gmra.mrb[8].mxu0 %vm1685_vm6, %v1856_v39  ;;  %v5033_v39 = vld [vmem:[%s5592_s3 + $0x10] sm:$0xff]  }
 0x71f   : > { %4840 = vmatpush3.bf16.msra.mxu0 %v5030_v35  ;;  %4847 = vmatprep.mubr.msk.bf16.mxu0 %vm5317_vm9, %v5316_v18 }
 0x720   : > { %4841 = vmatprep.subr.bf16.mxu0 %v5316_v18 }
 0x723   : > { %4842 = vmatpush3.bf16.msra.mxu0 %v5031_v37 }
 0x724   : > { %4843 = vmatprep.subr.bf16.mxu0 %v5316_v18 }
 0x727   : > { %4844 = vmatpush3.bf16.msra.mxu0 %v5033_v39 }
 0x728   : > { %4845 = vmatprep.subr.bf16.mxu0 %v5316_v18 }
 0x72b   : > { %4846 = vmatpush3.bf16.msra.mxu0 %v5035_v36 }
 0x72e   : > { %4848 = vmatmul.mubr.msk.bf16.vlgmr.msra.gmra.mrb[12].mxu0 %vm1508_vm5, %v2344_v44  ;;  %v2432_v44 = vrot.slane %v1503_v43, %v5818_v52 }
 0x7f1   : > { %v4825_v59 = vpop.f32.mrb[8].mxu0 }
 0x7f2   : > { %v2142_v60 = vpop.f32.mrb[9].mxu0  ;;  %v2159_v62 = vadd.f32 %v4825_v59, %v5754_v25 }
 0x7f3   : > { %v2157_v33 = vadd.f32 %v2142_v60, %v5752_v20  ;;  %v4826_v63 = vpop.f32.mrb[10].mxu0 }
 0x7f4   : > { %v2145_v0 = vpop.f32.mrb[11].mxu0  ;;  %v5875_v7 = vmul.f32 %v5864_v58, %v2159_v62  ;;  %v2160_v8 = vadd.f32 %v4826_v63, %v5764_v30 }
 0x7f5   : > { %v2158_v5 = vadd.f32 %v2145_v0, %v5756_v26  ;;  %v5872_v6 = vmul.f32 %v5866_v61, %v2157_v33 }
 0x7f6   : > { %v5888_v26 = vmul.f32 %v5883_v10, %v2160_v8  ;;  %v2193_v11 = vsel %vm1508_vm5, %v5875_v7, 0.0 }
 0x7f7   : > { %v5879_v9 = vmul.f32 %v5862_v57, %v2158_v5  ;;  %v2187_v25 = vsel %vm1508_vm5, %v5872_v6, 0.0  ;;  %v4445_v5 = vld [vmem:[%s5563_s19 + $0x1] ss:$0 sm:$0xff] }
 0x7f8   : > { %2188 = vadd.xlane.f32.xlu1 %v2187_v25  ;;  %v2196_v30 = vsel %vm1508_vm5, %v5888_v26, 0.0 }
 0x7f9   : > { %v2190_v20 = vsel %vm1508_vm5, %v5879_v9, 0.0 }
 0x7fa   : > { %2191 = vadd.xlane.f32.xlu0 %v2190_v20 }
 0x7fc   : > { %2194 = vadd.xlane.f32.xlu1 %v2193_v11 }
 0x800   : > { %2197 = vadd.xlane.f32.xlu1 %v2196_v30 }
 0x885   : > { %v2189_v12 = vpop.xlane.xlu1 %2188 }
 0x886   : > { %v2199_v13 = vmul.f32 0.015625, %v2189_v12  ;;  %v4446_v12 = vld [vmem:[%s5570_s0 + $0x1] ss:$0 sm:$0xff] }
 0x887   : > { %v2192_v14 = vpop.xlane.xlu0 %2191 }
 0x888   : > { %v5895_v15 = vsub.f32 %v5872_v6, %v2199_v13  ;;  %v2200_v17 = vmul.f32 0.015625, %v2192_v14 }
 0x889   : > { %v2195_v19 = vpop.xlane.xlu1 %2194 }
 0x88a   : > { %v5898_v21 = vsub.f32 %v5879_v9, %v2200_v17  ;;  %v2201_v22 = vmul.f32 0.015625, %v2195_v19  ;;  %v2207_v23 = vmul.f32 %v5895_v15, %v5895_v15 }
 0x88c   : > { %v5903_v34 = vsub.f32 %v5875_v7, %v2201_v22  ;;  %v2211_v24 = vsel %vm1508_vm5, %v2207_v23, 0.0  ;;  %v2208_v27 = vmul.f32 %v5898_v21, %v5898_v21 }
 0x88d   : > { %2212 = vadd.xlane.f32.xlu1 %v2211_v24  ;;  %v2198_v28 = vpop.xlane.xlu1 %2197 }
 0x88e   : > { %v2202_v2 = vmul.f32 0.015625, %v2198_v28  ;;  %v2209_v29 = vmul.f32 %v5903_v34, %v5903_v34  ;;  %v2214_v3 = vsel %vm1508_vm5, %v2208_v27, 0.0 }
 0x890   : > { %v5911_v1 = vsub.f32 %v5888_v26, %v2202_v2  ;;  %v2217_v31 = vsel %vm1508_vm5, %v2209_v29, 0.0 }
 0x891   : > { %2218 = vadd.xlane.f32.xlu0 %v2217_v31  ;;  %2215 = vadd.xlane.f32.xlu1 %v2214_v3 }
 0x892   : > { %v2210_v32 = vmul.f32 %v5911_v1, %v5911_v1 }
 0x894   : > { %v2220_v4 = vsel %vm1508_vm5, %v2210_v32, 0.0 }
 0x895   : > { %2221 = vadd.xlane.f32.xlu1 %v2220_v4 }
 0x91a   : > { %v2213_v46 = vpop.xlane.xlu1 %2212 }
 0x91b   : > { %v2223_v47 = vmul.f32 0.015625, %v2213_v46 }
 0x91d   : > { %v2227_v48 = vadd.f32 1e-05, %v2223_v47 }
 0x91e   : > { %v2216_v49 = vpop.xlane.xlu1 %2215  ;;  %v2219_v50 = vpop.xlane.xlu0 %2218 }
 0x91f   : > { %5164 = vrsqrt.f32 %v2227_v48  ;;  %v2224_v54 = vmul.f32 0.015625, %v2216_v49  ;;  %v2225_v55 = vmul.f32 0.015625, %v2219_v50 }
 0x921   : > { %v2228_v56 = vadd.f32 1e-05, %v2224_v54  ;;  %v2229_v59 = vadd.f32 1e-05, %v2225_v55 }
 0x922   : > { %v2222_v60 = vpop.xlane.xlu1 %2221 }
 0x923   : > { %5166 = vrsqrt.f32 %v2228_v56  ;;  %v2226_v62 = vmul.f32 0.015625, %v2222_v60 }
 0x924   : > { %5168 = vrsqrt.f32 %v2229_v59 }
 0x925   : > { %v2230_v33 = vadd.f32 1e-05, %v2226_v62 }
 0x927   : > { %5170 = vrsqrt.f32 %v2230_v33 }
 0x929   : > { %v5165_v63 = vpop.eup %5164 }
 0x92a   : > { %v2235_v0 = vmul.f32 %v5165_v63, %v5895_v15 }
 0x92c   : > { %v2243_v11 = vmul.f32 %v4445_v5, %v2235_v0 }
 0x92d   : > { %v5167_v8 = vpop.eup %5166 }
 0x92e   : > { %v5169_v25 = vpop.eup %5168  ;;  %v2236_v20 = vmul.f32 %v5167_v8, %v5898_v21  ;;  %v2251_v22 = vadd.f32 %v4446_v12, %v2243_v11  ;;  %v2414_v21 = vpop.f32.mrb[12].mxu0 }
 0x92f   : > { %v2237_v30 = vmul.f32 %v5169_v25, %v5903_v34  ;;  %v4849_v29 = vpop.f32.mrb[13].mxu0 }
 0x930   : > { %v2244_v13 = vmul.f32 %v4445_v5, %v2236_v20  ;;  %v2417_v34 = vpop.f32.mrb[14].mxu0 }
 0x931   : > { %v5171_v14 = vpop.eup %5170  ;;  %v2245_v17 = vmul.f32 %v4445_v5, %v2237_v30  ;;  %v5937_v31 = vpack.c.bf16 %v2417_v34, %v2414_v21  ;;  %v4850_v3 = vpop.f32.mrb[15].mxu0 }
 0x932   : > { %v2238_v19 = vmul.f32 %v5171_v14, %v5911_v1  ;;  %v2252_v23 = vadd.f32 %v4446_v12, %v2244_v13 }
 0x933   : > { %v2253_v15 = vadd.f32 %v4446_v12, %v2245_v17  ;;  %4918 = vmatprep.subr.msk.bf16.mxu1 %vm1685_vm6, %v5937_v31  ;;  %2605 = vrot.lane.b32.xlu0 %v5937_v31, %s5311_s7  ;;  %v2441_v1 = vsel %vm1685_vm6, %v5937_v31, 0 }
 0x934   : > { %v2246_v24 = vmul.f32 %v4445_v5, %v2238_v19  ;;  %v2255_v27 = vpack.c.bf16 %v2252_v23, %v2251_v22 }
 0x936   : > { %4835 = vmatprep.mubr.msk.bf16.mxu1 %vm1508_vm5, %v2255_v27  ;;  %v2254_v28 = vadd.f32 %v4446_v12, %v2246_v24 }
 0x938   : > { %v2256_v2 = vpack.c.bf16 %v2254_v28, %v2253_v15 }
 0x93a   : > { %4836 = vmatmul.mubr.msk.bf16.vlgmr.msra.gmra.mrb[12].mxu1 %vm1508_vm5, %v2256_v2 }
 0x93b   : > { %4852 = vmatpush3.bf16.xpose.msra.mxu1 %v2441_v1 }
 0x9a5   : > { %v2606_v32 = vpop.permute.xlu0 %2605 }
 0x9a6   : > { %v2614_v4 = vsel %vm1685_vm6, %v2606_v32, 0  ;;  %4919 = vmatprep.subr.msk.bf16.mxu0 %vm1685_vm6, %v2606_v32 }
 0x9a7   : > { %4864 = vmatpush3.bf16.xpose.msra.mxu0 %v2614_v4 }
 0xa0d   : > { %v4837_v35 = vpop.f32.mrb[12].mxu1 }
 0xa0e   : > { %v2329_v18 = vpop.f32.mrb[13].mxu1 }
 0xa0f   : > { %v4838_v37 = vpop.f32.mrb[14].mxu1 }
 0xa10   : > { %v2426_v38 = vpack.c.bf16 %v4838_v37, %v4837_v35  ;;  %v2332_v39 = vpop.f32.mrb[15].mxu1 }
 0xa11   : > { %v2425_v40 = vpack.c.bf16 %v2332_v39, %v2329_v18 }
 0xa13   : > { %2601 = vrot.lane.b32.xlu1 %v2425_v40, %s5311_s7  ;;  %4853 = vmatprep.mubr.msk.bf16.mxu1 %vm1685_vm6, %v2425_v40 }
 0xa14   : > { %4854 = vmatmul.mubr.msk.bf16.vlgmr.msra.gmra.mrb[16].mxu1 %vm1685_vm6, %v2426_v38 }
 0xa17   : > { %2603 = vrot.lane.b32.xlu1 %v2426_v38, %s5311_s7 }
 0xa85   : > { %v2602_v36 = vpop.permute.xlu1 %2601 }
 0xa86   : > { %4865 = vmatprep.mubr.msk.bf16.mxu0 %vm1685_vm6, %v2602_v36 }
 0xa89   : > { %v2604_v41 = vpop.permute.xlu1 %2603 }
 0xa8a   : > { %4866 = vmatmul.mubr.msk.bf16.vlgmr.msra.gmra.mrb[16].mxu0 %vm1685_vm6, %v2604_v41 }
 0xae7   : > { %v4855_v45 = vpop.f32.mrb[16].mxu1 }
 0xae8   : > { %v2486_v46 = vadd.f32 %v4855_v45, %v2432_v44  ;;  %v2477_v47 = vpop.f32.mrb[17].mxu1 }
 0xae9   : > { %v4856_v48 = vpop.f32.mrb[18].mxu1  ;;  %v2478_v49 = vadd.f32 %v2477_v47, %v2432_v44 }
 0xaea   : > { %v2480_v50 = vpop.f32.mrb[19].mxu1  ;;  %v2498_v54 = vsel %vm1685_vm6, %v2486_v46, -inf  ;;  %v2489_v59 = vadd.f32 %v4856_v48, %v2432_v44 }
 0xaeb   : > { %v2481_v55 = vadd.f32 %v2480_v50, %v2432_v44  ;;  %2499 = vmax.xlane.f32.xlu0 %v2498_v54  ;;  %v2492_v60 = vsel %vm1685_vm6, %v2478_v49, -inf }
 0xaec   : > { %v2501_v53 = vsel %vm1685_vm6, %v2489_v59, -inf }
 0xaed   : > { %v2495_v56 = vsel %vm1685_vm6, %v2481_v55, -inf }
 0xaee   : > { %2496 = vmax.xlane.f32.xlu1 %v2495_v56 }
 0xaef   : > { %2493 = vmax.xlane.f32.xlu0 %v2492_v60 }
 0xaf3   : > { %2502 = vmax.xlane.f32.xlu0 %v2501_v53 }
 0xb5d   : > { %v4867_v62 = vpop.f32.mrb[16].mxu0 }
 0xb5e   : > { %v2659_v33 = vadd.f32 %v4867_v62, %v2432_v44  ;;  %v2650_v63 = vpop.f32.mrb[17].mxu0 }
 0xb5f   : > { %v4868_v0 = vpop.f32.mrb[18].mxu0  ;;  %v2651_v5 = vadd.f32 %v2650_v63, %v2432_v44 }
 0xb60   : > { %v2662_v8 = vadd.f32 %v4868_v0, %v2432_v44  ;;  %v2653_v25 = vpop.f32.mrb[19].mxu0  ;;  %v2671_v20 = vsel %vm1685_vm6, %v2659_v33, -inf }
 0xb61   : > { %2672 = vmax.xlane.f32.xlu1 %v2671_v20  ;;  %v2654_v11 = vadd.f32 %v2653_v25, %v2432_v44  ;;  %v2665_v12 = vsel %vm1685_vm6, %v2651_v5, -inf  ;;  %v5039_v25 = vld [vmem:[%s6391_s24] sm:$0xff]  }
 0xb62   : > { %v2674_v30 = vsel %vm1685_vm6, %v2662_v8, -inf }
 0xb63   : > { %2675 = vmax.xlane.f32.xlu0 %v2674_v30  ;;  %v2668_v13 = vsel %vm1685_vm6, %v2654_v11, -inf }
 0xb65   : > { %2666 = vmax.xlane.f32.xlu1 %v2665_v12 }
 0xb67   : > { %2669 = vmax.xlane.f32.xlu0 %v2668_v13 }
 0xb76   : > { %2531 = vrot.lane.b32.xlu1 %v5937_v31, %s5309_s30 }
 0xb78   : > { %v2500_v14 = vpop.xlane.xlu0 %2499 }
 0xb79   : > { %v2506_v34 = vsub.f32 %v2486_v46, %v2500_v14 }
 0xb7b   : > { %v2497_v17 = vpop.xlane.xlu1 %2496  ;;  %v2512_v1 = vmul.f32 1.442695, %v2506_v34 }
 0xb7c   : > { %v2505_v19 = vsub.f32 %v2481_v55, %v2497_v17  ;;  %v2494_v22 = vpop.xlane.xlu0 %2493 }
 0xb7d   : > { %v2504_v23 = vsub.f32 %v2478_v49, %v2494_v22  ;;  %2703 = vrot.lane.b32.xlu0 %v5937_v31, %s5310_s1 }
 0xb7e   : > { %v2510_v24 = vmul.f32 1.442695, %v2505_v19 }
 0xb7f   : > { %v2508_v27 = vmul.f32 1.442695, %v2504_v23 }
 0xb80   : > { %5172 = vpow2.f32 %v2510_v24  ;;  %v2503_v21 = vpop.xlane.xlu0 %2502 }
 0xb81   : > { %5174 = vpow2.f32 %v2508_v27  ;;  %v2507_v29 = vsub.f32 %v2489_v59, %v2503_v21 }
 0xb83   : > { %v2514_v3 = vmul.f32 1.442695, %v2507_v29 }
 0xb85   : > { %5176 = vpow2.f32 %v2514_v3 }
 0xb86   : > { %5178 = vpow2.f32 %v2512_v1 }
 0xb8a   : > { %v5173_v15 = vpop.eup %5172 }
 0xb8b   : > { %v5175_v28 = vpop.eup %5174  ;;  %v2519_v63 = vsel %vm1685_vm6, %v5173_v15, 0.0 }
 0xb8c   : > { %v2528_v2 = vpack.c.bf16 %v5173_v15, %v5175_v28 }
 0xb8e   : > { %4859 = vmatprep.mubr.msk.bf16.mxu1 %vm1685_vm6, %v2528_v2 }
 0xb8f   : > { %v5177_v42 = vpop.eup %5176 }
 0xb90   : > { %v5179_v45 = vpop.eup %5178 }
 0xb91   : > { %v2529_v47 = vpack.c.bf16 %v5177_v42, %v5179_v45  ;;  %v2522_v0 = vsel %vm1685_vm6, %v5179_v45, 0.0 }
 0xbee   : > { %v2673_v32 = vpop.xlane.xlu1 %2672 }
 0xbef   : > { %v2679_v4 = vsub.f32 %v2659_v33, %v2673_v32  ;;  %v2516_v33 = vsel %vm1685_vm6, %v5175_v28, 0.0 }
 0xbf0   : > { %v2676_v35 = vpop.xlane.xlu0 %2675 }
 0xbf1   : > { %v2680_v31 = vsub.f32 %v2662_v8, %v2676_v35  ;;  %v2685_v18 = vmul.f32 1.442695, %v2679_v4  ;;  %v5038_v8 = vld [vmem:[%s6391_s24 + $0x8] sm:$0xff]  }
 0xbf2   : > { %v2667_v37 = vpop.xlane.xlu1 %2666  ;;  %4875 = vmatprep.subr.bf16.mxu0 %v5038_v8 }
 0xbf3   : > { %v2677_v38 = vsub.f32 %v2651_v5, %v2667_v37  ;;  %v2687_v39 = vmul.f32 1.442695, %v2680_v31  ;;  %5180 = vpow2.f32 %v2685_v18  ;;  %v2525_v5 = vsel %vm1685_vm6, %v5177_v42, 0.0  ;;  %4876 = vmatpush3.bf16.msra.mxu0 %v5038_v8 }
 0xbf4   : > { %v2670_v40 = vpop.xlane.xlu0 %2669  ;;  %4881 = vmatprep.subr.bf16.mxu0 %v5039_v25 }
 0xbf5   : > { %v2681_v36 = vmul.f32 1.442695, %v2677_v38  ;;  %v2678_v41 = vsub.f32 %v2654_v11, %v2670_v40 }
 0xbf6   : > { %v2532_v43 = vpop.permute.xlu1 %2531 }
 0xbf7   : > { %5182 = vpow2.f32 %v2681_v36  ;;  %v2683_v44 = vmul.f32 1.442695, %v2678_v41  ;;  %4857 = vmatprep.subr.bf16.mxu1 %v2532_v43 }
 0xbf8   : > { %5184 = vpow2.f32 %v2687_v39  ;;  %4858 = vmatpush3.bf16.msra.mxu1 %v2532_v43  ;;  %v2704_v46 = vpop.permute.xlu0 %2703 }
 0xbf9   : > { %5186 = vpow2.f32 %v2683_v44  ;;  %4869 = vmatprep.subr.bf16.mxu1 %v2704_v46 }
 0xbfb   : > { %4860 = vmatmul.mubr.msk.bf16.vlgmr.msra.gmra.mrb[20].mxu1 %vm1685_vm6, %v2529_v47 }
 0xbfc   : > { %4870 = vmatpush3.bf16.msra.mxu1 %v2704_v46 }
 0xbfd   : > { %v5181_v48 = vpop.eup %5180 }
 0xbfe   : > { %v2695_v53 = vsel %vm1685_vm6, %v5181_v48, 0.0 }
 0xc01   : > { %v5183_v49 = vpop.eup %5182 }
 0xc02   : > { %v5185_v50 = vpop.eup %5184  ;;  %v2689_v54 = vsel %vm1685_vm6, %v5183_v49, 0.0 }
 0xc03   : > { %v5187_v55 = vpop.eup %5186  ;;  %2690 = vadd.xlane.f32.xlu1 %v2689_v54  ;;  %v2702_v60 = vpack.c.bf16 %v5185_v50, %v5181_v48  ;;  %v2698_v62 = vsel %vm1685_vm6, %v5185_v50, 0.0 }
 0xc04   : > { %v2692_v56 = vsel %vm1685_vm6, %v5187_v55, 0.0  ;;  %v2701_v59 = vpack.c.bf16 %v5187_v55, %v5183_v49 }
 0xc05   : > { %2693 = vadd.xlane.f32.xlu0 %v2692_v56 }
 0xc06   : > { %4871 = vmatprep.mubr.msk.bf16.mxu1 %vm1685_vm6, %v2701_v59 }
 0xc07   : > { %2696 = vadd.xlane.f32.xlu1 %v2695_v53  ;;  %4872 = vmatmul.mubr.msk.bf16.vlgmr.msra.gmra.mrb[24].mxu1 %vm1685_vm6, %v2702_v60 }
 0xc08   : > { %3076 = vmatprep.mubr.bf16.mxu1 %v5315_v16 }
 0xc09   : > { %2699 = vadd.xlane.f32.xlu0 %v2698_v62 }
 0xc0b   : > { %2517 = vadd.xlane.f32.xlu1 %v2516_v33 }
 0xc0d   : > { %2520 = vadd.xlane.f32.xlu0 %v2519_v63 }
 0xc0f   : > { %2523 = vadd.xlane.f32.xlu1 %v2522_v0 }
 0xc11   : > { %2526 = vadd.xlane.f32.xlu0 %v2525_v5 }
 0xc90   : > { %v2691_v20 = vpop.xlane.xlu1 %2690 }
 0xc92   : > { %v2694_v11 = vpop.xlane.xlu0 %2693 }
 0xc94   : > { %v2697_v30 = vpop.xlane.xlu1 %2696 }
 0xc96   : > { %v2700_v12 = vpop.xlane.xlu0 %2699 }
 0xc98   : > { %v2518_v13 = vpop.xlane.xlu1 %2517 }
 0xc99   : > { %5188 = vrcp.f32 %v2518_v13 }
 0xc9a   : > { %v2521_v14 = vpop.xlane.xlu0 %2520 }
 0xc9c   : > { %v2524_v17 = vpop.xlane.xlu1 %2523 }
 0xc9d   : > { %5190 = vrcp.f32 %v2524_v17 }
 0xc9e   : > { %v2527_v19 = vpop.xlane.xlu0 %2526 }
 0xc9f   : > { %5192 = vrcp.f32 %v2527_v19 }
 0xca0   : > { %5194 = vrcp.f32 %v2521_v14 }
 0xca1   : > { %5196 = vrcp.f32 %v2691_v20 }
 0xca2   : > { %5198 = vrcp.f32 %v2697_v30 }
 0xca3   : > { %v5189_v22 = vpop.eup %5188  ;;  %5200 = vrcp.f32 %v2700_v12 }
 0xca4   : > { %5202 = vrcp.f32 %v2694_v11 }
 0xca7   : > { %v5191_v24 = vpop.eup %5190 }
 0xca9   : > { %v5193_v15 = vpop.eup %5192 }
 0xcaa   : > { %v5195_v2 = vpop.eup %5194 }
 0xcab   : > { %v5197_v35 = vpop.eup %5196 }
 0xcac   : > { %v5199_v18 = vpop.eup %5198 }
 0xcad   : > { %v5201_v38 = vpop.eup %5200 }
 0xcae   : > { %v5203_v40 = vpop.eup %5202 }
 0xcce   : > { %v4861_v23 = vpop.f32.mrb[20].mxu1 }
 0xccf   : > { %v2574_v27 = vpop.f32.mrb[21].mxu1  ;;  %v2595_v21 = vmul.f32 %v5191_v24, %v4861_v23 }
 0xcd0   : > { %v4862_v28 = vpop.f32.mrb[22].mxu1  ;;  %v2593_v3 = vmul.f32 %v5189_v22, %v2574_v27 }
 0xcd1   : > { %v2596_v29 = vmul.f32 %v5193_v15, %v4862_v28  ;;  %v2577_v34 = vpop.f32.mrb[23].mxu1 }
 0xcd2   : > { %v2594_v1 = vmul.f32 %v5195_v2, %v2577_v34  ;;  %v5040_v34 = vld [vmem:[%s5610_s28] ss:$8 sps:$4 sm:$0xff]  }
 0xcd3   : > { %v2598_v32 = vpack.c.bf16 %v2596_v29, %v2595_v21  ;;  %v5042_v21 = vld [vmem:[%s5610_s28 + $0x4] ss:$8 sps:$4 sm:$0xff]  }
 0xcd4   : > { %v2597_v4 = vpack.c.bf16 %v2594_v1, %v2593_v3  ;;  %v5045_v29 = vld [vmem:[%s5610_s28 + $0x44] ss:$8 sps:$4 sm:$0xff]   ;;  %v5043_v3 = vld [vmem:[%s5610_s28 + $0x40] ss:$8 sps:$4 sm:$0xff]   ;;  %3044 = vmatprep.subr.bf16.mxu1 %v5042_v21  ;;  %v5048_v1 = vld [vmem:[%s5610_s28 + $0x14] ss:$8 sps:$4 sm:$0xff]  }
 0xcd5   : > { %3045 = vmatpush1.bf16.msra.mxu1 %v5040_v34  ;;  %v5073_v34 = vld [vmem:[%s5610_s28 + $0xb0] ss:$8 sps:$4 sm:$0xff]  }
 0xcd6   : > { %3046 = vmatprep.subr.bf16.mxu1 %v5048_v1  ;;  %v5077_v1 = vld [vmem:[%s5619_s16] sm:$0xff]  }
 0xcda   : > { %v4873_v31 = vpop.f32.mrb[24].mxu1 }
 0xcdb   : > { %v2746_v37 = vpop.f32.mrb[25].mxu1  ;;  %v2767_v36 = vmul.f32 %v5199_v18, %v4873_v31  ;;  %v5054_v31 = vld [vmem:[%s5610_s28 + $0x24] ss:$8 sps:$4 sm:$0xff]  }
 0xcdc   : > { %v4874_v39 = vpop.f32.mrb[26].mxu1  ;;  %v2765_v43 = vmul.f32 %v5197_v35, %v2746_v37  ;;  %v5049_v35 = vld [vmem:[%s5610_s28 + $0x50] ss:$8 sps:$4 sm:$0xff]   ;;  %v5057_v18 = vld [vmem:[%s5610_s28 + $0x64] ss:$8 sps:$4 sm:$0xff]  }
 0xcdd   : > { %v2768_v41 = vmul.f32 %v5201_v38, %v4874_v39  ;;  %v2749_v42 = vpop.f32.mrb[27].mxu1  ;;  %v5052_v37 = vld [vmem:[%s5610_s28 + $0x20] ss:$8 sps:$4 sm:$0xff]   ;;  %v5060_v39 = vld [vmem:[%s5610_s28 + $0x34] ss:$8 sps:$4 sm:$0xff]  }
 0xcde   : > { %v2766_v44 = vmul.f32 %v5203_v40, %v2749_v42  ;;  %v5055_v38 = vld [vmem:[%s5610_s28 + $0x60] ss:$8 sps:$4 sm:$0xff]   ;;  %v5063_v40 = vld [vmem:[%s5610_s28 + $0x74] ss:$8 sps:$4 sm:$0xff]   ;;  %v5066_v42 = vld [vmem:[%s5610_s28 + $0x84] ss:$8 sps:$4 sm:$0xff]  }
 0xcdf   : > { %v2770_v45 = vpack.c.bf16 %v2768_v41, %v2767_v36  ;;  %v5058_v36 = vld [vmem:[%s5610_s28 + $0x30] ss:$8 sps:$4 sm:$0xff]  }
 0xce0   : > { %v2769_v46 = vpack.c.bf16 %v2766_v44, %v2765_v43  ;;  %v5061_v41 = vld [vmem:[%s5610_s28 + $0x70] ss:$8 sps:$4 sm:$0xff]  }
 0xce2   : > { %4877 = vmatprep.mubr.msk.bf16.mxu0 %vm1685_vm6, %v2769_v46 }
 0xce3   : > { %4878 = vmatmul.mubr.msk.bf16.vlgmr.msra.gmra.mrb[20].mxu0 %vm1685_vm6, %v2770_v45 }
 0xce4   : > { %4882 = vmatpush3.bf16.msra.mxu0 %v5039_v25  ;;  %4883 = vmatprep.mubr.msk.bf16.mxu0 %vm1685_vm6, %v2597_v4  ;;  %v5046_v4 = vld [vmem:[%s5610_s28 + $0x10] ss:$8 sps:$4 sm:$0xff]  }
 0xce5   : > { %3191 = vmatprep.subr.bf16.mxu0 %v5045_v29  ;;  %3047 = vmatpush1.bf16.msra.mxu1 %v5046_v4  ;;  %v5075_v29 = vld [vmem:[%s5610_s28 + $0xb4] ss:$8 sps:$4 sm:$0xff]   ;;  %v5079_v4 = vld [vmem:[%s5619_s16 + $0x80] sm:$0xff]  }
 0xce6   : > { %3048 = vmatprep.subr.bf16.mxu1 %v5054_v31  ;;  %v5081_v31 = vld [vmem:[%s5619_s16 + $0x8] sm:$0xff]  }
 0xce9   : > { %3049 = vmatpush1.bf16.msra.mxu1 %v5052_v37  ;;  %v5084_v37 = vld [vmem:[%s5619_s16 + $0x50] sm:$0xff]  }
 0xcea   : > { %3050 = vmatprep.subr.bf16.mxu1 %v5060_v39  ;;  %v5086_v39 = vld [vmem:[%s5619_s16 + $0xd0] sm:$0xff]  }
 0xced   : > { %3051 = vmatpush1.bf16.msra.mxu1 %v5058_v36  ;;  %v5088_v36 = vld [vmem:[%s5619_s16 + $0x58] sm:$0xff]  }
 0xcee   : > { %3292 = vmatprep.subr.bf16.mxu1 %v5066_v42  ;;  %v5090_v42 = vld [vmem:[%s5619_s16 + $0xd8] sm:$0xff]  }
 0xcef   : > { %4884 = vmatmul.mubr.msk.bf16.vlgmr.msra.gmra.mrb[20].mxu0 %vm1685_vm6, %v2598_v32  ;;  %v5051_v32 = vld [vmem:[%s5610_s28 + $0x54] ss:$8 sps:$4 sm:$0xff]  }
 0xcf0   : > { %3223 = vmatprep.mubr.bf16.mxu0 %v5315_v16  ;;  %3192 = vmatpush1.bf16.msra.mxu0 %v5043_v3  ;;  %v5076_v3 = vld [vmem:[%s5619_s16 + $0x40] sm:$0xff]  }
 0xcf1   : > { %3193 = vmatprep.subr.bf16.mxu0 %v5051_v32  ;;  %v5078_v32 = vld [vmem:[%s5619_s16 + $0xc0] sm:$0xff]  }
 0xcf4   : > { %3194 = vmatpush1.bf16.msra.mxu0 %v5049_v35  ;;  %v5080_v35 = vld [vmem:[%s5619_s16 + $0x48] sm:$0xff]  }
 0xcf5   : > { %3195 = vmatprep.subr.bf16.mxu0 %v5057_v18  ;;  %v5082_v18 = vld [vmem:[%s5619_s16 + $0xc8] sm:$0xff]  }
 0xcf8   : > { %3196 = vmatpush1.bf16.msra.mxu0 %v5055_v38  ;;  %v5085_v38 = vld [vmem:[%s5619_s16 + $0x10] sm:$0xff]  }
 0xcf9   : > { %3197 = vmatprep.subr.bf16.mxu0 %v5063_v40  ;;  %v5087_v40 = vld [vmem:[%s5619_s16 + $0x90] sm:$0xff]  }
 0xcfc   : > { %3198 = vmatpush1.bf16.msra.mxu0 %v5061_v41  ;;  %v5089_v41 = vld [vmem:[%s5619_s16 + $0x18] sm:$0xff]  }
 0xcfd   : > { %4646 = vmatprep.subr.bf16.mxu0 %v5076_v3 }
 0xdc2   : > { %v4885_v47 = vpop.f32.mrb[20].mxu0 }
 0xdc3   : > { %v2878_v48 = vpop.f32.mrb[21].mxu0  ;;  %v2895_v49 = vadd.f32 %v4885_v47, %v5875_v7 }
 0xdc4   : > { %v2893_v50 = vadd.f32 %v2878_v48, %v5872_v6  ;;  %v4886_v54 = vpop.f32.mrb[22].mxu0 }
 0xdc5   : > { %v2881_v55 = vpop.f32.mrb[23].mxu0  ;;  %v2896_v59 = vadd.f32 %v4886_v54, %v5888_v26  ;;  %v6000_v53 = vmul.f32 %v2895_v49, %v5864_v58 }
 0xdc6   : > { %v5995_v56 = vmul.f32 %v2893_v50, %v5866_v61  ;;  %v2894_v60 = vadd.f32 %v2881_v55, %v5879_v9 }
 0xdc7   : > { %v6008_v6 = vmul.f32 %v2896_v59, %v5883_v10  ;;  %v2909_v9 = vsel %vm1508_vm5, %v6000_v53, 0.0 }
 0xdc8   : > { %v6003_v62 = vmul.f32 %v2894_v60, %v5862_v57  ;;  %v2903_v7 = vsel %vm1508_vm5, %v5995_v56, 0.0 }
 0xdc9   : > { %2904 = vadd.xlane.f32.xlu1 %v2903_v7  ;;  %v2912_v26 = vsel %vm1508_vm5, %v6008_v6, 0.0 }
 0xdca   : > { %v2906_v33 = vsel %vm1508_vm5, %v6003_v62, 0.0 }
 0xdcb   : > { %2907 = vadd.xlane.f32.xlu0 %v2906_v33  ;;  %v4472_v33 = vld [vmem:[%s5563_s19 + $0x2] ss:$0 sm:$0xff] }
 0xdcd   : > { %2910 = vadd.xlane.f32.xlu1 %v2909_v9 }
 0xdcf   : > { %2913 = vadd.xlane.f32.xlu0 %v2912_v26 }
 0xe56   : > { %v2905_v63 = vpop.xlane.xlu1 %2904 }
 0xe57   : > { %v2915_v0 = vmul.f32 0.015625, %v2905_v63 }
 0xe58   : > { %v2908_v5 = vpop.xlane.xlu0 %2907 }
 0xe59   : > { %v6017_v8 = vsub.f32 %v5995_v56, %v2915_v0  ;;  %v2916_v25 = vmul.f32 0.015625, %v2908_v5 }
 0xe5a   : > { %v2911_v20 = vpop.xlane.xlu1 %2910 }
 0xe5b   : > { %v6020_v11 = vsub.f32 %v6003_v62, %v2916_v25  ;;  %v2917_v30 = vmul.f32 0.015625, %v2911_v20  ;;  %v2923_v12 = vmul.f32 %v6017_v8, %v6017_v8  ;;  %v4473_v25 = vld [vmem:[%s5570_s0 + $0x2] ss:$0 sm:$0xff] }
 0xe5c   : > { %v2914_v13 = vpop.xlane.xlu0 %2913 }
 0xe5d   : > { %v6025_v14 = vsub.f32 %v6000_v53, %v2917_v30  ;;  %v2918_v17 = vmul.f32 0.015625, %v2914_v13  ;;  %v2927_v19 = vsel %vm1508_vm5, %v2923_v12, 0.0  ;;  %v2924_v22 = vmul.f32 %v6020_v11, %v6020_v11 }
 0xe5e   : > { %2928 = vadd.xlane.f32.xlu1 %v2927_v19 }
 0xe5f   : > { %v6031_v23 = vsub.f32 %v6008_v6, %v2918_v17  ;;  %v2930_v24 = vsel %vm1508_vm5, %v2924_v22, 0.0  ;;  %v2925_v27 = vmul.f32 %v6025_v14, %v6025_v14  ;;  %v5064_v22 = vld [vmem:[%s5610_s28 + $0x80] ss:$8 sps:$4 sm:$0xff]  }
 0xe60   : > { %2931 = vadd.xlane.f32.xlu0 %v2930_v24 }
 0xe61   : > { %v2933_v15 = vsel %vm1508_vm5, %v2925_v27, 0.0  ;;  %v2926_v28 = vmul.f32 %v6031_v23, %v6031_v23 }
 0xe62   : > { %2934 = vadd.xlane.f32.xlu1 %v2933_v15  ;;  %v5067_v15 = vld [vmem:[%s5610_s28 + $0x90] ss:$8 sps:$4 sm:$0xff]  }
 0xe63   : > { %v2936_v2 = vsel %vm1508_vm5, %v2926_v28, 0.0 }
 0xe64   : > { %2937 = vadd.xlane.f32.xlu0 %v2936_v2  ;;  %v5070_v2 = vld [vmem:[%s5610_s28 + $0xa0] ss:$8 sps:$4 sm:$0xff]  }
 0xeeb   : > { %v2929_v43 = vpop.xlane.xlu1 %2928 }
 0xeec   : > { %v2939_v44 = vmul.f32 0.015625, %v2929_v43  ;;  %v5091_v43 = vld [vmem:[%s5619_s16 + $0x98] sm:$0xff]  }
 0xeed   : > { %v2932_v45 = vpop.xlane.xlu0 %2931 }
 0xeee   : > { %v2943_v46 = vadd.f32 1e-05, %v2939_v44  ;;  %v2940_v47 = vmul.f32 0.015625, %v2932_v45  ;;  %v5092_v44 = vld [vmem:[%s5619_s16 + $0x60] sm:$0xff]  }
 0xeef   : > { %v2935_v48 = vpop.xlane.xlu1 %2934  ;;  %v5093_v45 = vld [vmem:[%s5619_s16 + $0x20] sm:$0xff]  }
 0xef0   : > { %5204 = vrsqrt.f32 %v2943_v46  ;;  %v2944_v49 = vadd.f32 1e-05, %v2940_v47  ;;  %v2941_v50 = vmul.f32 0.015625, %v2935_v48  ;;  %v5094_v46 = vld [vmem:[%s5619_s16 + $0xe0] sm:$0xff]   ;;  %v5096_v48 = vld [vmem:[%s5619_s16 + $0x68] sm:$0xff]  }
 0xef1   : > { %v2938_v54 = vpop.xlane.xlu0 %2937  ;;  %v5095_v47 = vld [vmem:[%s5619_s16 + $0xa0] sm:$0xff]  }
 0xef2   : > { %5206 = vrsqrt.f32 %v2944_v49  ;;  %v2945_v55 = vadd.f32 1e-05, %v2941_v50  ;;  %v2942_v59 = vmul.f32 0.015625, %v2938_v54  ;;  %v5097_v49 = vld [vmem:[%s5619_s16 + $0x28] sm:$0xff]  }
 0xef3   : > { %v5098_v50 = vld [vmem:[%s5619_s16 + $0xe8] sm:$0xff]  }
 0xef4   : > { %5208 = vrsqrt.f32 %v2945_v55  ;;  %v2946_v60 = vadd.f32 1e-05, %v2942_v59  ;;  %v5099_v54 = vld [vmem:[%s5619_s16 + $0xa8] sm:$0xff]   ;;  %v5100_v55 = vld [vmem:[%s5619_s16 + $0x70] sm:$0xff]  }
 0xef5   : > { %v5101_v59 = vld [vmem:[%s5619_s16 + $0x30] sm:$0xff]  }
 0xef6   : > { %5210 = vrsqrt.f32 %v2946_v60  ;;  %v5102_v60 = vld [vmem:[%s5619_s16 + $0xf0] sm:$0xff]  }
 0xefa   : > { %v5205_v7 = vpop.eup %5204 }
 0xefb   : > { %v2951_v9 = vmul.f32 %v5205_v7, %v6017_v8  ;;  %v5069_v8 = vld [vmem:[%s5610_s28 + $0x94] ss:$8 sps:$4 sm:$0xff]  }
 0xefc   : > { %v5207_v26 = vpop.eup %5206  ;;  %v5103_v7 = vld [vmem:[%s5619_s16 + $0xb0] sm:$0xff]  }
 0xefd   : > { %v2959_v63 = vmul.f32 %v4472_v33, %v2951_v9  ;;  %v2952_v0 = vmul.f32 %v5207_v26, %v6020_v11  ;;  %v5105_v9 = vld [vmem:[%s5619_s16 + $0x38] sm:$0xff]  }
 0xefe   : > { %v5209_v5 = vpop.eup %5208  ;;  %v5106_v26 = vld [vmem:[%s5619_s16 + $0xf8] sm:$0xff]  }
 0xeff   : > { %v2960_v20 = vmul.f32 %v4472_v33, %v2952_v0  ;;  %v2953_v12 = vmul.f32 %v5209_v5, %v6025_v14  ;;  %v2967_v17 = vadd.f32 %v4473_v25, %v2959_v63  ;;  %v5107_v63 = vld [vmem:[%s5619_s16 + $0xb8] sm:$0xff]   ;;  %v5108_v0 = vld [vmem:[%s5619_s16 + $0x140] sm:$0xff]  }
 0xf00   : > { %v5211_v30 = vpop.eup %5210 }
 0xf01   : > { %v2954_v13 = vmul.f32 %v5211_v30, %v6031_v23  ;;  %v2968_v19 = vadd.f32 %v4473_v25, %v2960_v20  ;;  %v2961_v11 = vmul.f32 %v4472_v33, %v2953_v12  ;;  %v5072_v23 = vld [vmem:[%s5610_s28 + $0xa4] ss:$8 sps:$4 sm:$0xff]  }
 0xf03   : > { %v2996_v24 = vpack.c.bf16 %v2968_v19, %v2967_v17  ;;  %v2962_v27 = vmul.f32 %v4472_v33, %v2954_v13  ;;  %v2969_v28 = vadd.f32 %v4473_v25, %v2961_v11  ;;  %v5104_v33 = vld [vmem:[%s5619_s16 + $0x78] sm:$0xff]  }
 0xf05   : > { %4482 = vmatmul.mubr.msk.bf16.vlgmr.msra.gmra.mrb[28].mxu1 %vm1508_vm5, %v2996_v24  ;;  %4492 = vmatmul.mubr.msk.bf16.vlgmr.msra.gmra.mrb[24].mxu0 %vm1508_vm5, %v2996_v24  ;;  %v2970_v14 = vadd.f32 %v4473_v25, %v2962_v27 }
 0xf06   : > { %3293 = vmatpush1.bf16.msra.mxu1 %v5064_v22  ;;  %3086 = vmatprep.mubr.bf16.mxu1 %v5315_v16 }
 0xf07   : > { %3294 = vmatprep.subr.bf16.mxu1 %v5069_v8  ;;  %3233 = vmatprep.mubr.bf16.mxu0 %v5315_v16  ;;  %v2997_v21 = vpack.c.bf16 %v2970_v14, %v2969_v28  ;;  %v6121_v28 = vadd.s32 4294967295, %v5815_v51 }
 0xf08   : > { %4647 = vmatpush3.bf16.msra.mxu0 %v5077_v1 }
 0xf09   : > { %4648 = vmatprep.subr.bf16.mxu0 %v5080_v35  ;;  %vm3123_vm12 = vcmp.ge.s32.totalorder %v6121_v28, 0 }
 0xf0a   : > { %3295 = vmatpush1.bf16.msra.mxu1 %v5067_v15 }
 0xf0b   : > { %3296 = vmatprep.subr.bf16.mxu1 %v5072_v23 }
 0xf0c   : > { %4649 = vmatpush3.bf16.msra.mxu0 %v5081_v31 }
 0xf0d   : > { %4483 = vmatmul.mubr.msk.bf16.gmra.mrb[32].mxu1 %vm1508_vm5, %v2997_v21  ;;  %4493 = vmatmul.mubr.msk.bf16.gmra.mrb[28].mxu0 %vm1508_vm5, %v2997_v21 }
 0xf0e   : > { %3297 = vmatpush1.bf16.msra.mxu1 %v5070_v2  ;;  %3324 = vmatprep.mubr.bf16.mxu1 %v5315_v16 }
 0xf0f   : > { %3298 = vmatprep.subr.bf16.mxu1 %v5075_v29  ;;  %4650 = vmatprep.subr.bf16.mxu0 %v5084_v37 }
 0xf10   : > { %4651 = vmatpush3.bf16.msra.mxu0 %v5085_v38 }
 0xf11   : > { %4652 = vmatprep.subr.bf16.mxu0 %v5088_v36 }
 0xf12   : > { %3299 = vmatpush1.bf16.msra.mxu1 %v5073_v34 }
 0xf13   : > { %4674 = vmatprep.subr.bf16.mxu1 %v5078_v32 }
 0xf14   : > { %4653 = vmatpush3.bf16.msra.mxu0 %v5089_v41 }
 0xf15   : > { %4502 = vmatmul.mubr.msk.bf16.vlgmr.msra.gmra.mrb[36].mxu1 %vm1508_vm5, %v2996_v24  ;;  %4654 = vmatprep.subr.bf16.mxu0 %v5092_v44 }
 0xf16   : > { %3334 = vmatprep.mubr.bf16.mxu1 %v5315_v16  ;;  %4675 = vmatpush3.bf16.msra.mxu1 %v5079_v4  ;;  %v5083_v16 = vld [vmem:[%s5619_s16 + $0x88] sm:$0xff]  }
 0xf17   : > { %4676 = vmatprep.subr.bf16.mxu1 %v5082_v18 }
 0xf18   : > { %4655 = vmatpush3.bf16.msra.mxu0 %v5093_v45 }
 0xf19   : > { %4656 = vmatprep.subr.bf16.mxu0 %v5096_v48 }
 0xf1a   : > { %4677 = vmatpush3.bf16.msra.mxu1 %v5083_v16 }
 0xf1b   : > { %4678 = vmatprep.subr.bf16.mxu1 %v5086_v39 }
 0xf1c   : > { %4657 = vmatpush3.bf16.msra.mxu0 %v5097_v49 }
 0xf1d   : > { %4503 = vmatmul.mubr.msk.bf16.gmra.mrb[40].mxu1 %vm1508_vm5, %v2997_v21  ;;  %4658 = vmatprep.subr.bf16.mxu0 %v5100_v55  ;;  %v2995_v55 = vld [vmem:[%s5604_s13] sm:$0x3] }
 0xf1e   : > { %4679 = vmatpush3.bf16.msra.mxu1 %v5087_v40 }
 0xf1f   : > { %4680 = vmatprep.subr.bf16.mxu1 %v5090_v42 }
 0xf20   : > { %4659 = vmatpush3.bf16.msra.mxu0 %v5101_v59 }
 0xf21   : > { %4660 = vmatprep.subr.bf16.mxu0 %v5104_v33 }
 0xf22   : > { %4681 = vmatpush3.bf16.msra.mxu1 %v5091_v43 }
 0xf23   : > { %4682 = vmatprep.subr.bf16.mxu1 %v5094_v46 }
 0xf24   : > { %4661 = vmatpush3.bf16.msra.mxu0 %v5105_v9  ;;  %v3118_v9 = vadd.s32 24, %v5815_v51 }
 0xf25   : > { %4702 = vmatprep.subr.bf16.mxu0 %v5108_v0  ;;  %v3401_v0 = vsub.s32 1, %v5815_v51 }
 0xf26   : > { %4683 = vmatpush3.bf16.msra.mxu1 %v5095_v47 }
 0xf27   : > { %4684 = vmatprep.subr.bf16.mxu1 %v5098_v50 }
 0xf2a   : > { %4685 = vmatpush3.bf16.msra.mxu1 %v5099_v54 }
 0xf2b   : > { %4686 = vmatprep.subr.bf16.mxu1 %v5102_v60 }
 0xf2e   : > { %4687 = vmatpush3.bf16.msra.mxu1 %v5103_v7 }
 0xf2f   : > { %4688 = vmatprep.subr.bf16.mxu1 %v5106_v26 }
 0xf32   : > { %4689 = vmatpush3.bf16.msra.mxu1 %v5107_v63 }
 0xfd8   : > { %v3078_v5 = vpop.f32.mrb[28].mxu1  ;;  %v3225_v25 = vpop.f32.mrb[24].mxu0 }
 0xfd9   : > { %v3080_v20 = vpop.f32.mrb[29].mxu1  ;;  %v3227_v30 = vpop.f32.mrb[25].mxu0  ;;  %v3097_v17 = vrot.slane %v3078_v5, 7 }
 0xfda   : > { %v3082_v12 = vpop.f32.mrb[30].mxu1  ;;  %v3229_v13 = vpop.f32.mrb[26].mxu0  ;;  %v3098_v8 = vrot.slane %v3080_v20, 7 }
 0xfdb   : > { %v3099_v19 = vrot.slane %v3082_v12, 7  ;;  %v3084_v22 = vpop.f32.mrb[31].mxu1  ;;  %v3231_v24 = vpop.f32.mrb[27].mxu0 }
 0xfdc   : > { %v3100_v27 = vrot.slane %v3084_v22, 7 }
 0xfdd   : > { %v3112_v11 = vsel %vm3107_vm11, %v3097_v17, %v3099_v19 }
 0xfde   : > { %v3246_v15 = vadd.f32 %v3229_v13, %v3112_v11  ;;  %v3113_v14 = vsel %vm3107_vm11, %v3098_v8, %v3100_v27  ;;  %v6149_v13 = vadd.s32 1, %v3118_v9 }
 0xfdf   : > { %v6118_v23 = vadd.f32 %v3231_v24, %v3113_v14 }
 0xfe0   : > { %v3088_v2 = vpop.f32.mrb[32].mxu1  ;;  %v3235_v21 = vpop.f32.mrb[28].mxu0  ;;  %vm3373_vm14 = vcmp.lt.s32.totalorder %v6149_v13, 32 }
 0xfe1   : > { %v3101_v29 = vrot.slane %v3088_v2, 7  ;;  %v3090_v34 = vpop.f32.mrb[33].mxu1  ;;  %v3237_v3 = vpop.f32.mrb[29].mxu0 }
 0xfe2   : > { %v3102_v1 = vrot.slane %v3090_v34, 7  ;;  %v3092_v32 = vpop.f32.mrb[34].mxu1  ;;  %v3239_v4 = vpop.f32.mrb[30].mxu0 }
 0xfe3   : > { %v3110_v35 = vsel %vm3107_vm11, %v3099_v19, %v3101_v29  ;;  %v3103_v31 = vrot.slane %v3092_v32, 7  ;;  %v3094_v18 = vpop.f32.mrb[35].mxu1  ;;  %v3241_v16 = vpop.f32.mrb[31].mxu0  ;;  %v3402_v19 = vrot.slane %v2995_v55, %v3401_v0  ;;  %v5113_v0 = vld [vmem:[%s5619_s16 + $0x110] sm:$0xff]  }
 0xfe4   : > { %v3248_v37 = vadd.f32 %v3235_v21, %v3110_v35  ;;  %v3111_v38 = vsel %vm3107_vm11, %v3100_v27, %v3102_v1  ;;  %v3104_v39 = vrot.slane %v3094_v18, 7 }
 0xfe5   : > { %v3249_v40 = vadd.f32 %v3237_v3, %v3111_v38  ;;  %v3114_v36 = vsel %vm3107_vm11, %v3103_v31, %v3097_v17  ;;  %v3108_v41 = vsel %vm3107_vm11, %v3101_v29, %v3103_v31 }
 0xfe6   : > { %v3135_v42 = vsel %vm3123_vm12, %v3114_v36, 0.0  ;;  %v3250_v43 = vadd.f32 %v3239_v4, %v3108_v41  ;;  %v3115_v44 = vsel %vm3107_vm11, %v3104_v39, %v3098_v8  ;;  %v3109_v45 = vsel %vm3107_vm11, %v3102_v1, %v3104_v39 }
 0xfe7   : > { %v3244_v46 = vadd.f32 %v3225_v25, %v3135_v42  ;;  %v3136_v47 = vsel %vm3123_vm12, %v3115_v44, 0.0  ;;  %v3251_v48 = vadd.f32 %v3241_v16, %v3109_v45  ;;  %v3398_v25 = vrot.slane %v2995_v55, %v5818_v52  ;;  %v5109_v55 = vld [vmem:[%s5619_s16 + $0x100] sm:$0xff]  }
 0xfe8   : > { %v3245_v49 = vadd.f32 %v3227_v30, %v3136_v47  ;;  %v3326_v50 = vpop.f32.mrb[36].mxu1 }
 0xfe9   : > { %v3328_v54 = vpop.f32.mrb[37].mxu1  ;;  %v3345_v60 = vrot.slane %v3326_v50, 1 }
 0xfea   : > { %v3330_v59 = vpop.f32.mrb[38].mxu1  ;;  %v3346_v26 = vrot.slane %v3328_v54, 1 }
 0xfeb   : > { %v3347_v7 = vrot.slane %v3330_v59, 1  ;;  %v3332_v33 = vpop.f32.mrb[39].mxu1 }
 0xfec   : > { %v3348_v63 = vrot.slane %v3332_v33, 1 }
 0xfed   : > { %v3358_v5 = vsel %vm3353_vm13, %v3345_v60, %v3347_v7 }
 0xfee   : > { %v3386_v20 = vadd.f32 %v3358_v5, %v3244_v46  ;;  %v3359_v30 = vsel %vm3353_vm13, %v3346_v26, %v3348_v63  ;;  %v5114_v5 = vld [vmem:[%s5619_s16 + $0x158] sm:$0xff]  }
 0xfef   : > { %v3387_v12 = vadd.f32 %v3359_v30, %v3245_v49  ;;  %v5117_v30 = vld [vmem:[%s5619_s16 + $0x120] sm:$0xff]  }
 0xff0   : > { %v3336_v17 = vpop.f32.mrb[40].mxu1  ;;  %v3405_v22 = vadd.f32 %v3398_v25, %v3386_v20  ;;  %v5116_v20 = vld [vmem:[%s5619_s16 + $0x160] sm:$0xff]  }
 0xff1   : > { %v3349_v24 = vrot.slane %v3336_v17, 1  ;;  %v3338_v8 = vpop.f32.mrb[41].mxu1  ;;  %v3406_v3 = vadd.f32 %v3402_v19, %v3387_v12  ;;  %v5118_v12 = vld [vmem:[%s5619_s16 + $0x168] sm:$0xff]  }
 0xff2   : > { %v3350_v27 = vrot.slane %v3338_v8, 1  ;;  %v3340_v11 = vpop.f32.mrb[42].mxu1  ;;  %v3413_v1 = vmax.f32 %v3405_v22, 0.0  ;;  %v5119_v17 = vld [vmem:[%s5619_s16 + $0x128] sm:$0xff]   ;;  %v5121_v22 = vld [vmem:[%s5619_s16 + $0x130] sm:$0xff]   ;;  %v5123_v8 = vld [vmem:[%s5619_s16 + $0x138] sm:$0xff]  }
 0xff3   : > { %v3356_v14 = vsel %vm3353_vm13, %v3347_v7, %v3349_v24  ;;  %v3351_v2 = vrot.slane %v3340_v11, 1  ;;  %v3342_v52 = vpop.f32.mrb[43].mxu1  ;;  %v3414_v44 = vmax.f32 %v3406_v3, 0.0  ;;  %v5110_v7 = vld [vmem:[%s5619_s16 + $0x148] sm:$0xff]  }
 0xff4   : > { %v3388_v21 = vadd.f32 %v3356_v14, %v3246_v15  ;;  %v3357_v29 = vsel %vm3353_vm13, %v3348_v63, %v3350_v27  ;;  %v3352_v34 = vrot.slane %v3342_v52, 1  ;;  %v5112_v63 = vld [vmem:[%s5619_s16 + $0x150] sm:$0xff]  }
 0xff5   : > { %v3389_v32 = vadd.f32 %v3357_v29, %v6118_v23  ;;  %v3354_v4 = vsel %vm3353_vm13, %v3349_v24, %v3351_v2  ;;  %v3360_v35 = vsel %vm3353_vm13, %v3351_v2, %v3345_v60  ;;  %v5122_v24 = vld [vmem:[%s5619_s16 + $0x178] sm:$0xff]  }
 0xff6   : > { %v3407_v31 = vadd.f32 %v3398_v25, %v3388_v21  ;;  %v3384_v18 = vsel %vm3373_vm14, %v3360_v35, 0.0  ;;  %v3390_v16 = vadd.f32 %v3354_v4, %v3248_v37  ;;  %v3355_v15 = vsel %vm3353_vm13, %v3350_v27, %v3352_v34 }
 0xff7   : > { %v3392_v38 = vadd.f32 %v3384_v18, %v3250_v43  ;;  %v3361_v39 = vsel %vm3353_vm13, %v3352_v34, %v3346_v26  ;;  %v3391_v23 = vadd.f32 %v3355_v15, %v3249_v40  ;;  %v3408_v36 = vadd.f32 %v3402_v19, %v3389_v32  ;;  %v5111_v26 = vld [vmem:[%s5619_s16 + $0x108] sm:$0xff]  }
 0xff8   : > { %v3415_v41 = vmax.f32 %v3407_v31, 0.0  ;;  %v3385_v42 = vsel %vm3373_vm14, %v3361_v39, 0.0  ;;  %v3409_v45 = vadd.f32 %v3398_v25, %v3390_v16 }
 0xff9   : > { %v3393_v46 = vadd.f32 %v3385_v42, %v3251_v48  ;;  %v3416_v47 = vmax.f32 %v3408_v36, 0.0  ;;  %v3410_v37 = vadd.f32 %v3402_v19, %v3391_v23  ;;  %v3411_v49 = vadd.f32 %v3398_v25, %v3392_v38  ;;  %v5115_v25 = vld [vmem:[%s5619_s16 + $0x118] sm:$0xff]  }
 0xffa   : > { %v3518_v50 = vpack.c.bf16 %v3415_v41, %v3413_v1  ;;  %v3417_v54 = vmax.f32 %v3409_v45, 0.0 }
 0xffb   : > { %v3519_v43 = vpack.c.bf16 %v3416_v47, %v3414_v44  ;;  %v3412_v59 = vadd.f32 %v3402_v19, %v3393_v46  ;;  %v3418_v40 = vmax.f32 %v3410_v37, 0.0  ;;  %v3419_v60 = vmax.f32 %v3411_v49, 0.0  ;;  %v5120_v19 = vld [vmem:[%s5619_s16 + $0x170] sm:$0xff]  }
 0xffd   : > { %3650 = vmatprep.mubr.bf16.mxu0 %v3519_v43  ;;  %3811 = vmatprep.mubr.bf16.mxu1 %v3519_v43  ;;  %v3420_v33 = vmax.f32 %v3412_v59, 0.0  ;;  %v3520_v9 = vpack.c.bf16 %v3419_v60, %v3417_v54 }
 0xffe   : > { %3651 = vmatmul.mubr.bf16.vlgmr.msra.gmra.mrb[32].mxu0 %v3518_v50  ;;  %3812 = vmatmul.mubr.bf16.vlgmr.msra.gmra.mrb[44].mxu1 %v3518_v50 }
 0xfff   : > { %4703 = vmatpush3.bf16.msra.mxu0 %v5109_v55  ;;  %v3521_v48 = vpack.c.bf16 %v3420_v33, %v3418_v40 }
0x1000   : > { %4704 = vmatprep.subr.bf16.mxu0 %v5110_v7 }
0x1001   : > { %3658 = vmatprep.mubr.bf16.mxu0 %v3521_v48  ;;  %3819 = vmatprep.mubr.bf16.mxu1 %v3521_v48 }
0x1003   : > { %4705 = vmatpush3.bf16.msra.mxu0 %v5111_v26 }
0x1004   : > { %4706 = vmatprep.subr.bf16.mxu0 %v5112_v63 }
0x1006   : > { %3659 = vmatmul.mubr.bf16.gmra.mrb[36].mxu0 %v3520_v9  ;;  %3820 = vmatmul.mubr.bf16.gmra.mrb[48].mxu1 %v3520_v9 }
0x1007   : > { %4707 = vmatpush3.bf16.msra.mxu0 %v5113_v0  ;;  %3960 = vmatprep.mubr.bf16.mxu0 %v3519_v43 }
0x1008   : > { %4708 = vmatprep.subr.bf16.mxu0 %v5114_v5 }
0x100b   : > { %4709 = vmatpush3.bf16.msra.mxu0 %v5115_v25 }
0x100c   : > { %4710 = vmatprep.subr.bf16.mxu0 %v5116_v20  ;;  %v4552_v20 = vld [vmem:[%s1014_s15] ss:$0 sm:$0xff]  ;;  %s6393_s15 = sld [smem:[#allocation9_spill]] }
0x100f   : > { %4711 = vmatpush3.bf16.msra.mxu0 %v5117_v30 }
0x1010   : > { %4712 = vmatprep.subr.bf16.mxu0 %v5118_v12 }
0x1012   : > { %p4553_p1 = scmp.ne.s32.totalorder %s6393_s15, 1 }
0x1013   : > { %4713 = vmatpush3.bf16.msra.mxu0 %v5119_v17  ;;  %vm4900_vm15 = vmpackc.low (!%p4553_p1), %vm1508_vm5, %vm1508_vm5  ;;  %s6394_s29 = sld [smem:[#allocation20_spill]] (!%p4553_p1)  ;;  %vm5319_vm0 = vmmov (!%p4553_p1), 0   ;;  %s6395_s12 = sld [smem:[#allocation42_spill]] (!%p4553_p1)  ;;  %vm4110_vm1 = vcmask (!%p4553_p1), 253952  }
0x1014   : > { %4714 = vmatprep.subr.bf16.mxu0 %v5120_v19 }
0x1017   : > { %4715 = vmatpush3.bf16.msra.mxu0 %v5121_v22 }
0x1018   : > { %4716 = vmatprep.subr.bf16.mxu0 %v5122_v24 }
0x101b   : > { %4717 = vmatpush3.bf16.msra.mxu0 %v5123_v8 }
0x101e   : > { %3961 = vmatmul.mubr.bf16.vlgmr.msra.gmra.mrb[40].mxu0 %v3518_v50 }
0x101f   : > { %3968 = vmatprep.mubr.bf16.mxu0 %v3521_v48 }
0x1026   : > { %3969 = vmatmul.mubr.bf16.gmra.mrb[44].mxu0 %v3520_v9 }
0x10d1   : > { %v4662_v27 = vpop.f32.mrb[32].mxu0  ;;  %v4690_v11 = vpop.f32.mrb[44].mxu1 }
0x10d2   : > { %v4663_v14 = vpop.f32.mrb[33].mxu0  ;;  %v4691_v2 = vpop.f32.mrb[45].mxu1 }
0x10d3   : > { %v4664_v52 = vadd.f32 %v4663_v14, %v4662_v27  ;;  %v4692_v21 = vadd.f32 %v4691_v2, %v4690_v11  ;;  %v4665_v29 = vpop.f32.mrb[34].mxu0  ;;  %v4693_v34 = vpop.f32.mrb[46].mxu1 }
0x10d4   : > { %v4666_v3 = vpop.f32.mrb[35].mxu0  ;;  %v4694_v1 = vpop.f32.mrb[47].mxu1 }
0x10d5   : > { %v4667_v32 = vadd.f32 %v4666_v3, %v4665_v29  ;;  %v4695_v4 = vadd.f32 %v4694_v1, %v4693_v34  ;;  %v3667_v35 = vrot.slane %v4664_v52, 7 }
0x10d7   : > { %v3668_v31 = vrot.slane %v4667_v32, 7 }
0x10d9   : > { %v3673_v18 = vsel %vm3107_vm11, %v3667_v35, %v3668_v31  ;;  %v4668_v16 = vpop.f32.mrb[36].mxu0  ;;  %v4696_v15 = vpop.f32.mrb[48].mxu1 }
0x10da   : > { %v3829_v38 = vadd.f32 %v4695_v4, %v3673_v18  ;;  %v4669_v39 = vpop.f32.mrb[37].mxu0  ;;  %v4697_v23 = vpop.f32.mrb[49].mxu1 }
0x10db   : > { %v4670_v36 = vadd.f32 %v4669_v39, %v4668_v16  ;;  %v4698_v41 = vadd.f32 %v4697_v23, %v4696_v15  ;;  %v4671_v42 = vpop.f32.mrb[38].mxu0  ;;  %v4699_v44 = vpop.f32.mrb[50].mxu1  ;;  %v4108_v23 = vld [vmem:[%s6394_s29] sm:$0x1] (!%p4553_p1) }
0x10dc   : > { %v4672_v45 = vpop.f32.mrb[39].mxu0  ;;  %v4700_v46 = vpop.f32.mrb[51].mxu1 }
0x10dd   : > { %v3669_v47 = vrot.slane %v4670_v36, 7  ;;  %v4673_v37 = vadd.f32 %v4672_v45, %v4671_v42  ;;  %v4701_v49 = vadd.f32 %v4700_v46, %v4699_v44 }
0x10df   : > { %v3672_v50 = vsel %vm3107_vm11, %v3668_v31, %v3669_v47  ;;  %v3670_v54 = vrot.slane %v4673_v37, 7 }
0x10e0   : > { %v3830_v43 = vadd.f32 %v4698_v41, %v3672_v50 }
0x10e1   : > { %v3674_v55 = vsel %vm3107_vm11, %v3670_v54, %v3667_v35  ;;  %v3671_v59 = vsel %vm3107_vm11, %v3669_v47, %v3670_v54 }
0x10e2   : > { %v3675_v40 = vsel %vm3123_vm12, %v3674_v55, 0.0  ;;  %v3831_v60 = vadd.f32 %v4701_v49, %v3671_v59 }
0x10e3   : > { %v3828_v7 = vadd.f32 %v4692_v21, %v3675_v40 }
0x10f1   : > { %v4718_v33 = vpop.f32.mrb[40].mxu0 }
0x10f2   : > { %v4719_v9 = vpop.f32.mrb[41].mxu0 }
0x10f3   : > { %v4720_v48 = vadd.f32 %v4719_v9, %v4718_v33  ;;  %v4721_v26 = vpop.f32.mrb[42].mxu0 }
0x10f4   : > { %v4722_v63 = vpop.f32.mrb[43].mxu0 }
0x10f5   : > { %v4723_v0 = vadd.f32 %v4722_v63, %v4721_v26  ;;  %v3977_v5 = vrot.slane %v4720_v48, 1 }
0x10f7   : > { %v3978_v25 = vrot.slane %v4723_v0, 1 }
0x10f9   : > { %v3983_v30 = vsel %vm3353_vm13, %v3977_v5, %v3978_v25  ;;  %v4724_v28 = vpop.f32.mrb[44].mxu0 }
0x10fa   : > { %v3989_v12 = vadd.f32 %v3983_v30, %v3828_v7  ;;  %v4725_v17 = vpop.f32.mrb[45].mxu0 }
0x10fb   : > { %v4726_v19 = vadd.f32 %v4725_v17, %v4724_v28  ;;  %v4727_v22 = vpop.f32.mrb[46].mxu0 }
0x10fc   : > { %v3999_v24 = vadd.f32 %v4552_v20, %v3989_v12  ;;  %v4728_v8 = vpop.f32.mrb[47].mxu0 }
0x10fd   : > { %v3979_v27 = vrot.slane %v4726_v19, 1  ;;  %v4729_v11 = vadd.f32 %v4728_v8, %v4727_v22 }
0x10fe   : > { %v4003_v14 = vadd.f32 %v3999_v24, %v5995_v56 }
0x10ff   : > { %v3982_v2 = vsel %vm3353_vm13, %v3978_v25, %v3979_v27  ;;  %v3980_v52 = vrot.slane %v4729_v11, 1 }
0x1100   : > { %v4007_v21 = vmul.f32 %v4003_v14, %v5866_v61  ;;  %v3990_v29 = vadd.f32 %v3982_v2, %v3829_v38 }
0x1101   : > { %v3981_v34 = vsel %vm3353_vm13, %v3979_v27, %v3980_v52  ;;  %v3984_v3 = vsel %vm3353_vm13, %v3980_v52, %v3977_v5 }
0x1102   : > { %4011 = vst.msk [vmem:[#allocation2] sm:$0xff] %vm1508_vm5, %v4007_v21  ;;  %v4000_v1 = vadd.f32 %v4552_v20, %v3990_v29  ;;  %v3988_v32 = vsel %vm3373_vm14, %v3984_v3, 0.0  ;;  %v3991_v56 = vadd.f32 %v3981_v34, %v3830_v43 }
0x1103   : > { %v3992_v4 = vadd.f32 %v3988_v32, %v3831_v60 }
0x1104   : > { %v4004_v35 = vadd.f32 %v4000_v1, %v6003_v62  ;;  %v4001_v31 = vadd.f32 %v4552_v20, %v3991_v56 }
0x1105   : > { %v4002_v18 = vadd.f32 %v4552_v20, %v3992_v4  ;;  %4018 = sbr.rel (%p4553_p1) target bundleno = 4594 (0x11f2), region = 120 }
0x1106   : > { %v4008_v61 = vmul.f32 %v4004_v35, %v5862_v57  ;;  %v4005_v16 = vadd.f32 %v4001_v31, %v6000_v53  ;;  %v4020_v57 = vld [vmem:[#allocation3] sm:$0x1] (!%p4553_p1)  ;;  %v5318_v53 = vmov (!%p4553_p1), 0.0|0.0  }
0x1107   : > { %v4006_v15 = vadd.f32 %v4002_v18, %v6008_v6  ;;  %4898 = vmatprep.subr.bf16.mxu0 (!%p4553_p1), %v5318_v53  ;;  %4922 = vpush (!%p4553_p1), %v4020_v57  ;;  %v4019_v6 = vld [vmem:[%s6395_s12] sm:$0x1] (!%p4553_p1) }
0x1108   : > { %4012 = vst.msk [vmem:[#allocation2 + $0x8] sm:$0xff] %vm1508_vm5, %v4008_v61  ;;  %v4009_v51 = vmul.f32 %v4005_v16, %v5864_v58  ;;  %v4899_v62 = vpack.c.bf16 (!%p4553_p1), %v4008_v61, %v4007_v21  ;;  %v5320_v58 = vmov (!%p4553_p1), 0.0  }
0x1109   : > { %v4010_v38 = vmul.f32 %v4006_v15, %v5883_v10  ;;  %4895 = vmatprep.mubr.msk.f32.mxu0 (!%p4553_p1), %vm5319_vm0, %v5320_v58 }
0x110a   : > { %4013 = vst.msk [vmem:[#allocation2 + $0x10] sm:$0xff] %vm1508_vm5, %v4009_v51  ;;  %4901 = vmatpush3.bf16.xpose.msk.msra.mxu0 (!%p4553_p1), %vm4900_vm15, %v4899_v62 }
0x110b   : > { %4014 = vst.msk [vmem:[#allocation2 + $0x18] sm:$0xff] %vm1508_vm5, %v4010_v38  ;;  %4902 = vmatprep.subr.bf16.mxu0 (!%p4553_p1), %v5318_v53  ;;  %v4903_v10 = vpack.c.bf16 (!%p4553_p1), %v4010_v38, %v4009_v51 }
0x1112   : > { %4905 = vmatpush3.bf16.xpose.msk.msra.mxu0 %vm4900_vm15, %v4903_v10 }
0x1119   : > { %4896 = vmatmul.mubr.msk.f32.vlgmr.msra.gmra.mrb[0].mxu0 %vm1508_vm5, %v4019_v6 }
0x1138   : > { %s4923_s11 = spop %4922 }
0x1139   : > { %v4022_v13 = vstv %s4923_s11 }
0x11ec   : > { %v4104_v39 = vpop.f32.mrb[0].mxu0 }
0x11ed   : > { %v4105_v36 = vadd.f32 %v4104_v39, %v4022_v13  ;;  %v4897_v41 = vpop.f32.mrb[1].mxu0 }
0x11ef   : > { %v4109_v42 = vmul.f32 %v4108_v23, %v4105_v36 }
0x11f1   : > { %4111 = vst.msk [vmem:[%s5623_s9] sm:$0x1] %vm4110_vm1, %v4109_v42 }
0x11f2 PF: > { %s6396_s14 = sld [smem:[#allocation10_spill]]  ;;  %s6398_s1 = sld [smem:[#allocation43_spill]] }
0x11f3   : > { %s4125_s20 = sshll.u32 %s5623_s9, 4  ;;  %s6400_s22 = sand.u32 1, %s5282_s25   ;;  %s4126_s20 = int_to_ptr.vmem [resolvable:$true] %s4125_s20 }
0x11f4   : > { %s4113_s8 = scalar_lea.sflag [#allocation5], %s6400_s22  ;;  %s5212_s2 = scalar_lea.vmem %s4126_s20, 16 }
0x11f5   : > { %p5213_p2 = scmp.ne.s32.totalorder %s4126_s20, %s5212_s2  ;;  %s5321_s3 = smov [#allocation4]  }
0x11f6   : > { %s5216_s10 = sshll.u32 %s5321_s3, 4  ;;  %s5217_s10 = int_to_ptr.vmem [resolvable:$false] %s5216_s10 }
0x11f7   : > { %p5214_p4 = pnand %p5213_p2, %p5494_p3  ;;  %s5218_s23 = scalar_lea.vmem %s5217_s10, 32 }
0x11f8   : > { %s4559_s5 = sshll.u32 %s6396_s14, 4  ;;  %s6399_s7 = smov %s6398_s1 }
0x11f9   : > { %s6234_s26 = scalar_lea.hbm %s6398_s1, %s4559_s5  ;;  %p5215_p5 = pneg %p5214_p4 }
0x11fa   : > { %p5219_p6 = scmp.lt.s32.totalorder %s4126_s20, %s5217_s10  ;;  %p5220_p7 = scmp.lt.s32.totalorder %s5218_s23, %s5212_s2 }
0x11fc   : > { %p5221_p8 = por %p5220_p7, %p5219_p6 }
0x11fe   : > { %p5222_p10 = pnand %p5221_p8, %p5215_p5 }
0x1200   : > { %5225 = shalt.err (!%p5222_p10)
}
0x1201   : > { %s5226_s9 = scalar_lea.hbm %s6234_s26, 16  ;;  %s5230_s13 = scalar_lea.hbm %s6399_s7, 32 }
0x1202   : > { %p5227_p11 = scmp.ne.s32.totalorder %s6234_s26, %s5226_s9  ;;  %p5231_p0 = scmp.lt.u32.totalorder %s6234_s26, %s6399_s7 }
0x1203   : > { %p5232_p1 = scmp.lt.u32.totalorder %s5230_s13, %s5226_s9  ;;  %p5234_p4 = scmp.lt.u32.totalorder %s5226_s9, %s6234_s26 }
0x1204   : > { %p5228_p12 = pnand %p5227_p11, %p5494_p3 }
0x1205   : > { %p5233_p2 = por %p5232_p1, %p5231_p0 }
0x1206   : > { %p5229_p13 = pneg %p5228_p12 }
0x1207   : > { %p5235_p5 = por %p5234_p4, %p5233_p2 }
0x1209   : > { %p5236_p6 = pnand %p5235_p5, %p5229_p13 }
0x120b   : > { %5239 = shalt.err (!%p5236_p6)
}
0x120c   : > { %4924 = dma.vmem_to_hbm [thread:$0]  (%p5494_p3), %s4126_s20, 16, %s6234_s26, %s4113_s8  }
0x120d PF: > { %s6401_s15 = sld [smem:[#allocation13_spill]]  ;;  %s6402_s29 = sld [smem:[#allocation7_spill]] }
0x1213   : > { %p4930_p7 = scmp.ge.s32.totalorder %s6401_s15, 2  ;;  %s4137_s0 = sand.u32 1, %s6402_s29  }
0x1214   : > { %s4138_s12 = scalar_lea.sflag [#allocation5], %s4137_s0 }
0x1215   : > { %p4927_p8 = pnand %p4930_p7, %p5504_p9 }
0x1217   : > { %5273 = dma.done.wait (!%p4927_p8), %s4138_s12, 16  }
0x1218   : > { %5275 = vsyncadd (!%p4927_p8), %s4138_s12, 4294967280  ;;  %s38_s27 = sadd.s32 1, %s6401_s15   ;;  %s6404_s11 = sld [smem:[#allocation8_spill]] }
0x1219   : > { %p35_p10 = scmp.ge.s32.totalorder %s38_s27, 6   ;;  %s6405_s5 = sld [smem:[#allocation18_spill]] }
0x121a   : > { %s6406_s1 = sld [smem:[#allocation11_spill]]  ;;  %s6407_s26 = sld [smem:[#allocation12_spill]] }
0x121b   : > { %s6408_s2 = sld [smem:[#allocation14_spill]]  ;;  %s6409_s6 = sld [smem:[#allocation16_spill]] }
0x121c   : > { %s6410_s24 = smov %s5282_s25  ;;  %37 = sbr.rel (!%p35_p10) target bundleno = 27 (0x1b), region = 203 }
0x121e   : > { %s6411_s25 = smov %s6404_s11 }
0x1223   :  { %4142 = vsyncpa [#allocation5], 1 }
0x1224   :  { %4144 = vsyncpa [#allocation5 + $0x1], 1 }

</bundles_post_ra>
